<compile_context>
chip_gen: v7x
topology: tpu7x:2x2x1
jax: 0.10.0
libtpu: 0.0.40
codegen_flags: <defaults>
</compile_context>

<pallas_src>
import jax
import jax.numpy as jnp
from jax import lax
from jax.experimental import pallas as pl
from jax.experimental.pallas import tpu as pltpu

_LANE = 128  # TPU vreg lane width; channels are padded to a multiple of this.


def _round_up(x, m):
    return (x + m - 1) // m * m


def _bottleneck_kernel(x_ref, halo_ref, w1_ref, b1_ref, w2_ref, b2_ref,
                       w3_ref, b3_ref, out_ref, h1_ref):
    """One (batch image, H-row tile) step of the fused bottleneck block.

    x_ref   : (TH, W+2, Cp_in)     main rows of the W-zero-padded input (MXU dtype)
    halo_ref: (2,  W+2, Cp_in)     rows j*TH-1 and j*TH+TH (zero outside image)
    w1_ref  : (Cp_in, Cp_w)        conv1 weight, BN1 scale folded
    b1_ref  : (1, Cp_w)            BN1 bias (f32)
    w2_ref  : (3, 3, Cp_w, Cp_w)   conv2 weight (kh, kw, cin, cout), BN2 folded
    b2_ref  : (1, Cp_w)
    w3_ref  : (Cp_w, Cp_out)       conv3 weight, BN3 scale folded
    b3_ref  : (1, Cp_out)
    out_ref : (TH, W, Cp_out)      output tile (compute dtype)
    h1_ref  : (TH+2, W+2, Cp_w)    VMEM scratch holding the padded conv1 output
    """
    th, wp2, cin = x_ref.shape
    W = wp2 - 2
    cw = w1_ref.shape[1]
    cout = w3_ref.shape[1]
    cdt = w1_ref.dtype                        # MXU operand dtype (bf16 or f32)
    j = pl.program_id(1)
    n_j = pl.num_programs(1)

    # Column mask: the two W-pad columns of x are zero, but conv1's folded BN
    # bias makes relu(b1) != 0 there; conv2 expects true zero padding.
    col = lax.broadcasted_iota(jnp.int32, (1, wp2, cw), 1)
    col_ok = (col >= 1) & (col <= wp2 - 2)

    # ---- conv1x1 (BN1 folded) + ReLU on the main rows ----
    h1m = jnp.dot(x_ref[...].reshape(th * wp2, cin), w1_ref[...],
                  preferred_element_type=jnp.float32)
    h1m = jnp.maximum(h1m + b1_ref[...], 0.0).astype(cdt).reshape(th, wp2, cw)
    h1_ref[1:th + 1, :, :] = jnp.where(col_ok, h1m, 0.0)

    # ---- conv1x1 on the two halo rows (global rows j*TH-1 and j*TH+TH) ----
    h1h = jnp.dot(halo_ref[...].reshape(2 * wp2, cin), w1_ref[...],
                  preferred_element_type=jnp.float32)
    h1h = jnp.maximum(h1h + b1_ref[...], 0.0).astype(cdt).reshape(2, wp2, cw)
    h1h = jnp.where(col_ok, h1h, 0.0)
    h1_ref[0:1, :, :] = h1h[0:1]
    h1_ref[th + 1:th + 2, :, :] = h1h[1:2]

    # conv2 zero padding in H: only the first / last H-tile has halo rows that
    # lie outside the image; cold path via pl.when (free for interior tiles).
    @pl.when(j == 0)
    def _():
        h1_ref[0:1, :, :] = jnp.zeros((1, wp2, cw), cdt)

    @pl.when(j == n_j - 1)
    def _():
        h1_ref[th + 1:th + 2, :, :] = jnp.zeros((1, wp2, cw), cdt)

    # ---- conv3x3 (BN2 folded): nine K=Cw matmuls on shifted scratch views,
    #      accumulated in f32 (first tap initializes the accumulator). ----
    acc = None
    for kh in range(3):
        for kw in range(3):
            opnd = h1_ref[kh:kh + th, kw:kw + W, :].reshape(th * W, cw)
            part = jnp.dot(opnd, w2_ref[kh, kw],
                           preferred_element_type=jnp.float32)
            acc = part if acc is None else acc + part
    h2 = jnp.maximum(acc + b2_ref[...], 0.0)                    # (TH*W, Cw) f32

    # ---- conv1x1 (BN3 folded) + identity residual + ReLU ----
    h3 = jnp.dot(h2.astype(cdt), w3_ref[...],
                 preferred_element_type=jnp.float32) + b3_ref[...]
    # NOTE: the identity is the (possibly bf16) input window; feed a separate
    # f32 identity stream if tighter skip-add precision is ever required.
    ident = x_ref[:, 1:W + 1, :].reshape(th * W, cin).astype(jnp.float32)
    out = jnp.maximum(h3 + ident, 0.0)
    out_ref[...] = out.reshape(th, W, cout).astype(out_ref.dtype)


def _choose_tile_h(H, W, target_rows, min_tiles=1):
    """Largest divisor of H with TH*W <= target_rows (and >= min_tiles tiles)."""
    # TODO(synk): relax the divisor-of-H requirement (pad H + mask) and fold
    # multiple batch images into one matmul M for tiny-spatial stages.
    cap = H // min_tiles if (min_tiles > 1 and H % min_tiles == 0) else H
    best = 1
    for t in range(1, cap + 1):
        if H % t == 0 and t * W <= max(target_rows, W):
            best = t
    return best


def bottleneck_forward(x_nchw, packed_params, *, target_rows=2048):
    """x_nchw: (N, Cin, H, W) f32. Returns (N, Cout, H, W) in the compute dtype."""
    w1, b1, w2, b2, w3, b3 = packed_params
    N, Cin, H, W = x_nchw.shape
    cp_in, cp_w = w1.shape
    cp_out = w3.shape[-1]
    assert cp_in == cp_out, "identity residual path requires Cin == Cout"
    cdt = w1.dtype                                  # MXU / output dtype

    # Keep at least 2 grid steps (even) so v7x's two TensorCores both get work.
    th = _choose_tile_h(H, W, target_rows, min_tiles=2 if N == 1 else 1)
    n_t = H // th

    # Wrapper-side layout plumbing (single pass over the activation):
    # NCHW -> NHWC, zero-pad W by 1 each side (conv2 padding), pad channels to
    # the lane width and cast to the MXU dtype.
    x = jnp.transpose(x_nchw, (0, 2, 3, 1))
    x = jnp.pad(x, ((0, 0), (0, 0), (1, 1), (0, cp_in - Cin))).astype(cdt)
    # Tiny halo side-array: rows j*th-1 and j*th+th per tile (zero outside H).
    xh = jnp.pad(x, ((0, 0), (1, 1), (0, 0), (0, 0)))        # (N, H+2, W+2, Cp)
    top = xh[:, 0:H:th]                                       # row j*th - 1
    bot = xh[:, th + 1:H + 2:th]                              # row j*th + th
    halo = jnp.stack([top, bot], axis=2)                      # (N, n_t, 2, W+2, Cp)

    itemsize = jnp.dtype(cdt).itemsize
    flops = 2 * N * H * W * (cp_in * cp_w + 9 * cp_w * cp_w + cp_w * cp_out)
    bytes_accessed = (N * H * (W + 2) * cp_in * itemsize          # input
                      + N * n_t * 2 * (W + 2) * cp_in * itemsize  # halo rows
                      + N * H * W * cp_out * itemsize             # output
                      + (cp_in * cp_w + 9 * cp_w * cp_w + cp_w * cp_out) * itemsize
                      + (2 * cp_w + cp_out) * 4)                  # biases (f32)

    const2 = lambda n, j: (0, 0)
    const4 = lambda n, j: (0, 0, 0, 0)
    out = pl.pallas_call(
        _bottleneck_kernel,
        out_shape=jax.ShapeDtypeStruct((N, H, W, cp_out), cdt),
        grid=(N, n_t),
        in_specs=[
            # streamed, non-overlapping activation tile
            pl.BlockSpec((None, th, W + 2, cp_in), lambda n, j: (n, j, 0, 0)),
            # 2-row halo side-array for this tile
            pl.BlockSpec((None, None, 2, W + 2, cp_in),
                         lambda n, j: (n, j, 0, 0, 0)),
            # weights / biases: constant index_map -> stay resident in VMEM
            pl.BlockSpec((cp_in, cp_w), const2),
            pl.BlockSpec((1, cp_w), const2),
            pl.BlockSpec((3, 3, cp_w, cp_w), const4),
            pl.BlockSpec((1, cp_w), const2),
            pl.BlockSpec((cp_w, cp_out), const2),
            pl.BlockSpec((1, cp_out), const2),
        ],
        out_specs=pl.BlockSpec((None, th, W, cp_out), lambda n, j: (n, j, 0, 0)),
        scratch_shapes=[pltpu.VMEM((th + 2, W + 2, cp_w), cdt)],
        compiler_params=pltpu.CompilerParams(
            dimension_semantics=("parallel", "parallel"),
            vmem_limit_bytes=64 * 1024 * 1024),
        cost_estimate=pl.CostEstimate(flops=flops, transcendentals=0,
                                      bytes_accessed=bytes_accessed),
    )(x, halo, w1, b1, w2, b2, w3, b3)

    out = out[..., :Cin]                            # drop channel padding
    return jnp.transpose(out, (0, 3, 1, 2))         # back to NCHW


# ----------------------------- parameter packing -----------------------------

def _fold_bn(gamma, beta, mean, var, eps=1e-5):
    scale = gamma / jnp.sqrt(var + eps)
    return scale, beta - mean * scale


def pack_params(torch_layout, compute_dtype=jnp.bfloat16):
    """Fold inference-mode BN into the conv weights, pad channels to the TPU
    lane width and convert to the kernel layout / MXU dtype (host-side)."""
    w1_oihw, bn1, w2_oihw, bn2, w3_oihw, bn3 = torch_layout
    cw, cin = w1_oihw.shape[:2]
    cout = w3_oihw.shape[0]

    s1, b1 = _fold_bn(*bn1)
    s2, b2 = _fold_bn(*bn2)
    s3, b3 = _fold_bn(*bn3)

    cp_in = _round_up(cin, _LANE)
    cp_w = _round_up(cw, _LANE)
    cp_out = _round_up(cout, _LANE)

    w1 = jnp.transpose(w1_oihw[:, :, 0, 0], (1, 0)) * s1[None, :]       # (Cin, Cw)
    w1 = jnp.pad(w1, ((0, cp_in - cin), (0, cp_w - cw)))

    # TODO(synk): on v5e with width < 128 the channel padding doubles conv2 /
    # conv3 MACs; a dense-width repack of conv2's K would cut that waste.
    w2 = jnp.transpose(w2_oihw, (2, 3, 1, 0)) * s2[None, None, None, :]  # (kh,kw,ci,co)
    w2 = jnp.pad(w2, ((0, 0), (0, 0), (0, cp_w - cw), (0, cp_w - cw)))   # (3,3,Cp_w,Cp_w)

    w3 = jnp.transpose(w3_oihw[:, :, 0, 0], (1, 0)) * s3[None, :]        # (Cw, Cout)
    w3 = jnp.pad(w3, ((0, cp_w - cw), (0, cp_out - cout)))

    pad1 = lambda v, cp: jnp.pad(v, (0, cp - v.shape[0])).reshape(1, cp)
    return (w1.astype(compute_dtype), pad1(b1, cp_w).astype(jnp.float32),
            w2.astype(compute_dtype), pad1(b2, cp_w).astype(jnp.float32),
            w3.astype(compute_dtype), pad1(b3, cp_out).astype(jnp.float32))


def make_params(key, inplanes, planes, base_width=64, groups=1):
    """Deterministic synthetic weights in the shapes nn.Module.__init__ defines."""
    expansion = 4
    width = int(planes * (base_width / 64.0)) * groups
    cout = planes * expansion
    ks = jax.random.split(key, 15)

    w1 = 0.1 * jax.random.normal(ks[0], (width, inplanes, 1, 1), jnp.float32)
    w2 = 0.1 * jax.random.normal(ks[1], (width, width, 3, 3), jnp.float32)
    w3 = 0.1 * jax.random.normal(ks[2], (cout, width, 1, 1), jnp.float32)

    def bn(k0, k1, k2, k3, c):
        gamma = 1.0 + 0.1 * jax.random.normal(k0, (c,), jnp.float32)
        beta = 0.1 * jax.random.normal(k1, (c,), jnp.float32)
        mean = 0.1 * jax.random.normal(k2, (c,), jnp.float32)
        var = jnp.abs(jax.random.normal(k3, (c,), jnp.float32)) + 0.5
        return gamma, beta, mean, var

    bn1 = bn(ks[3], ks[4], ks[5], ks[6], width)
    bn2 = bn(ks[7], ks[8], ks[9], ks[10], width)
    bn3 = bn(ks[11], ks[12], ks[13], ks[14], cout)
    return (w1, bn1, w2, bn2, w3, bn3)


def reference_forward(x_nchw, torch_layout):
    """Pure-JAX NCHW reference mirroring the PyTorch forward (eval-mode BN)."""
    w1, bn1, w2, bn2, w3, bn3 = torch_layout
    dn = ('NCHW', 'OIHW', 'NCHW')
    eps = 1e-5

    def bn_apply(y, p):
        g, b, m, v = (t.reshape(1, -1, 1, 1) for t in p)
        return (y - m) / jnp.sqrt(v + eps) * g + b

    out = lax.conv_general_dilated(x_nchw, w1, (1, 1), 'VALID', dimension_numbers=dn)
    out = jax.nn.relu(bn_apply(out, bn1))
    out = lax.conv_general_dilated(out, w2, (1, 1), ((1, 1), (1, 1)), dimension_numbers=dn)
    out = jax.nn.relu(bn_apply(out, bn2))
    out = lax.conv_general_dilated(out, w3, (1, 1), 'VALID', dimension_numbers=dn)
    out = bn_apply(out, bn3)
    return jax.nn.relu(out + x_nchw)


if __name__ == "__main__":
    key = jax.random.PRNGKey(0)
    k_x, k_p = jax.random.split(key)

    planes = 4
    inplanes = planes * 4          # Cin == Cout so the identity path is valid
    N, H, W = 2, 16, 16

    x = jax.random.normal(k_x, (N, inplanes, H, W), jnp.float32)
    torch_layout = make_params(k_p, inplanes, planes)
    ref = reference_forward(x, torch_layout)

    # 1) f32 MXU operands, small tile (target_rows=128 -> 2 H-tiles/image):
    #    tight check of the kernel logic (tiling, halo rows, pl.when edges).
    out_f32 = bottleneck_forward(x, pack_params(torch_layout, jnp.float32),
                                 target_rows=128)
    out_f32 = jax.block_until_ready(out_f32)
    assert out_f32.shape == ref.shape
    err_f32 = float(jnp.max(jnp.abs(out_f32.astype(jnp.float32) - ref)))
    assert jnp.allclose(out_f32.astype(jnp.float32), ref,
                        rtol=5e-4, atol=5e-4), err_f32

    # 2) bf16 MXU operands + bf16 output, default (large) tile: production path.
    out_bf16 = bottleneck_forward(x, pack_params(torch_layout, jnp.bfloat16))
    out_bf16 = jax.block_until_ready(out_bf16)
    err_bf16 = float(jnp.max(jnp.abs(out_bf16.astype(jnp.float32) - ref)))
    assert jnp.allclose(out_bf16.astype(jnp.float32), ref,
                        rtol=3e-2, atol=3e-2), err_bf16

    print("KERNEL_OK")
</pallas_src>

<mosaic_0001>
module attributes {stable_mosaic.version = 11 : i64} {
  func.func @_bottleneck_kernel(%arg0: i32, %arg1: i32, %arg2: memref<1x8x18x128xf32, #tpu.memory_space<vmem>>, %arg3: memref<1x1x2x18x128xf32, #tpu.memory_space<vmem>>, %arg4: memref<128x128xf32, #tpu.memory_space<vmem>>, %arg5: memref<1x128xf32, #tpu.memory_space<vmem>>, %arg6: memref<3x3x128x128xf32, #tpu.memory_space<vmem>>, %arg7: memref<1x128xf32, #tpu.memory_space<vmem>>, %arg8: memref<128x128xf32, #tpu.memory_space<vmem>>, %arg9: memref<1x128xf32, #tpu.memory_space<vmem>>, %arg10: memref<1x8x16x128xf32, #tpu.memory_space<vmem>>, %arg11: memref<10x18x128xf32, #tpu.memory_space<vmem>>) attributes {dimension_semantics = [#tpu.dimension_semantics<parallel>, #tpu.dimension_semantics<parallel>], iteration_bounds = array<i64: 2, 2>, scalar_prefetch = 0 : i64, scratch_operands = 1 : i64, tpu.core_type = #tpu.core_type<tc>, window_params = [{transform_indices = @transform_0, window_bounds = array<i64: 1, 8, 18, 128>}, {transform_indices = @transform_1, window_bounds = array<i64: 1, 1, 2, 18, 128>}, {pipeline_mode = #tpu.pipeline_mode<synchronous>, transform_indices = @transform_2, window_bounds = array<i64: 128, 128>}, {pipeline_mode = #tpu.pipeline_mode<synchronous>, transform_indices = @transform_3, window_bounds = array<i64: 1, 128>}, {pipeline_mode = #tpu.pipeline_mode<synchronous>, transform_indices = @transform_4, window_bounds = array<i64: 3, 3, 128, 128>}, {pipeline_mode = #tpu.pipeline_mode<synchronous>, transform_indices = @transform_5, window_bounds = array<i64: 1, 128>}, {pipeline_mode = #tpu.pipeline_mode<synchronous>, transform_indices = @transform_6, window_bounds = array<i64: 128, 128>}, {pipeline_mode = #tpu.pipeline_mode<synchronous>, transform_indices = @transform_7, window_bounds = array<i64: 1, 128>}, {transform_indices = @transform_8, window_bounds = array<i64: 1, 8, 16, 128>}]} {
    %0 = tpu.iota {dimensions = array<i32: 1>} : vector<1x18x128xi32>
    %c1_i32 = arith.constant 1 : i32
    %1 = vector.broadcast %c1_i32 : i32 to vector<1x18x128xi32>
    %2 = arith.cmpi sge, %0, %1 : vector<1x18x128xi32>
    %c16_i32 = arith.constant 16 : i32
    %3 = vector.broadcast %c16_i32 : i32 to vector<1x18x128xi32>
    %4 = arith.cmpi sle, %0, %3 : vector<1x18x128xi32>
    %5 = arith.andi %2, %4 : vector<1x18x128xi1>
    %c0 = arith.constant 0 : index
    %c0_0 = arith.constant 0 : index
    %c0_1 = arith.constant 0 : index
    %c0_2 = arith.constant 0 : index
    %6 = vector.load %arg2[%c0, %c0_0, %c0_1, %c0_2] : memref<1x8x18x128xf32, #tpu.memory_space<vmem>>, vector<1x8x18x128xf32>
    %7 = vector.shape_cast %6 : vector<1x8x18x128xf32> to vector<8x18x128xf32>
    %8 = vector.shape_cast %7 : vector<8x18x128xf32> to vector<144x128xf32>
    %c0_3 = arith.constant 0 : index
    %c0_4 = arith.constant 0 : index
    %9 = vector.load %arg4[%c0_3, %c0_4] : memref<128x128xf32, #tpu.memory_space<vmem>>, vector<128x128xf32>
    %cst = arith.constant dense<0.000000e+00> : vector<144x128xf32>
    %10 = tpu.matmul %8, %9, %cst {dimension_numbers = #tpu.dot_dimension_numbers<[1], [0], [0], [1], [0, 0, 1, 1], [], []>} : vector<144x128xf32>, vector<128x128xf32>, vector<144x128xf32> -> vector<144x128xf32>
    %c0_5 = arith.constant 0 : index
    %c0_6 = arith.constant 0 : index
    %11 = vector.load %arg5[%c0_5, %c0_6] : memref<1x128xf32, #tpu.memory_space<vmem>>, vector<1x128xf32>
    %12 = vector.broadcast %11 : vector<1x128xf32> to vector<144x128xf32>
    %13 = arith.addf %10, %12 : vector<144x128xf32>
    %cst_7 = arith.constant 0.000000e+00 : f32
    %14 = vector.broadcast %cst_7 : f32 to vector<144x128xf32>
    %15 = arith.maximumf %13, %14 : vector<144x128xf32>
    %16 = vector.shape_cast %15 : vector<144x128xf32> to vector<8x18x128xf32>
    %cst_8 = arith.constant 0.000000e+00 : f32
    %17 = vector.shape_cast %5 : vector<1x18x128xi1> to vector<1x18x128xi1>
    %18 = vector.broadcast %17 : vector<1x18x128xi1> to vector<8x18x128xi1>
    %19 = vector.broadcast %cst_8 : f32 to vector<8x18x128xf32>
    %20 = arith.select %18, %16, %19 : vector<8x18x128xi1>, vector<8x18x128xf32>
    %c1 = arith.constant 1 : index
    %c0_9 = arith.constant 0 : index
    %c0_10 = arith.constant 0 : index
    %21 = vector.load %arg11[%c1, %c0_9, %c0_10] : memref<10x18x128xf32, #tpu.memory_space<vmem>>, vector<8x18x128xf32>
    tpu.vector_store %arg11[%c1, %c0_9, %c0_10], %20 {strides = array<i32>} : memref<10x18x128xf32, #tpu.memory_space<vmem>>, vector<8x18x128xf32>,
    %c0_11 = arith.constant 0 : index
    %c0_12 = arith.constant 0 : index
    %c0_13 = arith.constant 0 : index
    %c0_14 = arith.constant 0 : index
    %c0_15 = arith.constant 0 : index
    %22 = vector.load %arg3[%c0_11, %c0_12, %c0_13, %c0_14, %c0_15] : memref<1x1x2x18x128xf32, #tpu.memory_space<vmem>>, vector<1x1x2x18x128xf32>
    %23 = vector.shape_cast %22 : vector<1x1x2x18x128xf32> to vector<2x18x128xf32>
    %24 = vector.shape_cast %23 : vector<2x18x128xf32> to vector<36x128xf32>
    %c0_16 = arith.constant 0 : index
    %c0_17 = arith.constant 0 : index
    %25 = vector.load %arg4[%c0_16, %c0_17] : memref<128x128xf32, #tpu.memory_space<vmem>>, vector<128x128xf32>
    %cst_18 = arith.constant dense<0.000000e+00> : vector<36x128xf32>
    %26 = tpu.matmul %24, %25, %cst_18 {dimension_numbers = #tpu.dot_dimension_numbers<[1], [0], [0], [1], [0, 0, 1, 1], [], []>} : vector<36x128xf32>, vector<128x128xf32>, vector<36x128xf32> -> vector<36x128xf32>
    %c0_19 = arith.constant 0 : index
    %c0_20 = arith.constant 0 : index
    %27 = vector.load %arg5[%c0_19, %c0_20] : memref<1x128xf32, #tpu.memory_space<vmem>>, vector<1x128xf32>
    %28 = vector.broadcast %27 : vector<1x128xf32> to vector<36x128xf32>
    %29 = arith.addf %26, %28 : vector<36x128xf32>
    %cst_21 = arith.constant 0.000000e+00 : f32
    %30 = vector.broadcast %cst_21 : f32 to vector<36x128xf32>
    %31 = arith.maximumf %29, %30 : vector<36x128xf32>
    %32 = vector.shape_cast %31 : vector<36x128xf32> to vector<2x18x128xf32>
    %cst_22 = arith.constant 0.000000e+00 : f32
    %33 = vector.shape_cast %5 : vector<1x18x128xi1> to vector<1x18x128xi1>
    %34 = vector.broadcast %33 : vector<1x18x128xi1> to vector<2x18x128xi1>
    %35 = vector.broadcast %cst_22 : f32 to vector<2x18x128xf32>
    %36 = arith.select %34, %32, %35 : vector<2x18x128xi1>, vector<2x18x128xf32>
    %37 = vector.extract_strided_slice %36 {offsets = [0, 0, 0], sizes = [1, 18, 128], strides = [1, 1, 1]} : vector<2x18x128xf32> to vector<1x18x128xf32>
    %c0_23 = arith.constant 0 : index
    %c0_24 = arith.constant 0 : index
    %c0_25 = arith.constant 0 : index
    %38 = vector.load %arg11[%c0_23, %c0_24, %c0_25] : memref<10x18x128xf32, #tpu.memory_space<vmem>>, vector<1x18x128xf32>
    tpu.vector_store %arg11[%c0_23, %c0_24, %c0_25], %37 {strides = array<i32>} : memref<10x18x128xf32, #tpu.memory_space<vmem>>, vector<1x18x128xf32>,
    %39 = vector.extract_strided_slice %36 {offsets = [1, 0, 0], sizes = [1, 18, 128], strides = [1, 1, 1]} : vector<2x18x128xf32> to vector<1x18x128xf32>
    %c9 = arith.constant 9 : index
    %c0_26 = arith.constant 0 : index
    %c0_27 = arith.constant 0 : index
    %40 = vector.load %arg11[%c9, %c0_26, %c0_27] : memref<10x18x128xf32, #tpu.memory_space<vmem>>, vector<1x18x128xf32>
    tpu.vector_store %arg11[%c9, %c0_26, %c0_27], %39 {strides = array<i32>} : memref<10x18x128xf32, #tpu.memory_space<vmem>>, vector<1x18x128xf32>,
    %c0_i32 = arith.constant 0 : i32
    %41 = arith.cmpi eq, %arg1, %c0_i32 : i32
    %42 = arith.extui %41 : i1 to i32
    %c0_i32_28 = arith.constant 0 : i32
    %43 = arith.cmpi ne, %42, %c0_i32_28 : i32
    scf.if %43 {
      %cst_119 = arith.constant 0.000000e+00 : f32
      %120 = vector.broadcast %cst_119 : f32 to vector<1x18x128xf32>
      %c0_120 = arith.constant 0 : index
      %c0_121 = arith.constant 0 : index
      %c0_122 = arith.constant 0 : index
      %121 = vector.load %arg11[%c0_120, %c0_121, %c0_122] : memref<10x18x128xf32, #tpu.memory_space<vmem>>, vector<1x18x128xf32>
      tpu.vector_store %arg11[%c0_120, %c0_121, %c0_122], %120 {strides = array<i32>} : memref<10x18x128xf32, #tpu.memory_space<vmem>>, vector<1x18x128xf32>,
    } else {
    }
    %c1_i32_29 = arith.constant 1 : i32
    %44 = arith.cmpi eq, %arg1, %c1_i32_29 : i32
    %45 = arith.extui %44 : i1 to i32
    %c0_i32_30 = arith.constant 0 : i32
    %46 = arith.cmpi ne, %45, %c0_i32_30 : i32
    scf.if %46 {
      %cst_119 = arith.constant 0.000000e+00 : f32
      %120 = vector.broadcast %cst_119 : f32 to vector<1x18x128xf32>
      %c9_120 = arith.constant 9 : index
      %c0_121 = arith.constant 0 : index
      %c0_122 = arith.constant 0 : index
      %121 = vector.load %arg11[%c9_120, %c0_121, %c0_122] : memref<10x18x128xf32, #tpu.memory_space<vmem>>, vector<1x18x128xf32>
      tpu.vector_store %arg11[%c9_120, %c0_121, %c0_122], %120 {strides = array<i32>} : memref<10x18x128xf32, #tpu.memory_space<vmem>>, vector<1x18x128xf32>,
    } else {
    }
    %c0_31 = arith.constant 0 : index
    %c0_32 = arith.constant 0 : index
    %c0_33 = arith.constant 0 : index
    %47 = vector.load %arg11[%c0_31, %c0_32, %c0_33] : memref<10x18x128xf32, #tpu.memory_space<vmem>>, vector<8x16x128xf32>
    %48 = vector.shape_cast %47 : vector<8x16x128xf32> to vector<128x128xf32>
    %c0_34 = arith.constant 0 : index
    %c0_35 = arith.constant 0 : index
    %c0_36 = arith.constant 0 : index
    %c0_37 = arith.constant 0 : index
    %49 = vector.load %arg6[%c0_34, %c0_35, %c0_36, %c0_37] : memref<3x3x128x128xf32, #tpu.memory_space<vmem>>, vector<1x1x128x128xf32>
    %50 = vector.shape_cast %49 : vector<1x1x128x128xf32> to vector<128x128xf32>
    %cst_38 = arith.constant dense<0.000000e+00> : vector<128x128xf32>
    %51 = tpu.matmul %48, %50, %cst_38 {dimension_numbers = #tpu.dot_dimension_numbers<[1], [0], [0], [1], [0, 0, 1, 1], [], []>} : vector<128x128xf32>, vector<128x128xf32>, vector<128x128xf32> -> vector<128x128xf32>
    %c0_39 = arith.constant 0 : index
    %c1_40 = arith.constant 1 : index
    %c0_41 = arith.constant 0 : index
    %52 = vector.load %arg11[%c0_39, %c1_40, %c0_41] : memref<10x18x128xf32, #tpu.memory_space<vmem>>, vector<8x16x128xf32>
    %53 = vector.shape_cast %52 : vector<8x16x128xf32> to vector<128x128xf32>
    %c0_42 = arith.constant 0 : index
    %c1_43 = arith.constant 1 : index
    %c0_44 = arith.constant 0 : index
    %c0_45 = arith.constant 0 : index
    %54 = vector.load %arg6[%c0_42, %c1_43, %c0_44, %c0_45] : memref<3x3x128x128xf32, #tpu.memory_space<vmem>>, vector<1x1x128x128xf32>
    %55 = vector.shape_cast %54 : vector<1x1x128x128xf32> to vector<128x128xf32>
    %cst_46 = arith.constant dense<0.000000e+00> : vector<128x128xf32>
    %56 = tpu.matmul %53, %55, %cst_46 {dimension_numbers = #tpu.dot_dimension_numbers<[1], [0], [0], [1], [0, 0, 1, 1], [], []>} : vector<128x128xf32>, vector<128x128xf32>, vector<128x128xf32> -> vector<128x128xf32>
    %57 = arith.addf %51, %56 : vector<128x128xf32>
    %c0_47 = arith.constant 0 : index
    %c2 = arith.constant 2 : index
    %c0_48 = arith.constant 0 : index
    %58 = vector.load %arg11[%c0_47, %c2, %c0_48] : memref<10x18x128xf32, #tpu.memory_space<vmem>>, vector<8x16x128xf32>
    %59 = vector.shape_cast %58 : vector<8x16x128xf32> to vector<128x128xf32>
    %c0_49 = arith.constant 0 : index
    %c2_50 = arith.constant 2 : index
    %c0_51 = arith.constant 0 : index
    %c0_52 = arith.constant 0 : index
    %60 = vector.load %arg6[%c0_49, %c2_50, %c0_51, %c0_52] : memref<3x3x128x128xf32, #tpu.memory_space<vmem>>, vector<1x1x128x128xf32>
    %61 = vector.shape_cast %60 : vector<1x1x128x128xf32> to vector<128x128xf32>
    %cst_53 = arith.constant dense<0.000000e+00> : vector<128x128xf32>
    %62 = tpu.matmul %59, %61, %cst_53 {dimension_numbers = #tpu.dot_dimension_numbers<[1], [0], [0], [1], [0, 0, 1, 1], [], []>} : vector<128x128xf32>, vector<128x128xf32>, vector<128x128xf32> -> vector<128x128xf32>
    %63 = arith.addf %57, %62 : vector<128x128xf32>
    %c1_54 = arith.constant 1 : index
    %c0_55 = arith.constant 0 : index
    %c0_56 = arith.constant 0 : index
    %64 = vector.load %arg11[%c1_54, %c0_55, %c0_56] : memref<10x18x128xf32, #tpu.memory_space<vmem>>, vector<8x16x128xf32>
    %65 = vector.shape_cast %64 : vector<8x16x128xf32> to vector<128x128xf32>
    %c1_57 = arith.constant 1 : index
    %c0_58 = arith.constant 0 : index
    %c0_59 = arith.constant 0 : index
    %c0_60 = arith.constant 0 : index
    %66 = vector.load %arg6[%c1_57, %c0_58, %c0_59, %c0_60] : memref<3x3x128x128xf32, #tpu.memory_space<vmem>>, vector<1x1x128x128xf32>
    %67 = vector.shape_cast %66 : vector<1x1x128x128xf32> to vector<128x128xf32>
    %cst_61 = arith.constant dense<0.000000e+00> : vector<128x128xf32>
    %68 = tpu.matmul %65, %67, %cst_61 {dimension_numbers = #tpu.dot_dimension_numbers<[1], [0], [0], [1], [0, 0, 1, 1], [], []>} : vector<128x128xf32>, vector<128x128xf32>, vector<128x128xf32> -> vector<128x128xf32>
    %69 = arith.addf %63, %68 : vector<128x128xf32>
    %c1_62 = arith.constant 1 : index
    %c1_63 = arith.constant 1 : index
    %c0_64 = arith.constant 0 : index
    %70 = vector.load %arg11[%c1_62, %c1_63, %c0_64] : memref<10x18x128xf32, #tpu.memory_space<vmem>>, vector<8x16x128xf32>
    %71 = vector.shape_cast %70 : vector<8x16x128xf32> to vector<128x128xf32>
    %c1_65 = arith.constant 1 : index
    %c1_66 = arith.constant 1 : index
    %c0_67 = arith.constant 0 : index
    %c0_68 = arith.constant 0 : index
    %72 = vector.load %arg6[%c1_65, %c1_66, %c0_67, %c0_68] : memref<3x3x128x128xf32, #tpu.memory_space<vmem>>, vector<1x1x128x128xf32>
    %73 = vector.shape_cast %72 : vector<1x1x128x128xf32> to vector<128x128xf32>
    %cst_69 = arith.constant dense<0.000000e+00> : vector<128x128xf32>
    %74 = tpu.matmul %71, %73, %cst_69 {dimension_numbers = #tpu.dot_dimension_numbers<[1], [0], [0], [1], [0, 0, 1, 1], [], []>} : vector<128x128xf32>, vector<128x128xf32>, vector<128x128xf32> -> vector<128x128xf32>
    %75 = arith.addf %69, %74 : vector<128x128xf32>
    %c1_70 = arith.constant 1 : index
    %c2_71 = arith.constant 2 : index
    %c0_72 = arith.constant 0 : index
    %76 = vector.load %arg11[%c1_70, %c2_71, %c0_72] : memref<10x18x128xf32, #tpu.memory_space<vmem>>, vector<8x16x128xf32>
    %77 = vector.shape_cast %76 : vector<8x16x128xf32> to vector<128x128xf32>
    %c1_73 = arith.constant 1 : index
    %c2_74 = arith.constant 2 : index
    %c0_75 = arith.constant 0 : index
    %c0_76 = arith.constant 0 : index
    %78 = vector.load %arg6[%c1_73, %c2_74, %c0_75, %c0_76] : memref<3x3x128x128xf32, #tpu.memory_space<vmem>>, vector<1x1x128x128xf32>
    %79 = vector.shape_cast %78 : vector<1x1x128x128xf32> to vector<128x128xf32>
    %cst_77 = arith.constant dense<0.000000e+00> : vector<128x128xf32>
    %80 = tpu.matmul %77, %79, %cst_77 {dimension_numbers = #tpu.dot_dimension_numbers<[1], [0], [0], [1], [0, 0, 1, 1], [], []>} : vector<128x128xf32>, vector<128x128xf32>, vector<128x128xf32> -> vector<128x128xf32>
    %81 = arith.addf %75, %80 : vector<128x128xf32>
    %c2_78 = arith.constant 2 : index
    %c0_79 = arith.constant 0 : index
    %c0_80 = arith.constant 0 : index
    %82 = vector.load %arg11[%c2_78, %c0_79, %c0_80] : memref<10x18x128xf32, #tpu.memory_space<vmem>>, vector<8x16x128xf32>
    %83 = vector.shape_cast %82 : vector<8x16x128xf32> to vector<128x128xf32>
    %c2_81 = arith.constant 2 : index
    %c0_82 = arith.constant 0 : index
    %c0_83 = arith.constant 0 : index
    %c0_84 = arith.constant 0 : index
    %84 = vector.load %arg6[%c2_81, %c0_82, %c0_83, %c0_84] : memref<3x3x128x128xf32, #tpu.memory_space<vmem>>, vector<1x1x128x128xf32>
    %85 = vector.shape_cast %84 : vector<1x1x128x128xf32> to vector<128x128xf32>
    %cst_85 = arith.constant dense<0.000000e+00> : vector<128x128xf32>
    %86 = tpu.matmul %83, %85, %cst_85 {dimension_numbers = #tpu.dot_dimension_numbers<[1], [0], [0], [1], [0, 0, 1, 1], [], []>} : vector<128x128xf32>, vector<128x128xf32>, vector<128x128xf32> -> vector<128x128xf32>
    %87 = arith.addf %81, %86 : vector<128x128xf32>
    %c2_86 = arith.constant 2 : index
    %c1_87 = arith.constant 1 : index
    %c0_88 = arith.constant 0 : index
    %88 = vector.load %arg11[%c2_86, %c1_87, %c0_88] : memref<10x18x128xf32, #tpu.memory_space<vmem>>, vector<8x16x128xf32>
    %89 = vector.shape_cast %88 : vector<8x16x128xf32> to vector<128x128xf32>
    %c2_89 = arith.constant 2 : index
    %c1_90 = arith.constant 1 : index
    %c0_91 = arith.constant 0 : index
    %c0_92 = arith.constant 0 : index
    %90 = vector.load %arg6[%c2_89, %c1_90, %c0_91, %c0_92] : memref<3x3x128x128xf32, #tpu.memory_space<vmem>>, vector<1x1x128x128xf32>
    %91 = vector.shape_cast %90 : vector<1x1x128x128xf32> to vector<128x128xf32>
    %cst_93 = arith.constant dense<0.000000e+00> : vector<128x128xf32>
    %92 = tpu.matmul %89, %91, %cst_93 {dimension_numbers = #tpu.dot_dimension_numbers<[1], [0], [0], [1], [0, 0, 1, 1], [], []>} : vector<128x128xf32>, vector<128x128xf32>, vector<128x128xf32> -> vector<128x128xf32>
    %93 = arith.addf %87, %92 : vector<128x128xf32>
    %c2_94 = arith.constant 2 : index
    %c2_95 = arith.constant 2 : index
    %c0_96 = arith.constant 0 : index
    %94 = vector.load %arg11[%c2_94, %c2_95, %c0_96] : memref<10x18x128xf32, #tpu.memory_space<vmem>>, vector<8x16x128xf32>
    %95 = vector.shape_cast %94 : vector<8x16x128xf32> to vector<128x128xf32>
    %c2_97 = arith.constant 2 : index
    %c2_98 = arith.constant 2 : index
    %c0_99 = arith.constant 0 : index
    %c0_100 = arith.constant 0 : index
    %96 = vector.load %arg6[%c2_97, %c2_98, %c0_99, %c0_100] : memref<3x3x128x128xf32, #tpu.memory_space<vmem>>, vector<1x1x128x128xf32>
    %97 = vector.shape_cast %96 : vector<1x1x128x128xf32> to vector<128x128xf32>
    %cst_101 = arith.constant dense<0.000000e+00> : vector<128x128xf32>
    %98 = tpu.matmul %95, %97, %cst_101 {dimension_numbers = #tpu.dot_dimension_numbers<[1], [0], [0], [1], [0, 0, 1, 1], [], []>} : vector<128x128xf32>, vector<128x128xf32>, vector<128x128xf32> -> vector<128x128xf32>
    %99 = arith.addf %93, %98 : vector<128x128xf32>
    %c0_102 = arith.constant 0 : index
    %c0_103 = arith.constant 0 : index
    %100 = vector.load %arg7[%c0_102, %c0_103] : memref<1x128xf32, #tpu.memory_space<vmem>>, vector<1x128xf32>
    %101 = vector.broadcast %100 : vector<1x128xf32> to vector<128x128xf32>
    %102 = arith.addf %99, %101 : vector<128x128xf32>
    %cst_104 = arith.constant 0.000000e+00 : f32
    %103 = vector.broadcast %cst_104 : f32 to vector<128x128xf32>
    %104 = arith.maximumf %102, %103 : vector<128x128xf32>
    %c0_105 = arith.constant 0 : index
    %c0_106 = arith.constant 0 : index
    %105 = vector.load %arg8[%c0_105, %c0_106] : memref<128x128xf32, #tpu.memory_space<vmem>>, vector<128x128xf32>
    %cst_107 = arith.constant dense<0.000000e+00> : vector<128x128xf32>
    %106 = tpu.matmul %104, %105, %cst_107 {dimension_numbers = #tpu.dot_dimension_numbers<[1], [0], [0], [1], [0, 0, 1, 1], [], []>} : vector<128x128xf32>, vector<128x128xf32>, vector<128x128xf32> -> vector<128x128xf32>
    %c0_108 = arith.constant 0 : index
    %c0_109 = arith.constant 0 : index
    %107 = vector.load %arg9[%c0_108, %c0_109] : memref<1x128xf32, #tpu.memory_space<vmem>>, vector<1x128xf32>
    %108 = vector.broadcast %107 : vector<1x128xf32> to vector<128x128xf32>
    %109 = arith.addf %106, %108 : vector<128x128xf32>
    %c0_110 = arith.constant 0 : index
    %c0_111 = arith.constant 0 : index
    %c1_112 = arith.constant 1 : index
    %c0_113 = arith.constant 0 : index
    %110 = vector.load %arg2[%c0_110, %c0_111, %c1_112, %c0_113] : memref<1x8x18x128xf32, #tpu.memory_space<vmem>>, vector<1x8x16x128xf32>
    %111 = vector.shape_cast %110 : vector<1x8x16x128xf32> to vector<8x16x128xf32>
    %112 = vector.shape_cast %111 : vector<8x16x128xf32> to vector<128x128xf32>
    %113 = arith.addf %109, %112 : vector<128x128xf32>
    %cst_114 = arith.constant 0.000000e+00 : f32
    %114 = vector.broadcast %cst_114 : f32 to vector<128x128xf32>
    %115 = arith.maximumf %113, %114 : vector<128x128xf32>
    %116 = vector.shape_cast %115 : vector<128x128xf32> to vector<8x16x128xf32>
    %c0_115 = arith.constant 0 : index
    %c0_116 = arith.constant 0 : index
    %c0_117 = arith.constant 0 : index
    %c0_118 = arith.constant 0 : index
    %117 = vector.load %arg10[%c0_115, %c0_116, %c0_117, %c0_118] : memref<1x8x16x128xf32, #tpu.memory_space<vmem>>, vector<1x8x16x128xf32>
    %118 = vector.shape_cast %117 : vector<1x8x16x128xf32> to vector<8x16x128xf32>
    %119 = vector.shape_cast %116 : vector<8x16x128xf32> to vector<1x8x16x128xf32>
    tpu.vector_store %arg10[%c0_115, %c0_116, %c0_117, %c0_118], %119 {strides = array<i32>} : memref<1x8x16x128xf32, #tpu.memory_space<vmem>>, vector<1x8x16x128xf32>,
    return
  }
  func.func @transform_0(%arg0: i32, %arg1: i32) -> (i32, i32, i32, i32) {
    %c0_i32 = arith.constant 0 : i32
    %c0_i32_0 = arith.constant 0 : i32
    %c0_i32_1 = arith.constant 0 : i32
    return %arg0, %arg1, %c0_i32, %c0_i32_0 : i32, i32, i32, i32
  }
  func.func @transform_1(%arg0: i32, %arg1: i32) -> (i32, i32, i32, i32, i32) {
    %c0_i32 = arith.constant 0 : i32
    %c0_i32_0 = arith.constant 0 : i32
    %c0_i32_1 = arith.constant 0 : i32
    %c0_i32_2 = arith.constant 0 : i32
    return %arg0, %arg1, %c0_i32, %c0_i32_0, %c0_i32_1 : i32, i32, i32, i32, i32
  }
  func.func @transform_2(%arg0: i32, %arg1: i32) -> (i32, i32) {
    %c0_i32 = arith.constant 0 : i32
    %c0_i32_0 = arith.constant 0 : i32
    %c0_i32_1 = arith.constant 0 : i32
    return %c0_i32, %c0_i32_0 : i32, i32
  }
  func.func @transform_3(%arg0: i32, %arg1: i32) -> (i32, i32) {
    %c0_i32 = arith.constant 0 : i32
    %c0_i32_0 = arith.constant 0 : i32
    %c0_i32_1 = arith.constant 0 : i32
    return %c0_i32, %c0_i32_0 : i32, i32
  }
  func.func @transform_4(%arg0: i32, %arg1: i32) -> (i32, i32, i32, i32) {
    %c0_i32 = arith.constant 0 : i32
    %c0_i32_0 = arith.constant 0 : i32
    %c0_i32_1 = arith.constant 0 : i32
    %c0_i32_2 = arith.constant 0 : i32
    %c0_i32_3 = arith.constant 0 : i32
    return %c0_i32, %c0_i32_0, %c0_i32_1, %c0_i32_2 : i32, i32, i32, i32
  }
  func.func @transform_5(%arg0: i32, %arg1: i32) -> (i32, i32) {
    %c0_i32 = arith.constant 0 : i32
    %c0_i32_0 = arith.constant 0 : i32
    %c0_i32_1 = arith.constant 0 : i32
    return %c0_i32, %c0_i32_0 : i32, i32
  }
  func.func @transform_6(%arg0: i32, %arg1: i32) -> (i32, i32) {
    %c0_i32 = arith.constant 0 : i32
    %c0_i32_0 = arith.constant 0 : i32
    %c0_i32_1 = arith.constant 0 : i32
    return %c0_i32, %c0_i32_0 : i32, i32
  }
  func.func @transform_7(%arg0: i32, %arg1: i32) -> (i32, i32) {
    %c0_i32 = arith.constant 0 : i32
    %c0_i32_0 = arith.constant 0 : i32
    %c0_i32_1 = arith.constant 0 : i32
    return %c0_i32, %c0_i32_0 : i32, i32
  }
  func.func @transform_8(%arg0: i32, %arg1: i32) -> (i32, i32, i32, i32) {
    %c0_i32 = arith.constant 0 : i32
    %c0_i32_0 = arith.constant 0 : i32
    %c0_i32_1 = arith.constant 0 : i32
    return %arg0, %arg1, %c0_i32, %c0_i32_0 : i32, i32, i32, i32
  }
}

</mosaic_0001>

<bundles_post_ra>
// kernel: tpu_custom_call.1
= control target key start
LH: loop header
LB: loop body
LE: loop exit
PB: predicated region body
PF: predicated region fallthrough
CT: control target
= control target key end

     0   :  { %s8063_s0 = inlined_call_operand.hbm [shape: f32[2,16,18,128], index: 0, kind: input, shape index: {}]   ;;  %s8064_s1 = inlined_call_operand.hbm [shape: f32[2,2,2,18,128], index: 1, kind: input, shape index: {}]   ;;  %s8065_s2 = inlined_call_operand.hbm [shape: f32[128,128], index: 2, kind: input, shape index: {}]   ;;  %s8066_s3 = inlined_call_operand.hbm [shape: f32[1,128], index: 3, kind: input, shape index: {}]   ;;  %s8067_s4 = inlined_call_operand.hbm [shape: f32[3,3,128,128], index: 4, kind: input, shape index: {}]   ;;  %s8068_s5 = inlined_call_operand.hbm [shape: f32[1,128], index: 5, kind: input, shape index: {}]   ;;  %s8069_s6 = inlined_call_operand.hbm [shape: f32[128,128], index: 6, kind: input, shape index: {}]   ;;  %s8070_s7 = inlined_call_operand.hbm [shape: f32[1,128], index: 7, kind: input, shape index: {}]   ;;  %s8071_s8 = inlined_call_operand.hbm [shape: f32[2,16,16,128], index: 8, kind: output, shape index: {}]  }
   0x1   :  { %8082 = sst [smem:[#allocation29_spill]] %s8063_s0 }
   0x2   :  { %8083 = sst [smem:[#allocation30_spill]] %s8065_s2 }
   0x3   :  { %8084 = sst [smem:[#allocation31_spill]] %s8066_s3 }
   0x4   :  { %8085 = sst [smem:[#allocation32_spill]] %s8067_s4 }
   0x5   :  { %8086 = sst [smem:[#allocation33_spill]] %s8068_s5 }
   0x6   :  { %8087 = sst [smem:[#allocation34_spill]] %s8069_s6 }
   0x7   :  { %8088 = sst [smem:[#allocation35_spill]] %s8070_s7 }
   0x8   :  { %8089 = sst [smem:[#allocation36_spill]] %s8071_s8 }
   0x9   :  { %13 = vsyncpa [#allocation4], 0 }
   0xa   :  { %15 = vsyncpa [#allocation4 + $0x1], 0 }
   0xb   :  { %16 = vsyncpa [#allocation7], 0 }
   0xc   :  { %18 = vsyncpa [#allocation7 + $0x1], 0 }
   0xd   :  { %19 = vsyncpa [#allocation10], 0 }
   0xe   :  { %20 = vsyncpa [#allocation13], 0 }
   0xf   :  { %21 = vsyncpa [#allocation16], 0 }
  0x10   :  { %22 = vsyncpa [#allocation5], 0 }
  0x11   :  { %24 = vsyncpa [#allocation5 + $0x1], 0  ;;  %s6959_s27 = smov 0   ;;  %s6961_s28 = smov 0  }
  0x12   :  { %s6963_s29 = smov 0   ;;  %s6965_s30 = smov 0  }
  0x13   :  { %s6967_s9 = smov 0   ;;  %s6969_s10 = smov 0  }
  0x14   :  { %s6971_s11 = smov 0   ;;  %s6973_s12 = smov 0  }
  0x15 LB: > { %8090 = sst [smem:[#allocation25_spill]] %s6877_s30  ;;  %s7000_s13 = sadd.s32 4294967295, %s6893_s12   ;;  %s6893_s12 = sphi %s6973_s12, %s30_s12   ;;  %s6889_s11 = sphi %s6971_s11, %s8136_s11   ;;  %s6885_s10 = sphi %s6969_s10, %s8135_s10   ;;  %s6881_s9 = sphi %s6967_s9, %s8134_s9   ;;  %s6877_s30 = sphi %s6965_s30, %s8133_s30   ;;  %s6873_s29 = sphi %s6963_s29, %s8132_s29   ;;  %s6869_s28 = sphi %s6961_s28, %s8131_s28   ;;  %s6865_s27 = sphi %s6959_s27, %s8130_s27  }
  0x16   : > { %8091 = sst [smem:[#allocation26_spill]] %s6881_s9  ;;  %p4776_p0 = scmp.ge.s32.totalorder %s6893_s12, 1 }
  0x17   : > { %p8074_p1 = scmp.eq.s32.totalorder %s7000_s13, 0  ;;  %p257_p2 = scmp.lt.s32.totalorder %s6893_s12, 5 }
  0x18   : > { %s6895_s15 = smov [#allocation8]   ;;  %s6896_s18 = smov [#allocation9]  }
  0x19   : > { %p7005_p3 = pnand %p4776_p0, %p257_p2  ;;  %s269_s16 = sshll.u32 %s6895_s15, 4  ;;  %s7009_s16 = int_to_ptr.vmem [resolvable:$true] %s269_s16 }
  0x1a   : > { %s283_s19 = sshll.u32 %s6896_s18, 4  ;;  %s6897_s20 = smov [#allocation12]   ;;  %s7019_s19 = int_to_ptr.vmem [resolvable:$true] %s283_s19 }
  0x1b   : > { %s8092_s14 = scalar_select %p7005_p3, 1, 0 }
  0x1c   : > { %p6403_p4 = pneg %p7005_p3  ;;  %s7021_s21 = sshll.u32 %s6897_s20, 4  ;;  %s308_s21 = int_to_ptr.vmem [resolvable:$true] %s7021_s21 }
  0x1d   : > { %8093 = sst [smem:[#allocation27_spill]] %s8092_s14  ;;  %s8095_s2 = sld [smem:[#allocation30_spill]] }
  0x1e   : > { %p7015_p5 = pnand %p6403_p4, %p8074_p1 }
  0x20   : > { %p7031_p7 = pneg %p7015_p5 }
  0x23   : > { %s6547_s24 = scalar_lea.hbm %s8095_s2, 2048 }
  0x24   : > { %p6548_p6 = scmp.ne.s32.totalorder %s8095_s2, %s6547_s24  ;;  %p6554_p10 = scmp.lt.u32.totalorder %s6547_s24, %s8095_s2 }
  0x26   : > { %p6550_p8 = pnand %p7031_p7, %p6548_p6 }
  0x28   : > { %p6551_p9 = pneg %p6550_p8 }
  0x2a   : > { %p6556_p11 = pnand %p6554_p10, %p6551_p9 }
  0x2c   : > { %6559 = shalt.err (!%p6556_p11)
}
  0x2d   : > { %s6560_s22 = scalar_lea.vmem %s7009_s16, 2048  ;;  %p6568_p2 = scmp.lt.s32.totalorder %s7009_s16, %s7009_s16 }
  0x2e   : > { %p6561_p12 = scmp.ne.s32.totalorder %s7009_s16, %s6560_s22  ;;  %p6569_p4 = scmp.lt.s32.totalorder %s6560_s22, %s6560_s22 }
  0x30   : > { %p6563_p13 = pnand %p6561_p12, %p7031_p7  ;;  %p6570_p6 = por %p6569_p4, %p6568_p2 }
  0x32   : > { %p6564_p0 = pneg %p6563_p13 }
  0x34   : > { %p6571_p8 = pnand %p6570_p6, %p6564_p0 }
  0x36   : > { %6574 = shalt.err (!%p6571_p8)
}
  0x37   : > { %s8076_s23 = smov 128   ;;  %s8078_s24 = smov 8  }
  0x38   : > { %6406 = dma.hbm_to_vmem [thread:$0]  (!%p7015_p5), %s8095_s2, 2048, %s7009_s16, [#allocation7], %s8076_s23, %s8076_s23, %s8078_s24  }
  0x39   : > { %s8097_s3 = sld [smem:[#allocation31_spill]] }
  0x3f   : > { %s6575_s22 = scalar_lea.hbm %s8097_s3, 16 }
  0x40   : > { %p6576_p9 = scmp.ne.s32.totalorder %s8097_s3, %s6575_s22  ;;  %p6582_p12 = scmp.lt.u32.totalorder %s6575_s22, %s8097_s3 }
  0x42   : > { %p6578_p10 = pnand %p6576_p9, %p7031_p7 }
  0x44   : > { %p6579_p11 = pneg %p6578_p10 }
  0x46   : > { %p6584_p13 = pnand %p6582_p12, %p6579_p11 }
  0x48   : > { %6587 = shalt.err (!%p6584_p13)
}
  0x49   : > { %s6588_s16 = scalar_lea.vmem %s7019_s19, 16  ;;  %s6595_s8 = scalar_lea.vmem %s7019_s19, 32 }
  0x4a   : > { %p6589_p0 = scmp.ne.s32.totalorder %s7019_s19, %s6588_s16  ;;  %p6596_p6 = scmp.lt.s32.totalorder %s7019_s19, %s7019_s19 }
  0x4b   : > { %p6597_p8 = scmp.lt.s32.totalorder %s6595_s8, %s6588_s16 }
  0x4c   : > { %p6591_p2 = pnand %p6589_p0, %p7031_p7 }
  0x4d   : > { %p6598_p9 = por %p6597_p8, %p6596_p6 }
  0x4e   : > { %p6592_p4 = pneg %p6591_p2 }
  0x50   : > { %p6599_p10 = pnand %p6598_p9, %p6592_p4 }
  0x52   : > { %6602 = shalt.err (!%p6599_p10)
}
  0x53   : > { %6409 = dma.hbm_to_vmem [thread:$0]  (!%p7015_p5), %s8097_s3, 16, %s7019_s19, [#allocation10]  }
  0x54   : > { %s8098_s5 = sld [smem:[#allocation33_spill]] }
  0x5a   : > { %s6603_s26 = scalar_lea.hbm %s8098_s5, 16 }
  0x5b   : > { %p6604_p11 = scmp.ne.s32.totalorder %s8098_s5, %s6603_s26  ;;  %p6610_p0 = scmp.lt.u32.totalorder %s6603_s26, %s8098_s5 }
  0x5d   : > { %p6606_p12 = pnand %p6604_p11, %p7031_p7 }
  0x5f   : > { %p6607_p13 = pneg %p6606_p12 }
  0x61   : > { %p6612_p2 = pnand %p6610_p0, %p6607_p13 }
  0x63   : > { %6615 = shalt.err (!%p6612_p2)
}
  0x64   : > { %s6616_s8 = scalar_lea.vmem %s308_s21, 16  ;;  %s6623_s19 = scalar_lea.vmem %s308_s21, 32 }
  0x65   : > { %p6617_p4 = scmp.ne.s32.totalorder %s308_s21, %s6616_s8  ;;  %p6624_p9 = scmp.lt.s32.totalorder %s308_s21, %s308_s21 }
  0x66   : > { %p6625_p10 = scmp.lt.s32.totalorder %s6623_s19, %s6616_s8 }
  0x67   : > { %p6619_p6 = pnand %p6617_p4, %p7031_p7 }
  0x68   : > { %p6626_p1 = por %p6625_p10, %p6624_p9 }
  0x69   : > { %p6620_p8 = pneg %p6619_p6 }
  0x6b   : > { %p6627_p3 = pnand %p6626_p1, %p6620_p8 }
  0x6d   : > { %6630 = shalt.err (!%p6627_p3)
}
  0x6e   : > { %6415 = dma.hbm_to_vmem [thread:$0]  (!%p7015_p5), %s8098_s5, 16, %s308_s21, [#allocation13]  }
  0x6f   : > { %s6900_s14 = smov [#allocation11]   ;;  %s6901_s26 = smov [#allocation14]  }
  0x70   : > { %s293_s25 = sshll.u32 %s6900_s14, 4  ;;  %s317_s18 = sshll.u32 %s6901_s26, 4  ;;  %s294_s25 = int_to_ptr.vmem [resolvable:$true] %s293_s25  ;;  %s318_s18 = int_to_ptr.vmem [resolvable:$true] %s317_s18 }
  0x71   : > { %s8099_s4 = sld [smem:[#allocation32_spill]] }
  0x77   : > { %s6631_s16 = scalar_lea.hbm %s8099_s4, 18432 }
  0x78   : > { %p6632_p1 = scmp.ne.s32.totalorder %s8099_s4, %s6631_s16  ;;  %p6638_p12 = scmp.lt.u32.totalorder %s6631_s16, %s8099_s4 }
  0x7a   : > { %p6634_p3 = pnand %p6632_p1, %p7031_p7 }
  0x7c   : > { %p6635_p11 = pneg %p6634_p3 }
  0x7e   : > { %p6640_p13 = pnand %p6638_p12, %p6635_p11 }
  0x80   : > { %6643 = shalt.err (!%p6640_p13)
}
  0x81   : > { %s6644_s21 = scalar_lea.vmem %s294_s25, 18432  ;;  %p6652_p6 = scmp.lt.s32.totalorder %s294_s25, %s294_s25 }
  0x82   : > { %p6645_p0 = scmp.ne.s32.totalorder %s294_s25, %s6644_s21  ;;  %p6653_p8 = scmp.lt.s32.totalorder %s6644_s21, %s6644_s21 }
  0x84   : > { %p6647_p2 = pnand %p6645_p0, %p7031_p7  ;;  %p6654_p9 = por %p6653_p8, %p6652_p6 }
  0x86   : > { %p6648_p4 = pneg %p6647_p2 }
  0x88   : > { %p6655_p10 = pnand %p6654_p9, %p6648_p4 }
  0x8a   : > { %6658 = shalt.err (!%p6655_p10)
}
  0x8b   : > { %s8100_s9 = smov 128   ;;  %s8101_s6 = sld [smem:[#allocation34_spill]] }
  0x8c   : > { %6412 = dma.hbm_to_vmem [thread:$0]  (!%p7015_p5), %s8099_s4, 18432, %s294_s25, [#allocation10], %s8100_s9, %s8100_s9, %s8078_s24  }
  0x91   : > { %s6659_s22 = scalar_lea.hbm %s8101_s6, 2048 }
  0x92   : > { %p6660_p1 = scmp.ne.s32.totalorder %s8101_s6, %s6659_s22  ;;  %p6666_p12 = scmp.lt.u32.totalorder %s6659_s22, %s8101_s6 }
  0x94   : > { %p6662_p3 = pnand %p6660_p1, %p7031_p7 }
  0x96   : > { %p6663_p11 = pneg %p6662_p3 }
  0x98   : > { %p6668_p13 = pnand %p6666_p12, %p6663_p11 }
  0x9a   : > { %6671 = shalt.err (!%p6668_p13)
}
  0x9b   : > { %s6672_s21 = scalar_lea.vmem %s318_s18, 2048  ;;  %p6680_p6 = scmp.lt.s32.totalorder %s318_s18, %s318_s18 }
  0x9c   : > { %p6673_p0 = scmp.ne.s32.totalorder %s318_s18, %s6672_s21  ;;  %p6681_p8 = scmp.lt.s32.totalorder %s6672_s21, %s6672_s21 }
  0x9e   : > { %p6675_p2 = pnand %p6673_p0, %p7031_p7  ;;  %p6682_p9 = por %p6681_p8, %p6680_p6 }
  0xa0   : > { %p6676_p4 = pneg %p6675_p2 }
  0xa2   : > { %p6683_p10 = pnand %p6682_p9, %p6676_p4 }
  0xa4   : > { %6686 = shalt.err (!%p6683_p10)
}
  0xa5   : > { %6418 = dma.hbm_to_vmem [thread:$0]  (!%p7015_p5), %s8101_s6, 2048, %s318_s18, [#allocation13], %s8100_s9, %s8100_s9, %s8078_s24  }
  0xa6   : > { %s6902_s14 = smov [#allocation15]   ;;  %s8102_s7 = sld [smem:[#allocation35_spill]] }
  0xa7   : > { %s331_s26 = sshll.u32 %s6902_s14, 4  ;;  %s332_s26 = int_to_ptr.vmem [resolvable:$true] %s331_s26 }
  0xac   : > { %s6687_s16 = scalar_lea.hbm %s8102_s7, 16 }
  0xad   : > { %p6688_p1 = scmp.ne.s32.totalorder %s8102_s7, %s6687_s16  ;;  %p6694_p12 = scmp.lt.u32.totalorder %s6687_s16, %s8102_s7 }
  0xaf   : > { %p6690_p3 = pnand %p6688_p1, %p7031_p7 }
  0xb1   : > { %p6691_p11 = pneg %p6690_p3 }
  0xb3   : > { %p6696_p13 = pnand %p6694_p12, %p6691_p11 }
  0xb5   : > { %6699 = shalt.err (!%p6696_p13)
}
  0xb6   : > { %s6700_s18 = scalar_lea.vmem %s332_s26, 16  ;;  %s6707_s25 = scalar_lea.vmem %s332_s26, 32 }
  0xb7   : > { %p6701_p0 = scmp.ne.s32.totalorder %s332_s26, %s6700_s18  ;;  %p6708_p6 = scmp.lt.s32.totalorder %s332_s26, %s332_s26 }
  0xb8   : > { %p6709_p8 = scmp.lt.s32.totalorder %s6707_s25, %s6700_s18 }
  0xb9   : > { %p6703_p2 = pnand %p6701_p0, %p7031_p7 }
  0xba   : > { %p6710_p9 = por %p6709_p8, %p6708_p6 }
  0xbb   : > { %p6704_p4 = pneg %p6703_p2 }
  0xbd   : > { %p6711_p10 = pnand %p6710_p9, %p6704_p4 }
  0xbf   : > { %6714 = shalt.err (!%p6711_p10)
}
  0xc0   : > { %6421 = dma.hbm_to_vmem [thread:$0]  (!%p7015_p5), %s8102_s7, 16, %s332_s26, [#allocation16]  }
  0xc1   : > { %s4775_s15 = sadd.s32 4294967294, %s6893_s12   ;;  %s39_s20 = sadd.s32 1, %s6885_s10 }
  0xc2   : > { %p40_p7 = scmp.ge.s32.totalorder %s39_s20, 2  ;;  %s42_s17 = sadd.s32 1, %s6889_s11 }
  0xc3   : > { %s51_s22 = sadd.s32 1, %s6873_s29  ;;  %p58_p1 = scmp.ne.s32.totalorder %s6873_s29, %s6869_s28 }
  0xc4   : > { %s8138_s20 = smov (%p40_p7, %s39_s20), 0  ;;  %s8140_s17 = smov (!%p40_p7, %s42_s17), %s6889_s11 }
  0xc5   : > { %s47_s16 = ssub.s32 %s6885_s10, %s8138_s20  ;;  %p59_p3 = scmp.eq.s32.totalorder %s6893_s12, 0 }
  0xc6   : > { %p44_p11 = scmp.ge.s32.totalorder %s8140_s17, 2  ;;  %p64_p5 = scmp.ne.s32.totalorder %s6869_s28, %s6865_s27 }
  0xc7   : > { %p7172_p12 = por %p59_p3, %p58_p1  ;;  %p244_p13 = scmp.eq.s32.totalorder %s7000_s13, 3 }
  0xc8   : > { %s8142_s17 = smov (%p44_p11, %s8140_s17), 0  ;;  %p8105_p0 = scmp.eq.s32.totalorder %s7000_s13, 0 }
  0xc9   : > { %8104 = sst [smem:[#allocation28_spill]] %s8142_s17  ;;  %p7185_p4 = por %p244_p13, %p58_p1 }
  0xca   : > { %p7181_p2 = por %p8105_p0, %p64_p5  ;;  %s46_s30 = ssub.s32 %s6889_s11, %s8142_s17 }
  0xcb   : > { %s8107_s19 = scalar_select %p7185_p4, 1, 0 }
  0xcc   : > { %p250_p6 = scmp.eq.s32.totalorder %s4775_s15, 3  ;;  %s48_s21 = sor.u32 %s47_s16, %s46_s30 }
  0xcd   : > { %p6439_p8 = scmp.lt.s32.totalorder %s6893_s12, 4  ;;  %p49_p9 = scmp.eq.s32.totalorder %s48_s21, 0 }
  0xce   : > { %p7192_p10 = por %p250_p6, %p64_p5  ;;  %s7197_s25 = sand.u32 1, %s6873_s29  }
  0xcf   : > { %s6366_s23 = smul.u32 24, %s6885_s10  ;;  %p7207_p7 = pnand %p6439_p8, %p7172_p12 }
  0xd0   : > { %s8108_s18 = scalar_select %p7192_p10, 1, 0 }
  0xd1   : > { %s7201_s14 = scalar_select %p49_p9, %s6873_s29, %s51_s22  }
  0xd2   : > { %s6365_s24 = smul.u32 192, %s7197_s25  ;;  %s8110_s0 = sld [smem:[#allocation29_spill]] }
  0xd3   : > { %s6367_s2 = smul.u32 48, %s6889_s11  ;;  %s343_s26 = scalar_lea.sflag [#allocation4], %s7197_s25 }
  0xd4   : > { %s346_s16 = scalar_lea.vmem [#allocation3], %s6365_s24  ;;  %p6717_p3 = pneg %p7207_p7 }
  0xd5   : > { %s353_s15 = sadd.s32 %s6367_s2, %s6366_s23  ;;  %s356_s30 = sshll.u32 %s346_s16, 4  ;;  %s7211_s30 = int_to_ptr.vmem [resolvable:$true] %s356_s30 }
  0xd6   : > { %s4786_s21 = sshll.u32 %s353_s15, 7 }
  0xd8   : > { %s7216_s22 = scalar_lea.hbm %s8110_s0, %s4786_s21  ;;  %s6720_s23 = scalar_lea.hbm %s8110_s0, 12288 }
  0xd9   : > { %s6715_s6 = scalar_lea.hbm %s7216_s22, 3072  ;;  %p6721_p12 = scmp.lt.u32.totalorder %s7216_s22, %s8110_s0 }
  0xda   : > { %p6716_p1 = scmp.ne.s32.totalorder %s7216_s22, %s6715_s6  ;;  %p6722_p13 = scmp.lt.u32.totalorder %s6720_s23, %s6715_s6 }
  0xdb   : > { %p6724_p6 = scmp.lt.u32.totalorder %s6715_s6, %s7216_s22 }
  0xdc   : > { %p6718_p11 = pnand %p6717_p3, %p6716_p1  ;;  %p6723_p0 = por %p6722_p13, %p6721_p12 }
  0xde   : > { %p6719_p5 = pneg %p6718_p11  ;;  %p6725_p8 = por %p6724_p6, %p6723_p0 }
  0xe0   : > { %p6726_p9 = pnand %p6725_p8, %p6719_p5 }
  0xe2   : > { %6729 = shalt.err (!%p6726_p9)
}
  0xe3   : > { %s6730_s15 = scalar_lea.vmem %s7211_s30, 3072  ;;  %s6903_s16 = smov [#allocation3]  }
  0xe4   : > { %p6731_p1 = scmp.ne.s32.totalorder %s7211_s30, %s6730_s15  ;;  %s6735_s21 = sshll.u32 %s6903_s16, 4  ;;  %s6736_s21 = int_to_ptr.vmem [resolvable:$false] %s6735_s21 }
  0xe5   : > { %s6737_s2 = scalar_lea.vmem %s6736_s21, 6144  ;;  %p6738_p4 = scmp.lt.s32.totalorder %s7211_s30, %s6736_s21 }
  0xe6   : > { %p6733_p11 = pnand %p6731_p1, %p6717_p3  ;;  %p6739_p12 = scmp.lt.s32.totalorder %s6737_s2, %s6730_s15 }
  0xe8   : > { %p6734_p10 = pneg %p6733_p11  ;;  %p6740_p13 = por %p6739_p12, %p6738_p4 }
  0xea   : > { %p6741_p0 = pnand %p6740_p13, %p6734_p10 }
  0xec   : > { %6744 = shalt.err (!%p6741_p0)
}
  0xed   : > { %s8111_s6 = smov 8   ;;  %s366_s24 = sand.u32 1, %s6893_s12  }
  0xee   : > { %6425 = dma.hbm_to_vmem [thread:$0]  (!%p7207_p7), %s7216_s22, 3072, %s7211_s30, %s343_s26, %s8100_s9, %s8100_s9, %s8111_s6  }
  0xef   : > { %s6368_s23 = smul.u32 48, %s7197_s25  ;;  %s7260_s30 = scalar_lea.sflag [#allocation7], %s366_s24 }
  0xf0   : > { %s6369_s4 = smul.u32 6, %s6885_s10 }
  0xf1   : > { %s6370_s5 = smul.u32 12, %s6889_s11  ;;  %s370_s15 = scalar_lea.vmem [#allocation6], %s6368_s23 }
  0xf2   : > { %s379_s16 = sshll.u32 %s370_s15, 4  ;;  %s6750_s23 = scalar_lea.hbm %s8064_s1, 3072  ;;  %s7253_s16 = int_to_ptr.vmem [resolvable:$true] %s379_s16 }
  0xf3   : > { %s376_s21 = sadd.s32 %s6370_s5, %s6369_s4 }
  0xf4   : > { %s4787_s2 = sshll.u32 %s376_s21, 7 }
  0xf5   : > { %s7258_s17 = scalar_lea.hbm %s8064_s1, %s4787_s2 }
  0xf6   : > { %s6745_s25 = scalar_lea.hbm %s7258_s17, 768  ;;  %p6751_p6 = scmp.lt.u32.totalorder %s7258_s17, %s8064_s1 }
  0xf7   : > { %p6746_p4 = scmp.ne.s32.totalorder %s7258_s17, %s6745_s25  ;;  %p6752_p8 = scmp.lt.u32.totalorder %s6750_s23, %s6745_s25 }
  0xf8   : > { %p6754_p1 = scmp.lt.u32.totalorder %s6745_s25, %s7258_s17 }
  0xf9   : > { %p6748_p10 = pnand %p6746_p4, %p6717_p3  ;;  %p6753_p9 = por %p6752_p8, %p6751_p6 }
  0xfb   : > { %p6749_p5 = pneg %p6748_p10  ;;  %p6755_p11 = por %p6754_p1, %p6753_p9 }
  0xfd   : > { %p6756_p12 = pnand %p6755_p11, %p6749_p5 }
  0xff   : > { %6759 = shalt.err (!%p6756_p12)
}
 0x100   : > { %s6760_s7 = scalar_lea.vmem %s7253_s16, 768  ;;  %s6904_s24 = smov [#allocation6]  }
 0x101   : > { %p6761_p13 = scmp.ne.s32.totalorder %s7253_s16, %s6760_s7  ;;  %s6765_s5 = sshll.u32 %s6904_s24, 4  ;;  %s6766_s5 = int_to_ptr.vmem [resolvable:$false] %s6765_s5 }
 0x102   : > { %s6767_s15 = scalar_lea.vmem %s6766_s5, 1536  ;;  %p6768_p10 = scmp.lt.s32.totalorder %s7253_s16, %s6766_s5 }
 0x103   : > { %p6763_p0 = pnand %p6761_p13, %p6717_p3  ;;  %p6769_p6 = scmp.lt.s32.totalorder %s6767_s15, %s6760_s7 }
 0x105   : > { %p6764_p4 = pneg %p6763_p0  ;;  %p6770_p8 = por %p6769_p6, %p6768_p10 }
 0x107   : > { %p6771_p9 = pnand %p6770_p8, %p6764_p4 }
 0x109   : > { %6774 = shalt.err (!%p6771_p9)
}
 0x10a   : > { %6428 = dma.hbm_to_vmem [thread:$0]  (!%p7207_p7), %s7258_s17, 768, %s7253_s16, %s7260_s30, %s8100_s9, %s8100_s9, %s8111_s6  }
 0x10b   : > { %s8112_s21 = sld [smem:[#allocation27_spill]] }
 0x111   : > { %p8113_p3 = scmp.ne.s32.totalorder %s8112_s21, 0 }
 0x112   : > { %s7292_s2 = sand.u32 (!%p8113_p3), 1, %s6869_s28  }
 0x113   : > { %391 = sbr.rel (%p8113_p3) target bundleno = 1323 (0x52b), region = 52  ;;  %s394_s22 = scalar_lea.sflag (!%p8113_p3), [#allocation4], %s7292_s2 }
 0x114   : > { %s6371_s25 = smul.u32 (!%p8113_p3), 192, %s7292_s2 }
 0x116   : > { %s7296_s26 = scalar_lea.vmem (!%p8113_p3), [#allocation3], %s6371_s25 }
 0x11a   : > { %6836 = dma.done.wait (%p7181_p2), %s394_s22, 3072  }
 0x11b   : > { %6838 = vsyncadd (%p7181_p2), %s394_s22, 4294964224  ;;  %s402_s3 = sand.u32 1, %s7000_s13   ;;  %s6372_s9 = smul.u32 48, %s7292_s2 }
 0x11c   : > { %s403_s17 = scalar_lea.sflag [#allocation7], %s402_s3 }
 0x11d   : > { %s7304_s6 = scalar_lea.vmem [#allocation6], %s6372_s9 }
 0x11e   : > { %6840 = dma.done.wait (%p7181_p2), %s403_s17, 768  }
 0x11f   : > { %6842 = vsyncadd (%p7181_p2), %s403_s17, 4294966528  ;;  %p8114_p7 = scmp.eq.s32.totalorder %s7000_s13, 0 }
 0x121   : > { %6844 = dma.done.wait (%p8114_p7), [#allocation7], 2048   ;;  %p8115_p5 = pmov %p8114_p7 }
 0x123   : > { %6846 = vsyncadd (%p8115_p5), [#allocation7], 4294965248  ;;  %p8116_p1 = pmov %p8115_p5 }
 0x125   : > { %6848 = dma.done.wait (%p8116_p1), [#allocation10], 18448   ;;  %p8117_p11 = pmov %p8116_p1 }
 0x126   : > { %p8118_p12 = pmov %p8116_p1 }
 0x127   : > { %6850 = vsyncadd (%p8117_p11), [#allocation10], 4294948848 }
 0x128   : > { %6852 = dma.done.wait (%p8118_p12), [#allocation13], 2064   ;;  %p8119_p13 = pmov %p8116_p1 }
 0x129   : > { %p8120_p2 = pmov %p8116_p1 }
 0x12a   : > { %6854 = vsyncadd (%p8119_p13), [#allocation13], 4294965232 }
 0x12b   : > { %6856 = dma.done.wait (%p8120_p2), [#allocation16], 16   ;;  %p8121_p0 = pmov %p8116_p1 }
 0x12c   : > { %s4795_s8 = sshll.u32 %s7292_s2, 7  ;;  %v470_v0 = vlaneseq  ;;  %v6905_v1 = vmov 1983009808   ;;  %v859_v5 = vld [vmem:[#allocation8] sm:$0xff]  ;;  %v860_v6 = vld [vmem:[#allocation8 + $0x8] sm:$0xff]  ;;  %v861_v7 = vld [vmem:[#allocation8 + $0x10] sm:$0xff] }
 0x12d   : > { %6858 = vsyncadd (%p8121_p0), [#allocation16], 4294967280  ;;  %v533_v2 = vunpack.c.l.s4 %v6905_v1  ;;  %v7329_v8 = vpack.c.bf16 %v860_v6, %v859_v5  ;;  %v862_v9 = vld [vmem:[#allocation8 + $0x18] sm:$0xff]  ;;  %v863_v11 = vld [vmem:[#allocation8 + $0x20] sm:$0xff]  ;;  %vm6907_vm0 = vmmov 0   ;;  %s7700_s13 = scalar_lea.vmem [#allocation17], %s4795_s8 }
 0x12e   : > { %v7327_v3 = vshrl.u32 %v470_v0, 7  ;;  %v7331_v10 = vpack.c.bf16 %v862_v9, %v861_v7  ;;  %v864_v12 = vld [vmem:[#allocation8 + $0x28] sm:$0xff]  ;;  %v483_v15 = vld [vmem:[%s7296_s26] sm:$0xff]  ;;  %v865_v17 = vld [vmem:[#allocation8 + $0x30] sm:$0xff]  ;;  %s8122_s16 = sld [smem:[#allocation25_spill]] }
 0x12f   : > { %v534_v4 = vunpack.c.0.s8 %v533_v2  ;;  %5862 = vmatprep.subr.bf16.mxu0 %v7329_v8  ;;  %v7339_v14 = vpack.c.bf16 %v864_v12, %v863_v11  ;;  %v484_v16 = vld [vmem:[%s7296_s26 + $0x8] sm:$0xff]  ;;  %v866_v18 = vld [vmem:[#allocation8 + $0x38] sm:$0xff]  ;;  %v531_v19 = vcombine.high %v483_v15, %v483_v15  ;;  %v487_v27 = vld [vmem:[%s7296_s26 + $0x20] sm:$0xff] }
 0x130   : > { %5864 = vmatpush3.bf16.msra.mxu0 %v7329_v8  ;;  %v548_v21 = vcombine.high %v484_v16, %v484_v16  ;;  %v486_v22 = vld [vmem:[%s7296_s26 + $0x18] sm:$0xff]  ;;  %v7350_v28 = vpack.c.bf16 %v866_v18, %v865_v17  ;;  %v867_v29 = vld [vmem:[#allocation8 + $0x40] sm:$0xff]  ;;  %v868_v30 = vld [vmem:[#allocation8 + $0x48] sm:$0xff]  ;;  %v589_v35 = vcombine.high %v487_v27, %v487_v27  ;;  %vm474_vm2 = vcmp.ge.s32.totalorder %v7327_v3, 1 }
 0x131   : > { %v7334_v13 = vsub.s32 %v534_v4, %v7327_v3  ;;  %5866 = vmatprep.subr.bf16.mxu0 %v7331_v10  ;;  %v572_v25 = vcombine.high %v486_v22, %v486_v22  ;;  %v489_v40 = vld [vmem:[%s7296_s26 + $0x30] sm:$0xff]  ;;  %v7359_v41 = vpack.c.bf16 %v868_v30, %v867_v29  ;;  %v870_v44 = vld [vmem:[#allocation8 + $0x58] sm:$0xff]  ;;  %v492_v51 = vld [vmem:[%s7296_s26 + $0x48] sm:$0xff] }
 0x132   : > { %v4796_v42 = vld.sshfl [vmem:[%s7296_s26 + $0x10] sm:$0x3 pattern:$0x76325410]  ;;  %v490_v48 = vld [vmem:[%s7296_s26 + $0x38] sm:$0xff]  ;;  %v613_v50 = vcombine.high %v489_v40, %v489_v40  ;;  %v871_v52 = vld [vmem:[#allocation8 + $0x60] sm:$0xff]  ;;  %v654_v2 = vcombine.high %v492_v51, %v492_v51 }
 0x133   : > { %v538_v20 = vrot.slane %v483_v15, %v7334_v13  ;;  %v545_v23 = vrot.slane %v531_v19, %v7334_v13  ;;  %v579_v26 = vrot.slane %v486_v22, %v7334_v13  ;;  %v555_v33 = vrot.slane %v484_v16, %v7334_v13  ;;  %v869_v43 = vld [vmem:[#allocation8 + $0x50] sm:$0xff]  ;;  %v872_v53 = vld [vmem:[#allocation8 + $0x68] sm:$0xff]  ;;  %v874_v6 = vld [vmem:[#allocation8 + $0x78] sm:$0xff] }
 0x134   : > { %5868 = vmatpush3.bf16.msra.mxu0 %v7331_v10  ;;  %v562_v34 = vrot.slane %v548_v21, %v7334_v13  ;;  %v586_v38 = vrot.slane %v572_v25, %v7334_v13  ;;  %v596_v49 = vrot.slane %v487_v27, %v7334_v13  ;;  %v603_v57 = vrot.slane %v589_v35, %v7334_v13  ;;  %v493_v1 = vld [vmem:[%s7296_s26 + $0x50] sm:$0xff]  ;;  %v4797_v19 = vld.sshfl [vmem:[%s7296_s26 + $0x28] sm:$0x3 pattern:$0x76325410]  ;;  %p4808_p4 = scmp.ne.s32.totalorder %s8122_s16, 0 }
 0x135   : > { %v546_v24 = vcombine.high %v538_v20, %v538_v20  ;;  %5870 = vmatprep.subr.bf16.mxu0 %v7339_v14  ;;  %v547_v31 = vcombine.high %v545_v23, %v545_v23  ;;  %v587_v39 = vcombine.high %v579_v26, %v579_v26  ;;  %v563_v46 = vcombine.high %v555_v33, %v555_v33  ;;  %v873_v5 = vld [vmem:[#allocation8 + $0x70] sm:$0xff]  ;;  %v4798_v27 = vld.sshfl [vmem:[%s7296_s26 + $0x40] sm:$0x3 pattern:$0x76325410] }
 0x136   : > { %v564_v47 = vcombine.high %v562_v34, %v562_v34  ;;  %v916_v55 = vcombine.low %v4796_v42, %v579_v26  ;;  %v7369_v58 = vpack.c.bf16 %v870_v44, %v869_v43  ;;  %v588_v59 = vcombine.high %v586_v38, %v586_v38 }
 0x137   : > { %v882_v32 = vcombine.low %v538_v20, %v546_v24  ;;  %v883_v36 = vcombine.low %v545_v23, %v547_v31  ;;  %v917_v56 = vcombine.low %v587_v39, %v586_v38  ;;  %v620_v60 = vrot.slane %v489_v40, %v7334_v13 }
 0x138   : > { %5872 = vmatpush3.bf16.msra.mxu0 %v7339_v14  ;;  %v630_v61 = vcombine.high %v490_v48, %v490_v48  ;;  %v899_v62 = vcombine.low %v555_v33, %v563_v46  ;;  %v900_v63 = vcombine.low %v562_v34, %v564_v47  ;;  %v627_v0 = vrot.slane %v613_v50, %v7334_v13  ;;  %v495_v33 = vld [vmem:[%s7296_s26 + $0x60] sm:$0xff]  ;;  %v496_v34 = vld [vmem:[%s7296_s26 + $0x68] sm:$0xff] }
 0x139   : > { %v890_v37 = vrot.slane %v882_v32, %v7334_v13  ;;  %5874 = vmatprep.subr.bf16.mxu0 %v7350_v28  ;;  %v897_v45 = vrot.slane %v883_v36, %v7334_v13  ;;  %v7374_v4 = vpack.c.bf16 %v872_v53, %v871_v52  ;;  %v604_v7 = vcombine.high %v596_v49, %v596_v49 }
 0x13a   : > { %v637_v9 = vrot.slane %v490_v48, %v7334_v13  ;;  %v644_v11 = vrot.slane %v630_v61, %v7334_v13  ;;  %v924_v12 = vrot.slane %v916_v55, %v7334_v13  ;;  %v931_v15 = vrot.slane %v917_v56, %v7334_v13  ;;  %v498_v48 = vld [vmem:[%s7296_s26 + $0x78] sm:$0xff] }
 0x13b   : > { %v898_v54 = vcombine.low %v890_v37, %v897_v45  ;;  %v605_v16 = vcombine.high %v603_v57, %v603_v57  ;;  %v661_v17 = vrot.slane %v492_v51, %v7334_v13  ;;  %v933_v18 = vcombine.low %v588_v59, %v596_v49  ;;  %v4799_v61 = vld.sshfl [vmem:[%s7296_s26 + $0x58] sm:$0x3 pattern:$0x76325410] }
 0x13c   : > { %5876 = vmatpush3.bf16.msra.mxu0 %v7350_v28  ;;  %v628_v20 = vcombine.high %v620_v60, %v620_v60  ;;  %v668_v21 = vrot.slane %v654_v2, %v7334_v13  ;;  %v671_v22 = vcombine.high %v493_v1, %v493_v1  ;;  %v7385_v23 = vpack.c.bf16 %v874_v6, %v873_v5  ;;  %v499_v5 = vld [vmem:[%s7296_s26 + $0x80] sm:$0xff] }
 0x13d   : > { %5878 = vmatprep.subr.bf16.mxu0 %v7359_v41  ;;  %5227 = vmatprep.mubr.f32.mxu0 %v898_v54  ;;  %v907_v24 = vrot.slane %v899_v62, %v7334_v13  ;;  %v914_v25 = vrot.slane %v900_v63, %v7334_v13  ;;  %v629_v26 = vcombine.high %v627_v0, %v627_v0 }
 0x13e   : > { %v934_v29 = vcombine.low %v604_v7, %v603_v57  ;;  %v645_v30 = vcombine.high %v637_v9, %v637_v9  ;;  %v646_v31 = vcombine.high %v644_v11, %v644_v11  ;;  %v678_v32 = vrot.slane %v493_v1, %v7334_v13 }
 0x13f   : > { %v932_v35 = vcombine.low %v924_v12, %v931_v15  ;;  %v950_v36 = vcombine.low %v605_v16, %v4797_v19  ;;  %v669_v37 = vcombine.high %v661_v17, %v661_v17  ;;  %v685_v38 = vrot.slane %v671_v22, %v7334_v13 }
 0x140   : > { %5880 = vmatpush3.bf16.msra.mxu0 %v7359_v41  ;;  %v941_v39 = vrot.slane %v933_v18, %v7334_v13  ;;  %v951_v40 = vcombine.low %v620_v60, %v628_v20  ;;  %v985_v42 = vcombine.low %v4798_v27, %v661_v17  ;;  %v670_v43 = vcombine.high %v668_v21, %v668_v21 }
 0x141   : > { %5882 = vmatprep.subr.bf16.mxu0 %v7369_v58  ;;  %v915_v44 = vcombine.low %v907_v24, %v914_v25  ;;  %v967_v45 = vcombine.low %v627_v0, %v629_v26  ;;  %v695_v46 = vcombine.high %v495_v33, %v495_v33  ;;  %v712_v47 = vcombine.high %v496_v34, %v496_v34  ;;  %v501_v24 = vld [vmem:[%s7296_s26 + $0x90] sm:$0xff] }
 0x142   : > { %v948_v49 = vrot.slane %v934_v29, %v7334_v13  ;;  %v968_v50 = vcombine.low %v637_v9, %v645_v30  ;;  %v984_v51 = vcombine.low %v644_v11, %v646_v31  ;;  %v686_v52 = vcombine.high %v678_v32, %v678_v32 }
 0x143   : > { %v958_v53 = vrot.slane %v950_v36, %v7334_v13  ;;  %v1001_v54 = vcombine.low %v669_v37, %v668_v21  ;;  %v687_v55 = vcombine.high %v685_v38, %v685_v38  ;;  %v702_v56 = vrot.slane %v495_v33, %v7334_v13  ;;  %v4800_v37 = vld.sshfl [vmem:[%s7296_s26 + $0x70] sm:$0x3 pattern:$0x76325410] }
 0x144   : > { %5884 = vmatpush3.bf16.msra.mxu0 %v7369_v58  ;;  %v965_v57 = vrot.slane %v951_v40, %v7334_v13  ;;  %v999_v59 = vrot.slane %v985_v42, %v7334_v13  ;;  %v1002_v60 = vcombine.low %v670_v43, %v678_v32  ;;  %v736_v62 = vcombine.high %v498_v48, %v498_v48 }
 0x145   : > { %5886 = vmatprep.subr.bf16.mxu0 %v7374_v4  ;;  %v975_v63 = vrot.slane %v967_v45, %v7334_v13  ;;  %v709_v0 = vrot.slane %v695_v46, %v7334_v13  ;;  %v719_v1 = vrot.slane %v496_v34, %v7334_v13  ;;  %v726_v2 = vrot.slane %v712_v47, %v7334_v13 }
 0x146   : > { %v982_v6 = vrot.slane %v968_v50, %v7334_v13  ;;  %v992_v7 = vrot.slane %v984_v51, %v7334_v13  ;;  %v1018_v9 = vcombine.low %v686_v52, %v685_v38  ;;  %v743_v11 = vrot.slane %v498_v48, %v7334_v13  ;;  %v502_v38 = vld [vmem:[%s7296_s26 + $0x98] sm:$0xff]  ;;  %v504_v48 = vld [vmem:[%s7296_s26 + $0xa8] sm:$0xff] }
 0x147   : > { %v949_v12 = vcombine.low %v941_v39, %v948_v49  ;;  %v1009_v15 = vrot.slane %v1001_v54, %v7334_v13  ;;  %v1019_v16 = vcombine.low %v687_v55, %v4799_v61  ;;  %v710_v17 = vcombine.high %v702_v56, %v702_v56 }
 0x148   : > { %5888 = vmatpush3.bf16.msra.mxu0 %v7374_v4  ;;  %v6906_v18 = vmov 0.0|0.0   ;;  %v1016_v19 = vrot.slane %v1002_v60, %v7334_v13  ;;  %v750_v20 = vrot.slane %v736_v62, %v7334_v13  ;;  %v753_v21 = vcombine.high %v499_v5, %v499_v5 }
 0x149   : > { %5890 = vmatprep.subr.bf16.mxu0 %v7385_v23  ;;  %v760_v22 = vrot.slane %v499_v5, %v7334_v13  ;;  %v966_v25 = vcombine.low %v958_v53, %v965_v57  ;;  %v711_v26 = vcombine.high %v709_v0, %v709_v0  ;;  %v727_v27 = vcombine.high %v719_v1, %v719_v1 }
 0x14a   : > { %v728_v29 = vcombine.high %v726_v2, %v726_v2  ;;  %v983_v30 = vcombine.low %v975_v63, %v982_v6  ;;  %v1000_v31 = vcombine.low %v992_v7, %v999_v59  ;;  %v1026_v32 = vrot.slane %v1018_v9, %v7334_v13  ;;  %v2110_v7 = vld [vmem:[%s7304_s6] sm:$0xff] }
 0x14b   : > { %v751_v33 = vcombine.high %v743_v11, %v743_v11  ;;  %v1033_v34 = vrot.slane %v1019_v16, %v7334_v13  ;;  %v1035_v36 = vcombine.low %v702_v56, %v710_v17  ;;  %v777_v39 = vcombine.high %v501_v24, %v501_v24 }
 0x14c   : > { %5892 = vmatpush3.bf16.msra.mxu0 %v7385_v23  ;;  %v1017_v40 = vcombine.low %v1009_v15, %v1016_v19  ;;  %v752_v42 = vcombine.high %v750_v20, %v750_v20  ;;  %v767_v43 = vrot.slane %v753_v21, %v7334_v13  ;;  %v1036_v45 = vcombine.low %v709_v0, %v711_v26  ;;  %v505_v0 = vld [vmem:[%s7296_s26 + $0xb0] sm:$0xff] }
 0x14d   : > { %5893 = vmatprep.subr.bf16.mxu0 %v6906_v18  ;;  %v1052_v46 = vcombine.low %v719_v1, %v727_v27  ;;  %v1053_v47 = vcombine.low %v726_v2, %v728_v29  ;;  %v1070_v49 = vcombine.low %v751_v33, %v750_v20  ;;  %v791_v50 = vrot.slane %v777_v39, %v7334_v13 }
 0x14e   : > { %v794_v51 = vcombine.high %v502_v38, %v502_v38  ;;  %v1034_v52 = vcombine.low %v1026_v32, %v1033_v34  ;;  %v1043_v53 = vrot.slane %v1035_v36, %v7334_v13  ;;  %v801_v54 = vrot.slane %v502_v38, %v7334_v13 }
 0x14f   : > { %5228 = vmatmul.mubr.f32.vlgmr.msra.gmra.mrb[0].mxu0 %v915_v44  ;;  %v768_v44 = vcombine.high %v760_v22, %v760_v22  ;;  %v1086_v55 = vcombine.low %v752_v42, %v760_v22  ;;  %v769_v57 = vcombine.high %v767_v43, %v767_v43  ;;  %v818_v59 = vcombine.high %v504_v48, %v504_v48 }
 0x150   : > { %5895 = vmatpush3.bf16.msra.mxu0 %v7329_v8  ;;  %5230 = vmatprep.mubr.f32.mxu0 %v932_v35  ;;  %v784_v8 = vrot.slane %v501_v24, %v7334_v13  ;;  %v1069_v35 = vcombine.low %v4800_v37, %v743_v11  ;;  %v1050_v60 = vrot.slane %v1036_v45, %v7334_v13 }
 0x151   : > { %5896 = vmatprep.subr.bf16.mxu0 %v6906_v18  ;;  %v1087_v56 = vcombine.low %v768_v44, %v767_v43  ;;  %v1060_v61 = vrot.slane %v1052_v46, %v7334_v13  ;;  %v1067_v62 = vrot.slane %v1053_v47, %v7334_v13  ;;  %v1084_v2 = vrot.slane %v1070_v49, %v7334_v13 }
 0x152   : > { %v792_v63 = vcombine.high %v784_v8, %v784_v8  ;;  %v1077_v1 = vrot.slane %v1069_v35, %v7334_v13  ;;  %v793_v5 = vcombine.high %v791_v50, %v791_v50  ;;  %v808_v6 = vrot.slane %v794_v51, %v7334_v13  ;;  %v4803_v35 = vld.sshfl [vmem:[%s7296_s26 + $0xb8] sm:$0x3 pattern:$0x76325410] }
 0x153   : > { %5231 = vmatmul.mubr.f32.gmra.mrb[2].mxu0 %v949_v12  ;;  %v809_v9 = vcombine.high %v801_v54, %v801_v54  ;;  %v825_v11 = vrot.slane %v504_v48, %v7334_v13  ;;  %v832_v12 = vrot.slane %v818_v59, %v7334_v13  ;;  %v1094_v15 = vrot.slane %v1086_v55, %v7334_v13 }
 0x154   : > { %5898 = vmatpush3.bf16.msra.mxu0 %v7331_v10  ;;  %5233 = vmatprep.mubr.f32.mxu0 %v966_v25  ;;  %v4801_v10 = vld.sshfl [vmem:[%s7296_s26 + $0x88] sm:$0x3 pattern:$0x76325410]  ;;  %v1101_v16 = vrot.slane %v1087_v56, %v7334_v13  ;;  %v835_v19 = vcombine.high %v505_v0, %v505_v0  ;;  %v1051_v20 = vcombine.low %v1043_v53, %v1050_v60 }
 0x155   : > { %5899 = vmatprep.subr.bf16.mxu0 %v6906_v18  ;;  %v1103_v17 = vcombine.low %v769_v57, %v4801_v10  ;;  %v1068_v21 = vcombine.low %v1060_v61, %v1067_v62  ;;  %v1104_v22 = vcombine.low %v784_v8, %v792_v63  ;;  %v1120_v24 = vcombine.low %v791_v50, %v793_v5  ;;  %v4802_v25 = vld.sshfl [vmem:[%s7296_s26 + $0xa0] sm:$0x3 pattern:$0x76325410]  ;;  %v2113_v57 = vld [vmem:[%s7304_s6 + $0x18] sm:$0xff] }
 0x156   : > { %v810_v26 = vcombine.high %v808_v6, %v808_v6  ;;  %v842_v27 = vrot.slane %v505_v0, %v7334_v13  ;;  %v849_v29 = vrot.slane %v835_v19, %v7334_v13  ;;  %v833_v32 = vcombine.high %v825_v11, %v825_v11 }
 0x157   : > { %5234 = vmatmul.mubr.f32.gmra.mrb[4].mxu0 %v983_v30  ;;  %v2111_v30 = vld [vmem:[%s7304_s6 + $0x8] sm:$0xff]  ;;  %v834_v33 = vcombine.high %v832_v12, %v832_v12  ;;  %v1085_v34 = vcombine.low %v1077_v1, %v1084_v2  ;;  %v1102_v36 = vcombine.low %v1094_v15, %v1101_v16  ;;  %v1111_v37 = vrot.slane %v1103_v17, %v7334_v13 }
 0x158   : > { %5901 = vmatpush3.bf16.msra.mxu0 %v7339_v14  ;;  %5236 = vmatprep.mubr.f32.mxu0 %v1000_v31  ;;  %v2122_v14 = vcombine.high %v2110_v7, %v2110_v7  ;;  %v1121_v31 = vcombine.low %v801_v54, %v809_v9  ;;  %v2129_v38 = vrot.slane %v2110_v7, %v7334_v13  ;;  %v2114_v9 = vld [vmem:[%s7304_s6 + $0x20] sm:$0xff] }
 0x159   : > { %5902 = vmatprep.subr.bf16.mxu0 %v6906_v18  ;;  %v1118_v39 = vrot.slane %v1104_v22, %v7334_v13  ;;  %v2139_v43 = vcombine.high %v2111_v30, %v2111_v30  ;;  %v1137_v44 = vcombine.low %v808_v6, %v810_v26  ;;  %v850_v45 = vcombine.high %v842_v27, %v842_v27 }
 0x15a   : > { %v2136_v42 = vrot.slane %v2122_v14, %v7334_v13  ;;  %v851_v46 = vcombine.high %v849_v29, %v849_v29  ;;  %v1135_v47 = vrot.slane %v1121_v31, %v7334_v13  ;;  %v1154_v8 = vcombine.low %v833_v32, %v832_v12 }
 0x15b   : > { %5237 = vmatmul.mubr.f32.gmra.mrb[6].mxu0 %v1017_v40  ;;  %v1138_v40 = vcombine.low %v4802_v25, %v825_v11  ;;  %v1155_v48 = vcombine.low %v834_v33, %v842_v27  ;;  %v2137_v49 = vcombine.high %v2129_v38, %v2129_v38  ;;  %v1119_v50 = vcombine.low %v1111_v37, %v1118_v39 }
 0x15c   : > { %5239 = vmatprep.mubr.f32.mxu0 %v1034_v52  ;;  %5904 = vmatpush3.bf16.msra.mxu0 %v7350_v28  ;;  %v1128_v28 = vrot.slane %v1120_v24, %v7334_v13  ;;  %v2138_v51 = vcombine.high %v2136_v42, %v2136_v42  ;;  %v2146_v52 = vrot.slane %v2111_v30, %v7334_v13  ;;  %v6908_v31 = vmov 0.0  }
 0x15d   : > { %5905 = vmatprep.subr.bf16.mxu0 %v6906_v18  ;;  %v2153_v53 = vrot.slane %v2139_v43, %v7334_v13  ;;  %v1145_v54 = vrot.slane %v1137_v44, %v7334_v13  ;;  %v1171_v55 = vcombine.low %v850_v45, %v849_v29  ;;  %v1172_v56 = vcombine.low %v851_v46, %v4803_v35  ;;  %v7500_v45 = vld [vmem:[#allocation9] ss:$0 sm:$0xff] }
 0x15e   : > { %v1136_v59 = vcombine.low %v1128_v28, %v1135_v47  ;;  %v1162_v60 = vrot.slane %v1154_v8, %v7334_v13  ;;  %v1169_v61 = vrot.slane %v1155_v48, %v7334_v13  ;;  %v2227_v62 = vcombine.low %v2129_v38, %v2137_v49 }
 0x15f   : > { %5240 = vmatmul.mubr.f32.gmra.mrb[8].mxu0 %v1051_v20  ;;  %v2228_v10 = vcombine.low %v2136_v42, %v2138_v51  ;;  %v2154_v63 = vcombine.high %v2146_v52, %v2146_v52  ;;  %v2155_v0 = vcombine.high %v2153_v53, %v2153_v53  ;;  %v2163_v1 = vcombine.high %v2113_v57, %v2113_v57  ;;  %v4805_v20 = vld.sshfl [vmem:[%s7304_s6 + $0x10] sm:$0x3 pattern:$0x76325410] }
 0x160   : > { %5242 = vmatprep.mubr.f32.mxu0 %v1068_v21  ;;  %5907 = vmatpush3.bf16.msra.mxu0 %v7359_v41  ;;  %v1152_v41 = vrot.slane %v1138_v40, %v7334_v13  ;;  %v1179_v5 = vrot.slane %v1171_v55, %v7334_v13  ;;  %v2170_v6 = vrot.slane %v2113_v57, %v7334_v13  ;;  %v4806_v42 = vld.sshfl [vmem:[%s7304_s6 + $0x28] sm:$0x3 pattern:$0x76325410]  ;;  %v7505_v49 = vadd.s32 16, %v7327_v3 }
 0x161   : > { %5908 = vmatprep.subr.bf16.mxu0 %v6906_v18  ;;  %v1170_v7 = vcombine.low %v1162_v60, %v1169_v61  ;;  %v2235_v11 = vrot.slane %v2227_v62, %v7334_v13  ;;  %v2242_v12 = vrot.slane %v2228_v10, %v7334_v13  ;;  %v2244_v15 = vcombine.low %v2146_v52, %v2154_v63 }
 0x162   : > { %v1153_v2 = vcombine.low %v1145_v54, %v1152_v41  ;;  %v2245_v16 = vcombine.low %v2153_v53, %v2155_v0  ;;  %v2177_v17 = vrot.slane %v2163_v1, %v7334_v13  ;;  %v2178_v21 = vcombine.high %v2170_v6, %v2170_v6 }
 0x163   : > { %5243 = vmatmul.mubr.f32.gmra.mrb[10].mxu0 %v1085_v34  ;;  %v2180_v22 = vcombine.high %v2114_v9, %v2114_v9  ;;  %v2187_v14 = vrot.slane %v2114_v9, %v7334_v13  ;;  %v2261_v25 = vcombine.low %v4805_v20, %v2170_v6  ;;  %vm479_vm1 = vcmp.le.s32.totalorder %v7505_v49, 16 }
 0x164   : > { %5245 = vmatprep.mubr.f32.mxu0 %v1102_v36  ;;  %5910 = vmatpush3.bf16.msra.mxu0 %v7369_v58  ;;  %v1186_v58 = vrot.slane %v1172_v56, %v7334_v13  ;;  %v2259_v24 = vrot.slane %v2245_v16, %v7334_v13  ;;  %v2262_v26 = vcombine.low %v2178_v21, %v2177_v17  ;;  %v6909_v3 = vmov (!%p4808_p4), 0.0  }
 0x165   : > { %5911 = vmatprep.subr.bf16.mxu0 %v6906_v18  ;;  %v2179_v27 = vcombine.high %v2177_v17, %v2177_v17  ;;  %v2194_v29 = vrot.slane %v2180_v22, %v7334_v13  ;;  %v2195_v30 = vcombine.high %v2187_v14, %v2187_v14  ;;  %v2269_v32 = vrot.slane %v2261_v25, %v7334_v13 }
 0x166   : > { %v1187_v19 = vcombine.low %v1179_v5, %v1186_v58  ;;  %v2276_v33 = vrot.slane %v2262_v26, %v7334_v13 }
 0x167   : > { %5246 = vmatmul.mubr.f32.gmra.mrb[12].mxu0 %v1119_v50  ;;  %v2278_v34 = vcombine.low %v2179_v27, %v2187_v14  ;;  %v2279_v36 = vcombine.low %v2195_v30, %v2194_v29  ;;  %v2196_v40 = vcombine.high %v2194_v29, %v2194_v29 }
 0x168   : > { %5248 = vmatprep.mubr.f32.mxu0 %v1136_v59  ;;  %5913 = vmatpush3.bf16.msra.mxu0 %v7374_v4  ;;  %v2243_v4 = vcombine.low %v2235_v11, %v2242_v12  ;;  %v2277_v37 = vcombine.low %v2269_v32, %v2276_v33 }
 0x169   : > { %5914 = vmatprep.subr.bf16.mxu0 %v6906_v18  ;;  %v2252_v18 = vrot.slane %v2244_v15, %v7334_v13  ;;  %v2286_v38 = vrot.slane %v2278_v34, %v7334_v13  ;;  %v2293_v39 = vrot.slane %v2279_v36, %v7334_v13  ;;  %v2295_v28 = vcombine.low %v2196_v40, %v4806_v42 }
 0x16b   : > { %5249 = vmatmul.mubr.f32.gmra.mrb[14].mxu0 %v1153_v2  ;;  %v2294_v43 = vcombine.low %v2286_v38, %v2293_v39  ;;  %v2302_v44 = vrot.slane %v2295_v28, %v7334_v13 }
 0x16c   : > { %5251 = vmatprep.mubr.f32.mxu0 %v1170_v7  ;;  %5916 = vmatpush3.bf16.msra.mxu0 %v7385_v23  ;;  %v2260_v23 = vcombine.low %v2252_v18, %v2259_v24 }
 0x16f   : > { %5252 = vmatmul.mubr.f32.gmra.mrb[16].mxu0 %v1187_v19 }
 0x170   : > { %5286 = vmatprep.mubr.msk.f32.mxu0 %vm6907_vm0, %v6908_v31 }
 0x173   : > { %5287 = vmatmul.mubr.f32.vlgmr.msra.gmra.mrb[18].mxu0 %v2243_v4 }
 0x174   : > { %5289 = vmatprep.mubr.msk.f32.mxu0 %vm6907_vm0, %v6908_v31 }
 0x177   : > { %5290 = vmatmul.mubr.f32.gmra.mrb[20].mxu0 %v2260_v23 }
 0x178   : > { %5292 = vmatprep.mubr.msk.f32.mxu0 %vm6907_vm0, %v6908_v31 }
 0x17b   : > { %5293 = vmatmul.mubr.f32.gmra.mrb[22].mxu0 %v2277_v37 }
 0x17c   : > { %5295 = vmatprep.mubr.msk.f32.mxu0 %vm6907_vm0, %v6908_v31 }
 0x17f   : > { %5296 = vmatmul.mubr.f32.gmra.mrb[24].mxu0 %v2294_v43 }
 0x180   : > { %5298 = vmatprep.mubr.msk.f32.mxu0 %vm6907_vm0, %v6908_v31 }
 0x183   : > { %5299 = vmatmul.mubr.f32.gmra.mrb[26].mxu0 %v2302_v44 }
 0x222   : > { %v5229_v46 = vpop.f32.mrb[0].mxu0 }
 0x223   : > { %v1278_v47 = vadd.f32 %v5229_v46, %v7500_v45  ;;  %v1272_v8 = vpop.f32.mrb[1].mxu0 }
 0x224   : > { %v1273_v48 = vadd.f32 %v7500_v45, %v1272_v8 }
 0x225   : > { %v1362_v35 = vmax.f32 %v1278_v47, 0.0 }
 0x226   : > { %v1361_v50 = vmax.f32 %v1273_v48, 0.0  ;;  %v5232_v51 = vpop.f32.mrb[2].mxu0 }
 0x227   : > { %v1414_v52 = vcombine.high %v1362_v35, %v1362_v35  ;;  %v1421_v53 = vrot.slane %v1362_v35, %v7334_v13  ;;  %v1288_v54 = vadd.f32 %v5232_v51, %v7500_v45  ;;  %v1282_v41 = vpop.f32.mrb[3].mxu0 }
 0x228   : > { %v1397_v55 = vcombine.high %v1361_v50, %v1361_v50  ;;  %v1404_v56 = vrot.slane %v1361_v50, %v7334_v13  ;;  %v1283_v57 = vadd.f32 %v7500_v45, %v1282_v41 }
 0x229   : > { %v1428_v59 = vrot.slane %v1414_v52, %v7334_v13  ;;  %v1429_v60 = vcombine.high %v1421_v53, %v1421_v53  ;;  %v1364_v61 = vmax.f32 %v1288_v54, 0.0 }
 0x22a   : > { %v1411_v62 = vrot.slane %v1397_v55, %v7334_v13  ;;  %v1412_v10 = vcombine.high %v1404_v56, %v1404_v56  ;;  %v1363_v63 = vmax.f32 %v1283_v57, 0.0  ;;  %v5235_v0 = vpop.f32.mrb[4].mxu0 }
 0x22b   : > { %v1430_v1 = vcombine.high %v1428_v59, %v1428_v59  ;;  %v1726_v2 = vcombine.low %v1421_v53, %v1429_v60  ;;  %v1448_v5 = vcombine.high %v1364_v61, %v1364_v61  ;;  %v1455_v58 = vrot.slane %v1364_v61, %v7334_v13  ;;  %v1292_v6 = vpop.f32.mrb[5].mxu0 }
 0x22c   : > { %v1413_v7 = vcombine.high %v1411_v62, %v1411_v62  ;;  %v1709_v9 = vcombine.low %v1404_v56, %v1412_v10  ;;  %v1431_v11 = vcombine.high %v1363_v63, %v1363_v63  ;;  %v1438_v12 = vrot.slane %v1363_v63, %v7334_v13 }
 0x22d   : > { %v1727_v15 = vcombine.low %v1428_v59, %v1430_v1  ;;  %v1734_v16 = vrot.slane %v1726_v2, %v7334_v13  ;;  %v1462_v17 = vrot.slane %v1448_v5, %v7334_v13  ;;  %v1463_v19 = vcombine.high %v1455_v58, %v1455_v58 }
 0x22e   : > { %v1710_v20 = vcombine.low %v1411_v62, %v1413_v7  ;;  %v1717_v21 = vrot.slane %v1709_v9, %v7334_v13  ;;  %v1445_v22 = vrot.slane %v1431_v11, %v7334_v13  ;;  %v1446_v14 = vcombine.high %v1438_v12, %v1438_v12  ;;  %v5238_v4 = vpop.f32.mrb[6].mxu0 }
 0x22f   : > { %v1741_v18 = vrot.slane %v1727_v15, %v7334_v13  ;;  %v1767_v24 = vcombine.low %v1463_v19, %v1462_v17  ;;  %v1749_v25 = vrot.slane %v1438_v12, %v7334_v13  ;;  %v1298_v26 = vadd.f32 %v5235_v0, %v7500_v45  ;;  %v1302_v27 = vpop.f32.mrb[7].mxu0 }
 0x230   : > { %v1724_v29 = vrot.slane %v1710_v20, %v7334_v13  ;;  %v1447_v30 = vcombine.high %v1445_v22, %v1445_v22  ;;  %v1750_v31 = vcombine.low %v1446_v14, %v1445_v22  ;;  %v1293_v32 = vadd.f32 %v7500_v45, %v1292_v6 }
 0x231   : > { %v1742_v23 = vcombine.low %v1734_v16, %v1741_v18  ;;  %v1775_v33 = vrot.slane %v1767_v24, %v7334_v13  ;;  %v2063_v34 = vsel %vm479_vm1, %v1749_v25, 0.0  ;;  %v1366_v36 = vmax.f32 %v1298_v26, 0.0 }
 0x232   : > { %v1725_v37 = vcombine.low %v1717_v21, %v1724_v29  ;;  %v1751_v38 = vcombine.low %v1447_v30, %v1455_v58  ;;  %v1758_v39 = vrot.slane %v1750_v31, %v7334_v13  ;;  %2088 = vst [vmem:[#allocation2 + $0x28] sm:$0x3] %v2063_v34  ;;  %v1365_v40 = vmax.f32 %v1293_v32, 0.0  ;;  %v5241_v42 = vpop.f32.mrb[8].mxu0 }
 0x233   : > { %2087 = vst [vmem:[#allocation2 + $0x20] sm:$0xff] %v1742_v23  ;;  %v1482_v43 = vcombine.high %v1366_v36, %v1366_v36  ;;  %v1489_v28 = vrot.slane %v1366_v36, %v7334_v13  ;;  %v1464_v44 = vcombine.high %v1462_v17, %v1462_v17  ;;  %v1308_v46 = vadd.f32 %v5238_v4, %v7500_v45  ;;  %v1312_v47 = vpop.f32.mrb[9].mxu0 }
 0x234   : > { %v2061_v8 = vsel %vm474_vm2, %v1725_v37, 0.0  ;;  %v1765_v48 = vrot.slane %v1751_v38, %v7334_v13  ;;  %v1465_v35 = vcombine.high %v1365_v40, %v1365_v40  ;;  %v1472_v50 = vrot.slane %v1365_v40, %v7334_v13 }
 0x235   : > { %2086 = vst [vmem:[#allocation2 + $0x18] sm:$0xff] %v2061_v8  ;;  %v1496_v51 = vrot.slane %v1482_v43, %v7334_v13  ;;  %v1497_v52 = vcombine.high %v1489_v28, %v1489_v28  ;;  %v1368_v53 = vmax.f32 %v1308_v46, 0.0  ;;  %v1303_v54 = vadd.f32 %v7500_v45, %v1302_v27 }
 0x236   : > { %v1766_v41 = vcombine.low %v1758_v39, %v1765_v48  ;;  %v1479_v55 = vrot.slane %v1465_v35, %v7334_v13  ;;  %v1480_v56 = vcombine.high %v1472_v50, %v1472_v50  ;;  %v1768_v57 = vcombine.low %v1464_v44, %v1472_v50  ;;  %v5244_v59 = vpop.f32.mrb[10].mxu0 }
 0x237   : > { %v1498_v60 = vcombine.high %v1496_v51, %v1496_v51  ;;  %v1792_v61 = vcombine.low %v1489_v28, %v1497_v52  ;;  %v1516_v62 = vcombine.high %v1368_v53, %v1368_v53  ;;  %v1523_v10 = vrot.slane %v1368_v53, %v7334_v13  ;;  %v1322_v63 = vpop.f32.mrb[11].mxu0 }
 0x238   : > { %v2064_v0 = vsel %vm474_vm2, %v1766_v41, 0.0  ;;  %v1481_v1 = vcombine.high %v1479_v55, %v1479_v55  ;;  %v1782_v2 = vrot.slane %v1768_v57, %v7334_v13  ;;  %v1790_v5 = vrot.slane %v1480_v56, %v7334_v13 }
 0x239   : > { %2089 = vst [vmem:[#allocation2 + $0x30] sm:$0xff] %v2064_v0  ;;  %v1806_v58 = vrot.slane %v1792_v61, %v7334_v13  ;;  %v1808_v6 = vcombine.low %v1496_v51, %v1498_v60  ;;  %v1530_v7 = vrot.slane %v1516_v62, %v7334_v13  ;;  %v1531_v9 = vcombine.high %v1523_v10, %v1523_v10 }
 0x23a   : > { %v1783_v11 = vcombine.low %v1775_v33, %v1782_v2  ;;  %v1791_v12 = vcombine.low %v1479_v55, %v1481_v1  ;;  %v2066_v15 = vsel %vm479_vm1, %v1790_v5, 0.0  ;;  %v1367_v16 = vmax.f32 %v1303_v54, 0.0  ;;  %v7548_v17 = vpop.f32.mrb[12].mxu0 }
 0x23b   : > { %v1816_v19 = vrot.slane %v1808_v6, %v7334_v13  ;;  %2091 = vst [vmem:[#allocation2 + $0x40] sm:$0x3] %v2066_v15  ;;  %v1833_v20 = vcombine.low %v1531_v9, %v1530_v7  ;;  %v1318_v21 = vadd.f32 %v5241_v42, %v7500_v45  ;;  %v1313_v22 = vadd.f32 %v7500_v45, %v1312_v47  ;;  %v7553_v14 = vpop.f32.mrb[13].mxu0 }
 0x23c   : > { %v1799_v4 = vrot.slane %v1791_v12, %v7334_v13  ;;  %2090 = vst [vmem:[#allocation2 + $0x38] sm:$0xff] %v1783_v11  ;;  %v1499_v18 = vcombine.high %v1367_v16, %v1367_v16  ;;  %v1506_v24 = vrot.slane %v1367_v16, %v7334_v13  ;;  %v1532_v25 = vcombine.high %v1530_v7, %v1530_v7 }
 0x23d   : > { %v1847_v26 = vrot.slane %v1833_v20, %v7334_v13  ;;  %v1370_v27 = vmax.f32 %v1318_v21, 0.0  ;;  %v1369_v29 = vmax.f32 %v1313_v22, 0.0  ;;  %v1328_v30 = vadd.f32 %v5244_v59, %v7500_v45 }
 0x23e   : > { %v1807_v31 = vcombine.low %v1799_v4, %v1806_v58  ;;  %v1513_v32 = vrot.slane %v1499_v18, %v7334_v13  ;;  %v1514_v23 = vcombine.high %v1506_v24, %v1506_v24  ;;  %v1323_v33 = vadd.f32 %v7500_v45, %v1322_v63  ;;  %v7561_v34 = vpop.f32.mrb[14].mxu0 }
 0x23f   : > { %v1550_v36 = vcombine.high %v1370_v27, %v1370_v27  ;;  %v1557_v37 = vrot.slane %v1370_v27, %v7334_v13  ;;  %v1533_v38 = vcombine.high %v1369_v29, %v1369_v29  ;;  %v1540_v39 = vrot.slane %v1369_v29, %v7334_v13  ;;  %v7565_v40 = vpop.f32.mrb[15].mxu0 }
 0x240   : > { %v2067_v42 = vsel %vm474_vm2, %v1807_v31, 0.0  ;;  %v1515_v43 = vcombine.high %v1513_v32, %v1513_v32  ;;  %v1809_v28 = vcombine.low %v1506_v24, %v1514_v23  ;;  %v1831_v44 = vrot.slane %v1513_v32, %v7334_v13 }
 0x241   : > { %2092 = vst [vmem:[#allocation2 + $0x48] sm:$0xff] %v2067_v42  ;;  %v1564_v46 = vrot.slane %v1550_v36, %v7334_v13  ;;  %v1565_v47 = vcombine.high %v1557_v37, %v1557_v37  ;;  %v1547_v8 = vrot.slane %v1533_v38, %v7334_v13  ;;  %v1548_v48 = vcombine.high %v1540_v39, %v1540_v39 }
 0x242   : > { %v1823_v35 = vrot.slane %v1809_v28, %v7334_v13  ;;  %v1832_v50 = vcombine.low %v1515_v43, %v1523_v10  ;;  %v2069_v51 = vsel %vm479_vm1, %v1831_v44, 0.0  ;;  %v1849_v52 = vcombine.low %v1532_v25, %v1540_v39  ;;  %v7575_v53 = vpop.f32.mrb[16].mxu0 }
 0x243   : > { %2094 = vst [vmem:[#allocation2 + $0x58] sm:$0x3] %v2069_v51  ;;  %v1566_v54 = vcombine.high %v1564_v46, %v1564_v46  ;;  %v1873_v41 = vcombine.low %v1557_v37, %v1565_v47  ;;  %v1549_v55 = vcombine.high %v1547_v8, %v1547_v8  ;;  %v1850_v56 = vcombine.low %v1548_v48, %v1547_v8  ;;  %v7577_v57 = vpop.f32.mrb[17].mxu0 }
 0x244   : > { %v1824_v59 = vcombine.low %v1816_v19, %v1823_v35  ;;  %v1840_v60 = vrot.slane %v1832_v50, %v7334_v13  ;;  %v1857_v61 = vrot.slane %v1849_v52, %v7334_v13  ;;  %v1372_v62 = vmax.f32 %v1328_v30, 0.0 }
 0x245   : > { %v1874_v10 = vcombine.low %v1564_v46, %v1566_v54  ;;  %v1881_v63 = vrot.slane %v1873_v41, %v7334_v13  ;;  %v1864_v0 = vrot.slane %v1850_v56, %v7334_v13  ;;  %v1872_v1 = vrot.slane %v1549_v55, %v7334_v13 }
 0x246   : > { %v1848_v2 = vcombine.low %v1840_v60, %v1847_v26  ;;  %2093 = vst [vmem:[#allocation2 + $0x50] sm:$0xff] %v1824_v59  ;;  %v1584_v5 = vcombine.high %v1372_v62, %v1372_v62  ;;  %v1591_v58 = vrot.slane %v1372_v62, %v7334_v13  ;;  %v1371_v6 = vmax.f32 %v1323_v33, 0.0  ;;  %v7585_v7 = vpop.f32.mrb[18].mxu0 }
 0x247   : > { %v1888_v9 = vrot.slane %v1874_v10, %v7334_v13  ;;  %v1865_v11 = vcombine.low %v1857_v61, %v1864_v0  ;;  %v2072_v12 = vsel %vm479_vm1, %v1872_v1, 0.0  ;;  %v1338_v15 = vadd.f32 %v7548_v17, %v7500_v45  ;;  %v5288_v16 = vpop.f32.mrb[19].mxu0 }
 0x248   : > { %v2070_v19 = vsel %vm474_vm2, %v1848_v2, 0.0  ;;  %2097 = vst [vmem:[#allocation2 + $0x70] sm:$0x3] %v2072_v12  ;;  %v1598_v20 = vrot.slane %v1584_v5, %v7334_v13  ;;  %v1599_v21 = vcombine.high %v1591_v58, %v1591_v58  ;;  %v1913_v22 = vrot.slane %v1591_v58, %v7334_v13 }
 0x249   : > { %2095 = vst [vmem:[#allocation2 + $0x60] sm:$0xff] %v2070_v19  ;;  %v1889_v4 = vcombine.low %v1881_v63, %v1888_v9  ;;  %2096 = vst [vmem:[#allocation2 + $0x68] sm:$0xff] %v1865_v11  ;;  %v1567_v18 = vcombine.high %v1371_v6, %v1371_v6  ;;  %v1574_v24 = vrot.slane %v1371_v6, %v7334_v13  ;;  %v1374_v25 = vmax.f32 %v1338_v15, 0.0 }
 0x24a   : > { %v1914_v26 = vcombine.low %v1599_v21, %v1598_v20  ;;  %v2075_v17 = vsel %vm479_vm1, %v1913_v22, 0.0  ;;  %v1333_v27 = vadd.f32 %v7500_v45, %v7553_v14  ;;  %v1600_v29 = vcombine.high %v1598_v20, %v1598_v20  ;;  %v7601_v30 = vpop.f32.mrb[20].mxu0 }
 0x24b   : > { %v2073_v31 = vsel %vm474_vm2, %v1889_v4, 0.0  ;;  %2100 = vst [vmem:[#allocation2 + $0x88] sm:$0x3] %v2075_v17  ;;  %v1581_v32 = vrot.slane %v1567_v18, %v7334_v13  ;;  %v1582_v23 = vcombine.high %v1574_v24, %v1574_v24  ;;  %v1618_v33 = vcombine.high %v1374_v25, %v1374_v25  ;;  %v5291_v36 = vpop.f32.mrb[21].mxu0 }
 0x24c   : > { %2098 = vst [vmem:[#allocation2 + $0x78] sm:$0xff] %v2073_v31  ;;  %v1922_v37 = vrot.slane %v1914_v26, %v7334_v13  ;;  %v1625_v38 = vrot.slane %v1374_v25, %v7334_v13  ;;  %v1373_v39 = vmax.f32 %v1333_v27, 0.0  ;;  %v1348_v14 = vadd.f32 %v7561_v34, %v7500_v45 }
 0x24d   : > { %v1583_v42 = vcombine.high %v1581_v32, %v1581_v32  ;;  %v1890_v43 = vcombine.low %v1574_v24, %v1582_v23  ;;  %v1632_v28 = vrot.slane %v1618_v33, %v7334_v13  ;;  %v1343_v44 = vadd.f32 %v7500_v45, %v7565_v40 }
 0x24e   : > { %v1633_v46 = vcombine.high %v1625_v38, %v1625_v38  ;;  %v1601_v47 = vcombine.high %v1373_v39, %v1373_v39  ;;  %v1608_v8 = vrot.slane %v1373_v39, %v7334_v13  ;;  %v1376_v48 = vmax.f32 %v1348_v14, 0.0  ;;  %v7614_v35 = vpop.f32.mrb[22].mxu0 }
 0x24f   : > { %v1891_v50 = vcombine.low %v1581_v32, %v1583_v42  ;;  %v1898_v51 = vrot.slane %v1890_v43, %v7334_v13  ;;  %v1634_v52 = vcombine.high %v1632_v28, %v1632_v28  ;;  %v1375_v54 = vmax.f32 %v1343_v44, 0.0  ;;  %v5294_v34 = vpop.f32.mrb[23].mxu0 }
 0x250   : > { %v1954_v41 = vrot.slane %v1633_v46, %v7334_v13  ;;  %v1615_v55 = vrot.slane %v1601_v47, %v7334_v13  ;;  %v1616_v56 = vcombine.high %v1608_v8, %v1608_v8  ;;  %v1915_v59 = vcombine.low %v1600_v29, %v1608_v8 }
 0x251   : > { %v1905_v40 = vrot.slane %v1891_v50, %v7334_v13  ;;  %v1955_v60 = vcombine.low %v1632_v28, %v1634_v52  ;;  %v1652_v61 = vcombine.high %v1376_v48, %v1376_v48  ;;  %v1659_v62 = vrot.slane %v1376_v48, %v7334_v13 }
 0x252   : > { %v2078_v10 = vsel %vm479_vm1, %v1954_v41, 0.0  ;;  %v1617_v63 = vcombine.high %v1615_v55, %v1615_v55  ;;  %v1929_v0 = vrot.slane %v1915_v59, %v7334_v13  ;;  %v1931_v1 = vcombine.low %v1616_v56, %v1615_v55  ;;  %v7624_v2 = vpop.f32.mrb[24].mxu0 }
 0x253   : > { %v1906_v5 = vcombine.low %v1898_v51, %v1905_v40  ;;  %v1963_v58 = vrot.slane %v1955_v60, %v7334_v13  ;;  %2103 = vst [vmem:[#allocation2 + $0xa0] sm:$0x3] %v2078_v10  ;;  %v1666_v6 = vrot.slane %v1652_v61, %v7334_v13  ;;  %v1667_v9 = vcombine.high %v1659_v62, %v1659_v62  ;;  %v5297_v11 = vpop.f32.mrb[25].mxu0 }
 0x254   : > { %v1930_v12 = vcombine.low %v1922_v37, %v1929_v0  ;;  %v1932_v15 = vcombine.low %v1617_v63, %v1625_v38  ;;  %v1939_v16 = vrot.slane %v1931_v1, %v7334_v13  ;;  %v1635_v19 = vcombine.high %v1375_v54, %v1375_v54 }
 0x255   : > { %2099 = vst [vmem:[#allocation2 + $0x80] sm:$0xff] %v1906_v5  ;;  %v1973_v20 = vcombine.low %v1659_v62, %v1667_v9  ;;  %v1995_v21 = vrot.slane %v1666_v6, %v7334_v13  ;;  %v1642_v22 = vrot.slane %v1375_v54, %v7334_v13  ;;  %v1358_v4 = vadd.f32 %v7575_v53, %v7500_v45 }
 0x256   : > { %v1946_v18 = vrot.slane %v1932_v15, %v7334_v13  ;;  %v2076_v24 = vsel %vm474_vm2, %v1930_v12, 0.0  ;;  %v1649_v25 = vrot.slane %v1635_v19, %v7334_v13  ;;  %v1353_v26 = vadd.f32 %v7500_v45, %v7577_v57  ;;  %v7639_v17 = vpop.f32.mrb[26].mxu0 }
 0x257   : > { %2101 = vst [vmem:[#allocation2 + $0x90] sm:$0xff] %v2076_v24  ;;  %v1987_v27 = vrot.slane %v1973_v20, %v7334_v13  ;;  %v2081_v29 = vsel %vm479_vm1, %v1995_v21, 0.0  ;;  %v1650_v31 = vcombine.high %v1642_v22, %v1642_v22  ;;  %v1378_v53 = vmax.f32 %v1358_v4, 0.0  ;;  %v5300_v32 = vpop.f32.mrb[27].mxu0 }
 0x258   : > { %v1947_v23 = vcombine.low %v1939_v16, %v1946_v18  ;;  %2106 = vst [vmem:[#allocation2 + $0xb8] sm:$0x3] %v2081_v29  ;;  %v1651_v33 = vcombine.high %v1649_v25, %v1649_v25  ;;  %v1377_v36 = vmax.f32 %v1353_v26, 0.0  ;;  %v1668_v37 = vcombine.high %v1666_v6, %v1666_v6 }
 0x259   : > { %v1956_v38 = vcombine.low %v1642_v22, %v1650_v31  ;;  %v1686_v39 = vcombine.high %v1378_v53, %v1378_v53  ;;  %v1693_v57 = vrot.slane %v1378_v53, %v7334_v13  ;;  %v2375_v14 = vadd.f32 %v7500_v45, %v7585_v7 }
 0x25a   : > { %2102 = vst [vmem:[#allocation2 + $0x98] sm:$0xff] %v1947_v23  ;;  %v1972_v42 = vcombine.low %v1649_v25, %v1651_v33  ;;  %v1669_v43 = vcombine.high %v1377_v36, %v1377_v36  ;;  %v1676_v28 = vrot.slane %v1377_v36, %v7334_v13  ;;  %v2380_v44 = vadd.f32 %v7500_v45, %v7601_v30 }
 0x25b   : > { %v1970_v46 = vrot.slane %v1956_v38, %v7334_v13  ;;  %v1700_v47 = vrot.slane %v1686_v39, %v7334_v13  ;;  %v1701_v8 = vcombine.high %v1693_v57, %v1693_v57  ;;  %v2398_v48 = vmax.f32 %v2375_v14, 0.0 }
 0x25c   : > { %v1980_v50 = vrot.slane %v1972_v42, %v7334_v13  ;;  %v1683_v51 = vrot.slane %v1669_v43, %v7334_v13  ;;  %v1684_v52 = vcombine.high %v1676_v28, %v1676_v28  ;;  %v1996_v7 = vcombine.low %v1668_v37, %v1676_v28 }
 0x25d   : > { %v1971_v54 = vcombine.low %v1963_v58, %v1970_v46  ;;  %v1702_v34 = vcombine.high %v1700_v47, %v1700_v47  ;;  %v2014_v41 = vcombine.low %v1701_v8, %v1700_v47  ;;  %v2408_v55 = vcombine.high %v2398_v48, %v2398_v48 }
 0x25e   : > { %v1988_v56 = vcombine.low %v1980_v50, %v1987_v27  ;;  %v1685_v59 = vcombine.high %v1683_v51, %v1683_v51  ;;  %v1997_v40 = vcombine.low %v1684_v52, %v1683_v51  ;;  %v2004_v30 = vrot.slane %v1996_v7, %v7334_v13 }
 0x25f   : > { %v2079_v60 = vsel %vm474_vm2, %v1971_v54, 0.0  ;;  %v2028_v61 = vrot.slane %v2014_v41, %v7334_v13  ;;  %v2036_v62 = vrot.slane %v1702_v34, %v7334_v13  ;;  %v2415_v10 = vrot.slane %v2398_v48, %v7334_v13 }
 0x260   : > { %2104 = vst [vmem:[#allocation2 + $0xa8] sm:$0xff] %v2079_v60  ;;  %2105 = vst [vmem:[#allocation2 + $0xb0] sm:$0xff] %v1988_v56  ;;  %v2011_v63 = vrot.slane %v1997_v40, %v7334_v13  ;;  %v2013_v0 = vcombine.low %v1685_v59, %v1693_v57  ;;  %v2422_v1 = vrot.slane %v2408_v55, %v7334_v13  ;;  %v2399_v5 = vmax.f32 %v2380_v44, 0.0 }
 0x261   : > { %v2084_v58 = vsel %vm479_vm1, %v2036_v62, 0.0  ;;  %v2423_v6 = vcombine.high %v2415_v10, %v2415_v10  ;;  %v2385_v9 = vadd.f32 %v7500_v45, %v7614_v35  ;;  %v2390_v11 = vadd.f32 %v7500_v45, %v7624_v2 }
 0x262   : > { %2109 = vst [vmem:[#allocation2 + $0xd0] sm:$0x3] %v2084_v58  ;;  %v2012_v12 = vcombine.low %v2004_v30, %v2011_v63  ;;  %v2021_v15 = vrot.slane %v2013_v0, %v7334_v13  ;;  %v2424_v16 = vcombine.high %v2422_v1, %v2422_v1  ;;  %v2425_v19 = vcombine.high %v2399_v5, %v2399_v5 }
 0x263   : > { %v2484_v20 = vcombine.low %v2415_v10, %v2423_v6  ;;  %v2432_v21 = vrot.slane %v2399_v5, %v7334_v13  ;;  %v2400_v22 = vmax.f32 %v2385_v9, 0.0  ;;  %v2401_v4 = vmax.f32 %v2390_v11, 0.0 }
 0x264   : > { %v2029_v18 = vcombine.low %v2021_v15, %v2028_v61  ;;  %v2082_v24 = vsel %vm474_vm2, %v2012_v12, 0.0  ;;  %v2485_v25 = vcombine.low %v2422_v1, %v2424_v16  ;;  %v2439_v35 = vrot.slane %v2425_v19, %v7334_v13 }
 0x265   : > { %2107 = vst [vmem:[#allocation2 + $0xc0] sm:$0xff] %v2082_v24  ;;  %v2492_v2 = vrot.slane %v2484_v20, %v7334_v13  ;;  %v2440_v26 = vcombine.high %v2432_v21, %v2432_v21  ;;  %v2442_v27 = vcombine.high %v2400_v22, %v2400_v22  ;;  %v2449_v29 = vrot.slane %v2400_v22, %v7334_v13 }
 0x266   : > { %2108 = vst [vmem:[#allocation2 + $0xc8] sm:$0xff] %v2029_v18  ;;  %v2499_v31 = vrot.slane %v2485_v25, %v7334_v13  ;;  %v2441_v53 = vcombine.high %v2439_v35, %v2439_v35  ;;  %v2459_v32 = vcombine.high %v2401_v4, %v2401_v4  ;;  %v2466_v23 = vrot.slane %v2401_v4, %v7334_v13 }
 0x267   : > { %v2501_v33 = vcombine.low %v2432_v21, %v2440_v26  ;;  %v2456_v36 = vrot.slane %v2442_v27, %v7334_v13  ;;  %v2457_v37 = vcombine.high %v2449_v29, %v2449_v29  ;;  %v2524_v38 = vrot.slane %v2449_v29, %v7334_v13 }
 0x268   : > { %v2500_v39 = vcombine.low %v2492_v2, %v2499_v31  ;;  %v2502_v57 = vcombine.low %v2439_v35, %v2441_v53  ;;  %v2473_v14 = vrot.slane %v2459_v32, %v7334_v13  ;;  %v2474_v44 = vcombine.high %v2466_v23, %v2466_v23 }
 0x269   : > { %v2525_v42 = vcombine.low %v2457_v37, %v2456_v36  ;;  %v2574_v43 = vsel %vm479_vm1, %v2524_v38, 0.0  ;;  %v2458_v28 = vcombine.high %v2456_v36, %v2456_v36  ;;  %v2509_v47 = vrot.slane %v2501_v33, %v7334_v13 }
 0x26a   : > { %v2572_v46 = vsel %vm474_vm2, %v2500_v39, 0.0  ;;  %v2516_v8 = vrot.slane %v2502_v57, %v7334_v13  ;;  %2580 = vst [vmem:[#allocation2 + $0x10] sm:$0x3] %v2574_v43  ;;  %v2395_v48 = vadd.f32 %v7500_v45, %v7639_v17  ;;  %v2475_v7 = vcombine.high %v2473_v14, %v2473_v14 }
 0x26b   : > { %2578 = vst [vmem:[#allocation2] sm:$0xff] %v2572_v46  ;;  %v2526_v50 = vcombine.low %v2458_v28, %v2466_v23  ;;  %v2533_v54 = vrot.slane %v2525_v42, %v7334_v13  ;;  %v2542_v41 = vcombine.low %v2474_v44, %v2473_v14  ;;  %2591 = vst [vmem:[#allocation2 + $0x10] sm:$0x3] (!%p4808_p4), %v6909_v3 }
 0x26c   : > { %v2517_v51 = vcombine.low %v2509_v47, %v2516_v8  ;;  %v2402_v52 = vmax.f32 %v2395_v48, 0.0  ;;  %2589 = vst [vmem:[#allocation2] sm:$0xff] (!%p4808_p4), %v6909_v3 }
 0x26d   : > { %v2540_v34 = vrot.slane %v2526_v50, %v7334_v13  ;;  %v2550_v17 = vrot.slane %v2542_v41, %v7334_v13 }
 0x26e   : > { %2579 = vst [vmem:[#allocation2 + $0x8] sm:$0xff] %v2517_v51  ;;  %v2482_v55 = vrot.slane %v2402_v52, %v7334_v13 }
 0x26f   : > { %v2541_v56 = vcombine.low %v2533_v54, %v2540_v34  ;;  %2590 = vst [vmem:[#allocation2 + $0x8] sm:$0xff] (!%p4808_p4), %v6909_v3 }
 0x270   : > { %v2483_v59 = vcombine.high %v2482_v55, %v2482_v55  ;;  %v2543_v40 = vcombine.low %v2475_v7, %v2482_v55  ;;  %2588 = sbr.rel (%p4808_p4) target bundleno = 631 (0x277), region = 88 }
 0x271   : > { %v2575_v45 = vsel %vm474_vm2, %v2541_v56, 0.0 }
 0x272   : > { %2582 = vst [vmem:[#allocation2 + $0xd8] sm:$0xff] %v2575_v45  ;;  %v2557_v30 = vrot.slane %v2543_v40, %v7334_v13  ;;  %v2565_v60 = vrot.slane %v2483_v59, %v7334_v13 }
 0x274   : > { %v2558_v61 = vcombine.low %v2550_v17, %v2557_v30  ;;  %v2577_v62 = vsel %vm479_vm1, %v2565_v60, 0.0 }
 0x275   : > { %2584 = vst [vmem:[#allocation2 + $0xe8] sm:$0x3] %v2577_v62 }
 0x276   : > { %2583 = vst [vmem:[#allocation2 + $0xe0] sm:$0xff] %v2558_v61 }
 0x277 PF: > { %s8123_s30 = sld [smem:[#allocation25_spill]] }
 0x27d   : > { %p4809_p10 = scmp.ne.s32.totalorder %s8123_s30, 1 }
 0x27e   : > { %v6910_v13 = vmov (!%p4809_p10), 0.0  }
 0x27f   : > { %2595 = sbr.rel (%p4809_p10) target bundleno = 646 (0x286), region = 92  ;;  %2596 = vst [vmem:[#allocation2 + $0xd8] sm:$0xff] (!%p4809_p10), %v6910_v13  ;;  %2597 = vst [vmem:[#allocation2 + $0xe0] sm:$0xff] (!%p4809_p10), %v6910_v13 }
 0x280   : > { %2598 = vst [vmem:[#allocation2 + $0xe8] sm:$0x3] (!%p4809_p10), %v6910_v13 }
 0x286 PF: > { %v3165_v49 = vld [vmem:[#allocation11 + $0x180] sm:$0xff]  ;;  %v3166_v10 = vld [vmem:[#allocation11 + $0x188] sm:$0xff]  ;;  %v3167_v63 = vld [vmem:[#allocation11 + $0x190] sm:$0xff]  ;;  %s8124_s23 = sld [smem:[#allocation25_spill]]  ;;  %s8125_s4 = sld [smem:[#allocation26_spill]] }
 0x287   : > { %v6013_v0 = vpack.c.bf16 %v3166_v10, %v3165_v49  ;;  %v3168_v1 = vld [vmem:[#allocation11 + $0x198] sm:$0xff]  ;;  %v3169_v58 = vld [vmem:[#allocation11 + $0x1a0] sm:$0xff]  ;;  %v3170_v6 = vld [vmem:[#allocation11 + $0x1a8] sm:$0xff]  ;;  %s4601_s15 = sshll.u32 %s7700_s13, 4  ;;  %s8126_s22 = sld [smem:[#allocation36_spill]]  ;;  %s8007_s15 = int_to_ptr.vmem [resolvable:$true] %s4601_s15 }
 0x288   : > { %v6017_v5 = vpack.c.bf16 %v3168_v1, %v3167_v63  ;;  %v6021_v9 = vpack.c.bf16 %v3170_v6, %v3169_v58  ;;  %v7704_v11 = vld [vmem:[#allocation2 + $0x18] sm:$0xff]  ;;  %v3171_v15 = vld [vmem:[#allocation11 + $0x1b0] sm:$0xff]  ;;  %v3172_v16 = vld [vmem:[#allocation11 + $0x1b8] sm:$0xff]  ;;  %s6775_s9 = scalar_lea.vmem %s8007_s15, 2048  ;;  %p8127_p8 = scmp.ne.s32.totalorder %s8107_s19, 0 }
 0x289   : > { %6014 = vmatprep.subr.bf16.mxu1 %v6013_v0  ;;  %v2648_v12 = vld [vmem:[#allocation11 + $0x80] sm:$0xff]  ;;  %5501 = vmatprep.mubr.f32.mxu1 %v7704_v11  ;;  %v2649_v19 = vld [vmem:[#allocation11 + $0x88] sm:$0xff]  ;;  %v2650_v21 = vld [vmem:[#allocation11 + $0x90] sm:$0xff]  ;;  %v6025_v4 = vpack.c.bf16 %v3172_v16, %v3171_v15  ;;  %p6776_p6 = scmp.ne.s32.totalorder %s8007_s15, %s6775_s9  ;;  %s6911_s17 = smov [#allocation17]  }
 0x28a   : > { %6016 = vmatpush3.bf16.msra.mxu1 %v6013_v0  ;;  %v5917_v20 = vpack.c.bf16 %v2649_v19, %v2648_v12  ;;  %v2651_v22 = vld [vmem:[#allocation11 + $0x98] sm:$0xff]  ;;  %v2652_v24 = vld [vmem:[#allocation11 + $0xa0] sm:$0xff]  ;;  %v3174_v35 = vld [vmem:[#allocation11 + $0x1c8] sm:$0xff]  ;;  %s6779_s6 = sshll.u32 %s6911_s17, 4  ;;  %s6780_s6 = int_to_ptr.vmem [resolvable:$false] %s6779_s6 }
 0x28b   : > { %6018 = vmatprep.subr.bf16.mxu1 %v6017_v5  ;;  %v5921_v18 = vpack.c.bf16 %v2651_v22, %v2650_v21  ;;  %v3173_v25 = vld [vmem:[#allocation11 + $0x1c0] sm:$0xff]  ;;  %v2653_v2 = vld [vmem:[#allocation11 + $0xa8] sm:$0xff]  ;;  %v2654_v27 = vld [vmem:[#allocation11 + $0xb0] sm:$0xff]  ;;  %p6777_p9 = pnand %p6776_p6, %p8127_p8  ;;  %s6781_s8 = scalar_lea.vmem %s6780_s6, 4096 }
 0x28c   : > { %5918 = vmatprep.subr.bf16.mxu0 %v5917_v20  ;;  %v5925_v26 = vpack.c.bf16 %v2653_v2, %v2652_v24  ;;  %v2655_v29 = vld [vmem:[#allocation11 + $0xb8] sm:$0xff]  ;;  %v6029_v31 = vpack.c.bf16 %v3174_v35, %v3173_v25  ;;  %v3175_v53 = vld [vmem:[#allocation11 + $0x1d0] sm:$0xff]  ;;  %v2656_v33 = vld [vmem:[#allocation11 + $0xc0] sm:$0xff]  ;;  %s4819_s0 = sshll.u32 %s8124_s23, 4  ;;  %s4815_s7 = sshll.u32 %s8125_s4, 5 }
 0x28d   : > { %5920 = vmatpush3.bf16.msra.mxu0 %v5917_v20  ;;  %v3176_v32 = vld [vmem:[#allocation11 + $0x1d8] sm:$0xff]  ;;  %v5929_v23 = vpack.c.bf16 %v2655_v29, %v2654_v27  ;;  %v2657_v36 = vld [vmem:[#allocation11 + $0xc8] sm:$0xff]  ;;  %v3177_v38 = vld [vmem:[#allocation11 + $0x1e0] sm:$0xff]  ;;  %s4598_s24 = sadd.s32 %s4819_s0, %s4815_s7  ;;  %p6778_p3 = pneg %p6777_p9 }
 0x28e   : > { %6020 = vmatpush3.bf16.msra.mxu1 %v6017_v5  ;;  %5922 = vmatprep.subr.bf16.mxu0 %v5921_v18  ;;  %v6033_v37 = vpack.c.bf16 %v3176_v32, %v3175_v53  ;;  %v3178_v39 = vld [vmem:[#allocation11 + $0x1e8] sm:$0xff]  ;;  %v5933_v57 = vpack.c.bf16 %v2657_v36, %v2656_v33  ;;  %v2658_v14 = vld [vmem:[#allocation11 + $0xd0] sm:$0xff]  ;;  %v2659_v42 = vld [vmem:[#allocation11 + $0xd8] sm:$0xff]  ;;  %s4816_s5 = sshll.u32 %s4598_s24, 7  ;;  %p6782_p7 = scmp.lt.s32.totalorder %s8007_s15, %s6780_s6 }
 0x28f   : > { %6022 = vmatprep.subr.bf16.mxu1 %v6021_v9  ;;  %v6037_v43 = vpack.c.bf16 %v3178_v39, %v3177_v38  ;;  %v2631_v28 = vld [vmem:[#allocation2 + $0x1] sm:$0xff]  ;;  %v3180_v46 = vld [vmem:[#allocation11 + $0x1f8] sm:$0xff]  ;;  %v5937_v47 = vpack.c.bf16 %v2659_v42, %v2658_v14  ;;  %v2660_v8 = vld [vmem:[#allocation11 + $0xe0] sm:$0xff]  ;;  %s8005_s3 = scalar_lea.hbm %s8126_s22, %s4816_s5  ;;  %p6783_p5 = scmp.lt.s32.totalorder %s6781_s8, %s6775_s9 }
 0x290   : > { %v3179_v44 = vld [vmem:[#allocation11 + $0x1f0] sm:$0xff]  ;;  %5333 = vmatprep.mubr.f32.mxu0 %v2631_v28  ;;  %v2661_v48 = vld [vmem:[#allocation11 + $0xe8] sm:$0xff]  ;;  %v3359_v51 = vld [vmem:[#allocation11 + $0x200] sm:$0xff] }
 0x291   : > { %5924 = vmatpush3.bf16.msra.mxu0 %v5921_v18  ;;  %v6041_v50 = vpack.c.bf16 %v3180_v46, %v3179_v44  ;;  %v3360_v52 = vld [vmem:[#allocation11 + $0x208] sm:$0xff]  ;;  %v5941_v7 = vpack.c.bf16 %v2661_v48, %v2660_v8  ;;  %v2662_v54 = vld [vmem:[#allocation11 + $0xf0] sm:$0xff]  ;;  %v2663_v34 = vld [vmem:[#allocation11 + $0xf8] sm:$0xff]  ;;  %p6784_p1 = por %p6783_p5, %p6782_p7 }
 0x292   : > { %6024 = vmatpush3.bf16.msra.mxu1 %v6021_v9  ;;  %5926 = vmatprep.subr.bf16.mxu0 %v5925_v26  ;;  %v6045_v41 = vpack.c.bf16 %v3360_v52, %v3359_v51  ;;  %v3361_v55 = vld [vmem:[#allocation11 + $0x210] sm:$0xff]  ;;  %v3362_v56 = vld [vmem:[#allocation11 + $0x218] sm:$0xff]  ;;  %v5945_v59 = vpack.c.bf16 %v2663_v34, %v2662_v54  ;;  %v2615_v45 = vld [vmem:[#allocation11] sm:$0xff] }
 0x293   : > { %6026 = vmatprep.subr.bf16.mxu1 %v6025_v4  ;;  %v7707_v40 = vld [vmem:[#allocation2 + $0x20] sm:$0xff]  ;;  %v7709_v30 = vld [vmem:[#allocation2 + $0x30] sm:$0xff]  ;;  %v6049_v60 = vpack.c.bf16 %v3362_v56, %v3361_v55  ;;  %v7713_v13 = vld [vmem:[#allocation2 + $0x38] sm:$0xff]  ;;  %p6785_p11 = pnand %p6784_p1, %p6778_p3 }
 0x294   : > { %v2616_v17 = vld [vmem:[#allocation11 + $0x8] sm:$0xff]  ;;  %v3363_v61 = vld [vmem:[#allocation11 + $0x220] sm:$0xff]  ;;  %v2617_v49 = vld [vmem:[#allocation11 + $0x10] sm:$0xff] }
 0x295   : > { %5928 = vmatpush3.bf16.msra.mxu0 %v5925_v26  ;;  %v3364_v62 = vld [vmem:[#allocation11 + $0x228] sm:$0xff]  ;;  %v5949_v3 = vpack.c.bf16 %v2616_v17, %v2615_v45  ;;  %v2618_v10 = vld [vmem:[#allocation11 + $0x18] sm:$0xff]  ;;  %v3365_v1 = vld [vmem:[#allocation11 + $0x230] sm:$0xff] }
 0x296   : > { %6028 = vmatpush3.bf16.msra.mxu1 %v6025_v4  ;;  %5930 = vmatprep.subr.bf16.mxu0 %v5929_v23  ;;  %v7715_v63 = vld [vmem:[#allocation2 + $0x48] sm:$0xff]  ;;  %v6053_v0 = vpack.c.bf16 %v3364_v62, %v3363_v61  ;;  %v5953_v6 = vpack.c.bf16 %v2618_v10, %v2617_v49  ;;  %v7719_v9 = vld [vmem:[#allocation2 + $0x50] sm:$0xff]  ;;  %v2620_v15 = vld [vmem:[#allocation11 + $0x28] sm:$0xff] }
 0x297   : > { %6030 = vmatprep.subr.bf16.mxu1 %v6029_v31  ;;  %v3366_v5 = vld [vmem:[#allocation11 + $0x238] sm:$0xff]  ;;  %v2619_v12 = vld [vmem:[#allocation11 + $0x20] sm:$0xff]  ;;  %v7721_v16 = vld [vmem:[#allocation2 + $0x60] sm:$0xff] }
 0x298   : > { %v2632_v58 = vld [vmem:[#allocation2 + $0x9] sm:$0xff]  ;;  %v6057_v19 = vpack.c.bf16 %v3366_v5, %v3365_v1  ;;  %v7723_v20 = vld [vmem:[#allocation2 + $0x19] sm:$0xff]  ;;  %v5957_v18 = vpack.c.bf16 %v2620_v15, %v2619_v12  ;;  %v7730_v24 = vld [vmem:[#allocation2 + $0x21] sm:$0xff] }
 0x299   : > { %5932 = vmatpush3.bf16.msra.mxu0 %v5929_v23  ;;  %v3367_v21 = vld [vmem:[#allocation11 + $0x240] sm:$0xff]  ;;  %v3368_v22 = vld [vmem:[#allocation11 + $0x248] sm:$0xff]  ;;  %v7727_v4 = vld [vmem:[#allocation2 + $0x68] sm:$0xff] }
 0x29a   : > { %6032 = vmatpush3.bf16.msra.mxu1 %v6029_v31  ;;  %5934 = vmatprep.subr.bf16.mxu0 %v5933_v57  ;;  %v2621_v25 = vld [vmem:[#allocation11 + $0x30] sm:$0xff]  ;;  %v2622_v35 = vld [vmem:[#allocation11 + $0x38] sm:$0xff]  ;;  %v7732_v2 = vld [vmem:[#allocation2 + $0x78] sm:$0xff]  ;;  %v6061_v26 = vpack.c.bf16 %v3368_v22, %v3367_v21 }
 0x29b   : > { %6034 = vmatprep.subr.bf16.mxu1 %v6033_v37  ;;  %v7734_v27 = vld [vmem:[#allocation2 + $0x31] sm:$0xff]  ;;  %v3369_v29 = vld [vmem:[#allocation11 + $0x250] sm:$0xff]  ;;  %v5961_v32 = vpack.c.bf16 %v2622_v35, %v2621_v25  ;;  %v7742_v23 = vld [vmem:[#allocation2 + $0x39] sm:$0xff] }
 0x29c   : > { %v3370_v31 = vld [vmem:[#allocation11 + $0x258] sm:$0xff]  ;;  %v7739_v53 = vld [vmem:[#allocation2 + $0x80] sm:$0xff]  ;;  %v2623_v33 = vld [vmem:[#allocation11 + $0x40] sm:$0xff] }
 0x29d   : > { %5936 = vmatpush3.bf16.msra.mxu0 %v5933_v57  ;;  %v2624_v36 = vld [vmem:[#allocation11 + $0x48] sm:$0xff]  ;;  %v6065_v38 = vpack.c.bf16 %v3370_v31, %v3369_v29  ;;  %v7746_v39 = vld [vmem:[#allocation2 + $0x49] sm:$0xff]  ;;  %v3371_v57 = vld [vmem:[#allocation11 + $0x260] sm:$0xff] }
 0x29e   : > { %6036 = vmatpush3.bf16.msra.mxu1 %v6033_v37  ;;  %5938 = vmatprep.subr.bf16.mxu0 %v5937_v47  ;;  %v7744_v37 = vld [vmem:[#allocation2 + $0x90] sm:$0xff]  ;;  %v3372_v14 = vld [vmem:[#allocation11 + $0x268] sm:$0xff]  ;;  %v2625_v44 = vld [vmem:[#allocation11 + $0x50] sm:$0xff] }
 0x29f   : > { %6038 = vmatprep.subr.bf16.mxu1 %v6037_v43  ;;  %v7751_v42 = vld [vmem:[#allocation2 + $0x98] sm:$0xff]  ;;  %v2626_v46 = vld [vmem:[#allocation11 + $0x58] sm:$0xff]  ;;  %v6069_v8 = vpack.c.bf16 %v3372_v14, %v3371_v57  ;;  %v7758_v48 = vld [vmem:[#allocation2 + $0x61] sm:$0xff] }
 0x2a0   : > { %v7754_v28 = vld [vmem:[#allocation2 + $0x51] sm:$0xff]  ;;  %v7766_v54 = vld [vmem:[#allocation2 + $0x69] sm:$0xff]  ;;  %v7768_v55 = vld [vmem:[#allocation2 + $0xc0] sm:$0xff] }
 0x2a1   : > { %5940 = vmatpush3.bf16.msra.mxu0 %v5937_v47  ;;  %v7756_v47 = vld [vmem:[#allocation2 + $0xa8] sm:$0xff]  ;;  %v7763_v52 = vld [vmem:[#allocation2 + $0xb0] sm:$0xff]  ;;  %v3554_v17 = vld [vmem:[#allocation11 + $0x288] sm:$0xff] }
 0x2a2   : > { %6040 = vmatpush3.bf16.msra.mxu1 %v6037_v43  ;;  %5942 = vmatprep.subr.bf16.mxu0 %v5941_v7  ;;  %v5965_v43 = vpack.c.bf16 %v2624_v36, %v2623_v33  ;;  %v3374_v51 = vld [vmem:[#allocation11 + $0x278] sm:$0xff]  ;;  %v2627_v34 = vld [vmem:[#allocation11 + $0x60] sm:$0xff]  ;;  %v7778_v62 = vld [vmem:[#allocation2 + $0x81] sm:$0xff] }
 0x2a3   : > { %6042 = vmatprep.subr.bf16.mxu1 %v6041_v50  ;;  %v3553_v45 = vld [vmem:[#allocation11 + $0x280] sm:$0xff]  ;;  %v2630_v49 = vld [vmem:[#allocation11 + $0x78] sm:$0xff]  ;;  %v3555_v1 = vld [vmem:[#allocation11 + $0x290] sm:$0xff] }
 0x2a4   : > { %v6077_v10 = vpack.c.bf16 %v3554_v17, %v3553_v45  ;;  %v3556_v5 = vld [vmem:[#allocation11 + $0x298] sm:$0xff]  ;;  %v2971_v12 = vld [vmem:[#allocation11 + $0x100] sm:$0xff]  ;;  %v2972_v15 = vld [vmem:[#allocation11 + $0x108] sm:$0xff] }
 0x2a5   : > { %5944 = vmatpush3.bf16.msra.mxu0 %v5941_v7  ;;  %v5969_v7 = vpack.c.bf16 %v2626_v46, %v2625_v44  ;;  %v7788_v21 = vld [vmem:[#allocation2 + $0xa9] sm:$0xff]  ;;  %v3557_v22 = vld [vmem:[#allocation11 + $0x2a0] sm:$0xff]  ;;  %v2599_v25 = vld [vmem:[#allocation2] sm:$0xff] }
 0x2a6   : > { %6044 = vmatpush3.bf16.msra.mxu1 %v6041_v50  ;;  %5946 = vmatprep.subr.bf16.mxu0 %v5945_v59  ;;  %v3373_v50 = vld [vmem:[#allocation11 + $0x270] sm:$0xff]  ;;  %v7794_v35 = vld [vmem:[#allocation2 + $0xb1] sm:$0xff]  ;;  %v2976_v57 = vld [vmem:[#allocation11 + $0x128] sm:$0xff] }
 0x2a7   : > { %6046 = vmatprep.subr.bf16.mxu1 %v6045_v41  ;;  %v6073_v56 = vpack.c.bf16 %v3374_v51, %v3373_v50  ;;  %v2974_v29 = vld [vmem:[#allocation11 + $0x118] sm:$0xff]  ;;  %v3562_v44 = vld [vmem:[#allocation11 + $0x2c8] sm:$0xff]  ;;  %v3565_v17 = vld [vmem:[#allocation11 + $0x2e0] sm:$0xff] }
 0x2a8   : > { %v3560_v33 = vld [vmem:[#allocation11 + $0x2b8] sm:$0xff] }
 0x2a9   : > { %5502 = vmatmul.mubr.f32.vlgmr.msra.gmra.mrb[0].mxu1 %v7707_v40  ;;  %5948 = vmatpush3.bf16.msra.mxu0 %v5945_v59  ;;  %v7770_v59 = vld [vmem:[#allocation2 + $0x79] sm:$0xff]  ;;  %v2600_v36 = vld [vmem:[#allocation2 + $0x8] sm:$0xff] }
 0x2aa   : > { %6048 = vmatpush3.bf16.msra.mxu1 %v6045_v41  ;;  %5504 = vmatprep.mubr.f32.mxu1 %v7709_v30  ;;  %v2628_v41 = vld [vmem:[#allocation11 + $0x68] sm:$0xff]  ;;  %v2978_v50 = vld [vmem:[#allocation11 + $0x138] sm:$0xff] }
 0x2ab   : > { %6050 = vmatprep.subr.bf16.mxu1 %v6049_v60  ;;  %5950 = vmatprep.subr.bf16.mxu0 %v5949_v3  ;;  %v5973_v61 = vpack.c.bf16 %v2628_v41, %v2627_v34  ;;  %v3564_v34 = vld [vmem:[#allocation11 + $0x2d8] sm:$0xff]  ;;  %v2979_v41 = vld [vmem:[#allocation11 + $0x140] sm:$0xff] }
 0x2ac   : > { %5334 = vmatmul.mubr.f32.vlgmr.msra.gmra.mrb[28].mxu0 %v2632_v58 }
 0x2ad   : > { %5505 = vmatmul.mubr.f32.gmra.mrb[2].mxu1 %v7713_v13  ;;  %5952 = vmatpush3.bf16.msra.mxu0 %v5949_v3  ;;  %v2629_v3 = vld [vmem:[#allocation11 + $0x70] sm:$0xff] }
 0x2ae   : > { %6052 = vmatpush3.bf16.msra.mxu1 %v6049_v60  ;;  %5507 = vmatprep.mubr.f32.mxu1 %v7715_v63  ;;  %v7775_v60 = vld [vmem:[#allocation2 + $0xc8] sm:$0xff]  ;;  %v5977_v58 = vpack.c.bf16 %v2630_v49, %v2629_v3 }
 0x2af   : > { %6054 = vmatprep.subr.bf16.mxu1 %v6053_v0  ;;  %5336 = vmatprep.mubr.f32.mxu0 %v7723_v20  ;;  %v2981_v3 = vld [vmem:[#allocation11 + $0x150] sm:$0xff]  ;;  %v2982_v49 = vld [vmem:[#allocation11 + $0x158] sm:$0xff] }
 0x2b0   : > { %5954 = vmatprep.subr.bf16.mxu0 %v5953_v6  ;;  %5337 = vmatmul.mubr.f32.gmra.mrb[30].mxu0 %v7730_v24 }
 0x2b1   : > { %5508 = vmatmul.mubr.f32.gmra.mrb[4].mxu1 %v7719_v9  ;;  %5956 = vmatpush3.bf16.msra.mxu0 %v5953_v6  ;;  %v7786_v6 = vld [vmem:[#allocation2 + $0x99] sm:$0xff] }
 0x2b2   : > { %6056 = vmatpush3.bf16.msra.mxu1 %v6053_v0  ;;  %5510 = vmatprep.mubr.f32.mxu1 %v7721_v16  ;;  %v7780_v0 = vld [vmem:[#allocation2 + $0x91] sm:$0xff] }
 0x2b3   : > { %6058 = vmatprep.subr.bf16.mxu1 %v6057_v19  ;;  %5339 = vmatprep.mubr.f32.mxu0 %v7734_v27 }
 0x2b4   : > { %5958 = vmatprep.subr.bf16.mxu0 %v5957_v18  ;;  %5340 = vmatmul.mubr.f32.gmra.mrb[32].mxu0 %v7742_v23 }
 0x2b5   : > { %5511 = vmatmul.mubr.f32.gmra.mrb[6].mxu1 %v7727_v4  ;;  %5960 = vmatpush3.bf16.msra.mxu0 %v5957_v18  ;;  %v3558_v18 = vld [vmem:[#allocation11 + $0x2a8] sm:$0xff] }
 0x2b6   : > { %6060 = vmatpush3.bf16.msra.mxu1 %v6057_v19  ;;  %5513 = vmatprep.mubr.f32.mxu1 %v7732_v2  ;;  %v6081_v19 = vpack.c.bf16 %v3556_v5, %v3555_v1  ;;  %v6085_v31 = vpack.c.bf16 %v3558_v18, %v3557_v22  ;;  %v3567_v1 = vld [vmem:[#allocation11 + $0x2f0] sm:$0xff]  ;;  %v3568_v5 = vld [vmem:[#allocation11 + $0x2f8] sm:$0xff]  ;;  %v3748_v18 = vld [vmem:[#allocation11 + $0x300] sm:$0xff] }
 0x2b7   : > { %6062 = vmatprep.subr.bf16.mxu1 %v6061_v26  ;;  %5342 = vmatprep.mubr.f32.mxu0 %v7746_v39  ;;  %v6105_v22 = vpack.c.bf16 %v3568_v5, %v3567_v1  ;;  %v3758_v1 = vld [vmem:[#allocation11 + $0x350] sm:$0xff]  ;;  %v3759_v5 = vld [vmem:[#allocation11 + $0x358] sm:$0xff] }
 0x2b8   : > { %5962 = vmatprep.subr.bf16.mxu0 %v5961_v32  ;;  %5343 = vmatmul.mubr.f32.gmra.mrb[34].mxu0 %v7754_v28 }
 0x2b9   : > { %5514 = vmatmul.mubr.f32.gmra.mrb[8].mxu1 %v7739_v53  ;;  %5964 = vmatpush3.bf16.msra.mxu0 %v5961_v32  ;;  %v3559_v32 = vld [vmem:[#allocation11 + $0x2b0] sm:$0xff] }
 0x2ba   : > { %6064 = vmatpush3.bf16.msra.mxu1 %v6061_v26  ;;  %5516 = vmatprep.mubr.f32.mxu1 %v7744_v37  ;;  %v2973_v26 = vld [vmem:[#allocation11 + $0x110] sm:$0xff]  ;;  %v6089_v14 = vpack.c.bf16 %v3560_v33, %v3559_v32  ;;  %v3536_v32 = vld [vmem:[#allocation2 + $0x1a] sm:$0xff] }
 0x2bb   : > { %6066 = vmatprep.subr.bf16.mxu1 %v6065_v38  ;;  %5345 = vmatprep.mubr.f32.mxu0 %v7758_v48 }
 0x2bc   : > { %5966 = vmatprep.subr.bf16.mxu0 %v5965_v43  ;;  %5346 = vmatmul.mubr.f32.gmra.mrb[36].mxu0 %v7766_v54 }
 0x2bd   : > { %5517 = vmatmul.mubr.f32.gmra.mrb[10].mxu1 %v7751_v42  ;;  %5968 = vmatpush3.bf16.msra.mxu0 %v5965_v43  ;;  %v3561_v43 = vld [vmem:[#allocation11 + $0x2c0] sm:$0xff] }
 0x2be   : > { %6068 = vmatpush3.bf16.msra.mxu1 %v6065_v38  ;;  %5519 = vmatprep.mubr.f32.mxu1 %v7756_v47  ;;  %v2975_v38 = vld [vmem:[#allocation11 + $0x120] sm:$0xff]  ;;  %v6093_v51 = vpack.c.bf16 %v3562_v44, %v3561_v43 }
 0x2bf   : > { %6070 = vmatprep.subr.bf16.mxu1 %v6069_v8  ;;  %5348 = vmatprep.mubr.f32.mxu0 %v7770_v59  ;;  %v5989_v46 = vpack.c.bf16 %v2976_v57, %v2975_v38  ;;  %v3537_v57 = vld [vmem:[#allocation2 + $0x22] sm:$0xff]  ;;  %v3752_v44 = vld [vmem:[#allocation11 + $0x320] sm:$0xff] }
 0x2c0   : > { %5970 = vmatprep.subr.bf16.mxu0 %v5969_v7  ;;  %5349 = vmatmul.mubr.f32.gmra.mrb[38].mxu0 %v7778_v62 }
 0x2c1   : > { %5520 = vmatmul.mubr.f32.gmra.mrb[12].mxu1 %v7763_v52  ;;  %5972 = vmatpush3.bf16.msra.mxu0 %v5969_v7  ;;  %v3563_v7 = vld [vmem:[#allocation11 + $0x2d0] sm:$0xff] }
 0x2c2   : > { %6072 = vmatpush3.bf16.msra.mxu1 %v6069_v8  ;;  %5522 = vmatprep.mubr.f32.mxu1 %v7768_v55  ;;  %v2977_v8 = vld [vmem:[#allocation11 + $0x130] sm:$0xff]  ;;  %v6097_v45 = vpack.c.bf16 %v3564_v34, %v3563_v7 }
 0x2c3   : > { %6074 = vmatprep.subr.bf16.mxu1 %v6073_v56  ;;  %5351 = vmatprep.mubr.f32.mxu0 %v7780_v0  ;;  %v3754_v34 = vld [vmem:[#allocation11 + $0x330] sm:$0xff] }
 0x2c4   : > { %5974 = vmatprep.subr.bf16.mxu0 %v5973_v61  ;;  %5352 = vmatmul.mubr.f32.gmra.mrb[40].mxu0 %v7786_v6 }
 0x2c5   : > { %5523 = vmatmul.mubr.f32.gmra.mrb[14].mxu1 %v7775_v60  ;;  %5976 = vmatpush3.bf16.msra.mxu0 %v5973_v61 }
 0x2c6   : > { %6076 = vmatpush3.bf16.msra.mxu1 %v6073_v56  ;;  %5557 = vmatprep.mubr.f32.mxu1 %v7723_v20  ;;  %v5981_v20 = vpack.c.bf16 %v2972_v15, %v2971_v12  ;;  %v2980_v56 = vld [vmem:[#allocation11 + $0x148] sm:$0xff]  ;;  %v2983_v12 = vld [vmem:[#allocation11 + $0x160] sm:$0xff] }
 0x2c7   : > { %6078 = vmatprep.subr.bf16.mxu1 %v6077_v10  ;;  %5354 = vmatprep.mubr.f32.mxu0 %v7788_v21  ;;  %v5997_v61 = vpack.c.bf16 %v2980_v56, %v2979_v41  ;;  %v2984_v15 = vld [vmem:[#allocation11 + $0x168] sm:$0xff]  ;;  %v2955_v41 = vld [vmem:[#allocation2 + $0xa] sm:$0xff]  ;;  %v7837_v56 = vld [vmem:[#allocation2 + $0x52] sm:$0xff] }
 0x2c8   : > { %5978 = vmatprep.subr.bf16.mxu0 %v5977_v58  ;;  %5355 = vmatmul.mubr.f32.gmra.mrb[42].mxu0 %v7794_v35 }
 0x2c9   : > { %5558 = vmatmul.mubr.f32.vlgmr.msra.gmra.mrb[0].mxu1 %v7730_v24  ;;  %5980 = vmatpush3.bf16.msra.mxu0 %v5977_v58  ;;  %v5985_v24 = vpack.c.bf16 %v2974_v29, %v2973_v26  ;;  %v6001_v58 = vpack.c.bf16 %v2982_v49, %v2981_v3  ;;  %v7820_v26 = vld [vmem:[#allocation2 + $0xc9] sm:$0xff]  ;;  %v7845_v49 = vld [vmem:[#allocation2 + $0x7a] sm:$0xff] }
 0x2ca   : > { %6080 = vmatpush3.bf16.msra.mxu1 %v6077_v10  ;;  %5560 = vmatprep.mubr.f32.mxu1 %v7734_v27  ;;  %v2985_v29 = vld [vmem:[#allocation11 + $0x170] sm:$0xff]  ;;  %v7843_v3 = vld [vmem:[#allocation2 + $0x6a] sm:$0xff] }
 0x2cb   : > { %6082 = vmatprep.subr.bf16.mxu1 %v6081_v19  ;;  %5389 = vmatprep.mubr.f32.mxu0 %v2599_v25  ;;  %v3749_v25 = vld [vmem:[#allocation11 + $0x308] sm:$0xff] }
 0x2cc   : > { %5982 = vmatprep.subr.bf16.mxu0 %v5981_v20  ;;  %5390 = vmatmul.mubr.f32.vlgmr.msra.gmra.mrb[28].mxu0 %v2600_v36  ;;  %v6109_v33 = vpack.c.bf16 %v3749_v25, %v3748_v18  ;;  %v3750_v36 = vld [vmem:[#allocation11 + $0x310] sm:$0xff]  ;;  %v3761_v18 = vld [vmem:[#allocation11 + $0x368] sm:$0xff] }
 0x2cd   : > { %5561 = vmatmul.mubr.f32.gmra.mrb[2].mxu1 %v7742_v23  ;;  %5984 = vmatpush3.bf16.msra.mxu0 %v5981_v20  ;;  %v6005_v20 = vpack.c.bf16 %v2984_v15, %v2983_v12  ;;  %v7852_v12 = vld [vmem:[#allocation2 + $0x92] sm:$0xff]  ;;  %v6129_v15 = vpack.c.bf16 %v3759_v5, %v3758_v1  ;;  %v7858_v25 = vld [vmem:[#allocation2 + $0x9a] sm:$0xff]  ;;  %v3953_v1 = vld [vmem:[#allocation11 + $0x3d8] sm:$0xff] }
 0x2ce   : > { %6084 = vmatpush3.bf16.msra.mxu1 %v6081_v19  ;;  %5563 = vmatprep.mubr.f32.mxu1 %v7746_v39  ;;  %v7814_v19 = vld [vmem:[#allocation2 + $0xc1] sm:$0xff] }
 0x2cf   : > { %6086 = vmatprep.subr.bf16.mxu1 %v6085_v31  ;;  %5392 = vmatprep.mubr.f32.mxu0 %v7704_v11  ;;  %v5993_v11 = vpack.c.bf16 %v2978_v50, %v2977_v8  ;;  %v2954_v8 = vld [vmem:[#allocation2 + $0x2] sm:$0xff]  ;;  %v7830_v50 = vld [vmem:[#allocation2 + $0x3a] sm:$0xff] }
 0x2d0   : > { %5986 = vmatprep.subr.bf16.mxu0 %v5985_v24  ;;  %5393 = vmatmul.mubr.f32.gmra.mrb[30].mxu0 %v7707_v40  ;;  %v3566_v40 = vld [vmem:[#allocation11 + $0x2e8] sm:$0xff] }
 0x2d1   : > { %5564 = vmatmul.mubr.f32.gmra.mrb[4].mxu1 %v7754_v28  ;;  %5988 = vmatpush3.bf16.msra.mxu0 %v5985_v24  ;;  %v6101_v10 = vpack.c.bf16 %v3566_v40, %v3565_v17  ;;  %v3751_v24 = vld [vmem:[#allocation11 + $0x318] sm:$0xff]  ;;  %v3756_v40 = vld [vmem:[#allocation11 + $0x340] sm:$0xff]  ;;  %v3955_v5 = vld [vmem:[#allocation11 + $0x3e8] sm:$0xff] }
 0x2d2   : > { %6088 = vmatpush3.bf16.msra.mxu1 %v6085_v31  ;;  %5566 = vmatprep.mubr.f32.mxu1 %v7758_v48  ;;  %v2986_v31 = vld [vmem:[#allocation11 + $0x178] sm:$0xff]  ;;  %v6113_v43 = vpack.c.bf16 %v3751_v24, %v3750_v36  ;;  %v7868_v36 = vld [vmem:[#allocation2 + $0xc2] sm:$0xff] }
 0x2d3   : > { %6090 = vmatprep.subr.bf16.mxu1 %v6089_v14  ;;  %5395 = vmatprep.mubr.f32.mxu0 %v7709_v30  ;;  %v6009_v38 = vpack.c.bf16 %v2986_v31, %v2985_v29  ;;  %v3762_v31 = vld [vmem:[#allocation11 + $0x370] sm:$0xff] }
 0x2d4   : > { %5990 = vmatprep.subr.bf16.mxu0 %v5989_v46  ;;  %5396 = vmatmul.mubr.f32.gmra.mrb[32].mxu0 %v7713_v13 }
 0x2d5   : > { %5567 = vmatmul.mubr.f32.gmra.mrb[6].mxu1 %v7766_v54  ;;  %5992 = vmatpush3.bf16.msra.mxu0 %v5989_v46  ;;  %v3753_v46 = vld [vmem:[#allocation11 + $0x328] sm:$0xff] }
 0x2d6   : > { %6092 = vmatpush3.bf16.msra.mxu1 %v6089_v14  ;;  %5569 = vmatprep.mubr.f32.mxu1 %v7770_v59  ;;  %v7825_v14 = vld [vmem:[#allocation2 + $0x32] sm:$0xff]  ;;  %v6117_v7 = vpack.c.bf16 %v3753_v46, %v3752_v44  ;;  %v3944_v46 = vld [vmem:[#allocation11 + $0x390] sm:$0xff] }
 0x2d7   : > { %6094 = vmatprep.subr.bf16.mxu1 %v6093_v51  ;;  %5398 = vmatprep.mubr.f32.mxu0 %v7715_v63 }
 0x2d8   : > { %5994 = vmatprep.subr.bf16.mxu0 %v5993_v11  ;;  %5399 = vmatmul.mubr.f32.gmra.mrb[34].mxu0 %v7719_v9 }
 0x2d9   : > { %5570 = vmatmul.mubr.f32.gmra.mrb[8].mxu1 %v7778_v62  ;;  %5996 = vmatpush3.bf16.msra.mxu0 %v5993_v11  ;;  %v3755_v11 = vld [vmem:[#allocation11 + $0x338] sm:$0xff] }
 0x2da   : > { %6096 = vmatpush3.bf16.msra.mxu1 %v6093_v51  ;;  %5572 = vmatprep.mubr.f32.mxu1 %v7780_v0  ;;  %v7832_v51 = vld [vmem:[#allocation2 + $0x4a] sm:$0xff]  ;;  %v6121_v17 = vpack.c.bf16 %v3755_v11, %v3754_v34  ;;  %v3946_v34 = vld [vmem:[#allocation11 + $0x3a0] sm:$0xff]  ;;  %v3947_v11 = vld [vmem:[#allocation11 + $0x3a8] sm:$0xff] }
 0x2db   : > { %6098 = vmatprep.subr.bf16.mxu1 %v6097_v45  ;;  %5401 = vmatprep.mubr.f32.mxu0 %v7721_v16 }
 0x2dc   : > { %5998 = vmatprep.subr.bf16.mxu0 %v5997_v61  ;;  %5402 = vmatmul.mubr.f32.gmra.mrb[36].mxu0 %v7727_v4 }
 0x2dd   : > { %5573 = vmatmul.mubr.f32.gmra.mrb[10].mxu1 %v7786_v6  ;;  %6000 = vmatpush3.bf16.msra.mxu0 %v5997_v61  ;;  %v3757_v61 = vld [vmem:[#allocation11 + $0x348] sm:$0xff] }
 0x2de   : > { %6100 = vmatpush3.bf16.msra.mxu1 %v6097_v45  ;;  %5575 = vmatprep.mubr.f32.mxu1 %v7788_v21  ;;  %v7839_v45 = vld [vmem:[#allocation2 + $0x62] sm:$0xff] }
 0x2df   : > { %6102 = vmatprep.subr.bf16.mxu1 %v6101_v10  ;;  %5404 = vmatprep.mubr.f32.mxu0 %v7732_v2 }
 0x2e0   : > { %6002 = vmatprep.subr.bf16.mxu0 %v6001_v58  ;;  %5405 = vmatmul.mubr.f32.gmra.mrb[38].mxu0 %v7739_v53 }
 0x2e1   : > { %5576 = vmatmul.mubr.f32.gmra.mrb[12].mxu1 %v7794_v35  ;;  %6004 = vmatpush3.bf16.msra.mxu0 %v6001_v58  ;;  %v7850_v58 = vld [vmem:[#allocation2 + $0x82] sm:$0xff] }
 0x2e2   : > { %6104 = vmatpush3.bf16.msra.mxu1 %v6101_v10  ;;  %5578 = vmatprep.mubr.f32.mxu1 %v7814_v19  ;;  %v6125_v10 = vpack.c.bf16 %v3757_v61, %v3756_v40  ;;  %v3949_v40 = vld [vmem:[#allocation11 + $0x3b8] sm:$0xff]  ;;  %v3950_v61 = vld [vmem:[#allocation11 + $0x3c0] sm:$0xff] }
 0x2e3   : > { %6106 = vmatprep.subr.bf16.mxu1 %v6105_v22  ;;  %5407 = vmatprep.mubr.f32.mxu0 %v7744_v37 }
 0x2e4   : > { %6006 = vmatprep.subr.bf16.mxu0 %v6005_v20  ;;  %5408 = vmatmul.mubr.f32.gmra.mrb[40].mxu0 %v7751_v42 }
 0x2e5   : > { %5579 = vmatmul.mubr.f32.gmra.mrb[14].mxu1 %v7820_v26  ;;  %6008 = vmatpush3.bf16.msra.mxu0 %v6005_v20  ;;  %v7860_v20 = vld [vmem:[#allocation2 + $0xaa] sm:$0xff] }
 0x2e6   : > { %6108 = vmatpush3.bf16.msra.mxu1 %v6105_v22  ;;  %5613 = vmatprep.mubr.f32.mxu1 %v3536_v32  ;;  %v3760_v22 = vld [vmem:[#allocation11 + $0x360] sm:$0xff] }
 0x2e7   : > { %6110 = vmatprep.subr.bf16.mxu1 %v6109_v33  ;;  %5410 = vmatprep.mubr.f32.mxu0 %v7756_v47  ;;  %v6133_v29 = vpack.c.bf16 %v3761_v18, %v3760_v22  ;;  %v4136_v22 = vld [vmem:[#allocation11 + $0x400] sm:$0xff]  ;;  %v4137_v18 = vld [vmem:[#allocation11 + $0x408] sm:$0xff] }
 0x2e8   : > { %6010 = vmatprep.subr.bf16.mxu0 %v6009_v38  ;;  %5411 = vmatmul.mubr.f32.gmra.mrb[42].mxu0 %v7763_v52 }
 0x2e9   : > { %5614 = vmatmul.mubr.f32.vlgmr.msra.gmra.mrb[0].mxu1 %v3537_v57  ;;  %6012 = vmatpush3.bf16.msra.mxu0 %v6009_v38  ;;  %v3942_v38 = vld [vmem:[#allocation11 + $0x380] sm:$0xff] }
 0x2ea   : > { %6112 = vmatpush3.bf16.msra.mxu1 %v6109_v33  ;;  %5616 = vmatprep.mubr.f32.mxu1 %v7825_v14  ;;  %v7866_v33 = vld [vmem:[#allocation2 + $0xb2] sm:$0xff] }
 0x2eb   : > { %6114 = vmatprep.subr.bf16.mxu1 %v6113_v43  ;;  %5445 = vmatprep.mubr.f32.mxu0 %v2954_v8  ;;  %v3945_v8 = vld [vmem:[#allocation11 + $0x398] sm:$0xff] }
 0x2ec   : > { %5446 = vmatmul.mubr.f32.vlgmr.msra.gmra.mrb[28].mxu0 %v2955_v41  ;;  %v6149_v41 = vpack.c.bf16 %v3947_v11, %v3946_v34  ;;  %v4363_v34 = vld [vmem:[#allocation14 + $0x58] sm:$0xff] }
 0x2ed   : > { %5617 = vmatmul.mubr.f32.gmra.mrb[2].mxu1 %v7830_v50  ;;  %5448 = vmatprep.mubr.f32.mxu0 %v3536_v32  ;;  %v3763_v32 = vld [vmem:[#allocation11 + $0x378] sm:$0xff] }
 0x2ee   : > { %6116 = vmatpush3.bf16.msra.mxu1 %v6113_v43  ;;  %5619 = vmatprep.mubr.f32.mxu1 %v7832_v51  ;;  %v6137_v24 = vpack.c.bf16 %v3763_v32, %v3762_v31  ;;  %v7874_v43 = vld [vmem:[#allocation2 + $0xca] sm:$0xff]  ;;  %v4141_v32 = vld [vmem:[#allocation11 + $0x428] sm:$0xff] }
 0x2ef   : > { %6118 = vmatprep.subr.bf16.mxu1 %v6117_v7  ;;  %v4139_v31 = vld [vmem:[#allocation11 + $0x418] sm:$0xff] }
 0x2f0   : > { %5449 = vmatmul.mubr.f32.gmra.mrb[30].mxu0 %v3537_v57  ;;  %v3943_v57 = vld [vmem:[#allocation11 + $0x388] sm:$0xff] }
 0x2f1   : > { %5620 = vmatmul.mubr.f32.gmra.mrb[4].mxu1 %v7837_v56  ;;  %5451 = vmatprep.mubr.f32.mxu0 %v7825_v14  ;;  %v6141_v44 = vpack.c.bf16 %v3943_v57, %v3942_v38  ;;  %v4143_v38 = vld [vmem:[#allocation11 + $0x438] sm:$0xff]  ;;  %v4144_v57 = vld [vmem:[#allocation11 + $0x440] sm:$0xff] }
 0x2f2   : > { %6120 = vmatpush3.bf16.msra.mxu1 %v6117_v7  ;;  %5622 = vmatprep.mubr.f32.mxu1 %v7839_v45  ;;  %v6145_v7 = vpack.c.bf16 %v3945_v8, %v3944_v46  ;;  %v4147_v46 = vld [vmem:[#allocation11 + $0x458] sm:$0xff]  ;;  %v4149_v8 = vld [vmem:[#allocation11 + $0x468] sm:$0xff] }
 0x2f3   : > { %6122 = vmatprep.subr.bf16.mxu1 %v6121_v17 }
 0x2f4   : > { %5452 = vmatmul.mubr.f32.gmra.mrb[32].mxu0 %v7830_v50 }
 0x2f5   : > { %5623 = vmatmul.mubr.f32.gmra.mrb[6].mxu1 %v7843_v3  ;;  %5454 = vmatprep.mubr.f32.mxu0 %v7832_v51 }
 0x2f6   : > { %6124 = vmatpush3.bf16.msra.mxu1 %v6121_v17  ;;  %5625 = vmatprep.mubr.f32.mxu1 %v7845_v49  ;;  %v3948_v17 = vld [vmem:[#allocation11 + $0x3b0] sm:$0xff] }
 0x2f7   : > { %6126 = vmatprep.subr.bf16.mxu1 %v6125_v10 }
 0x2f8   : > { %5455 = vmatmul.mubr.f32.gmra.mrb[34].mxu0 %v7837_v56 }
 0x2f9   : > { %5626 = vmatmul.mubr.f32.gmra.mrb[8].mxu1 %v7850_v58  ;;  %5457 = vmatprep.mubr.f32.mxu0 %v7839_v45 }
 0x2fa   : > { %6128 = vmatpush3.bf16.msra.mxu1 %v6125_v10  ;;  %5628 = vmatprep.mubr.f32.mxu1 %v7852_v12  ;;  %v3951_v10 = vld [vmem:[#allocation11 + $0x3c8] sm:$0xff] }
 0x2fb   : > { %6130 = vmatprep.subr.bf16.mxu1 %v6129_v15 }
 0x2fc   : > { %5458 = vmatmul.mubr.f32.gmra.mrb[36].mxu0 %v7843_v3 }
 0x2fd   : > { %5629 = vmatmul.mubr.f32.gmra.mrb[10].mxu1 %v7858_v25  ;;  %5460 = vmatprep.mubr.f32.mxu0 %v7845_v49 }
 0x2fe   : > { %6132 = vmatpush3.bf16.msra.mxu1 %v6129_v15  ;;  %5631 = vmatprep.mubr.f32.mxu1 %v7860_v20  ;;  %v3957_v15 = vld [vmem:[#allocation11 + $0x3f8] sm:$0xff] }
 0x2ff   : > { %6134 = vmatprep.subr.bf16.mxu1 %v6133_v29 }
 0x300   : > { %5461 = vmatmul.mubr.f32.gmra.mrb[38].mxu0 %v7850_v58 }
 0x301   : > { %5632 = vmatmul.mubr.f32.gmra.mrb[12].mxu1 %v7866_v33  ;;  %5463 = vmatprep.mubr.f32.mxu0 %v7852_v12 }
 0x302   : > { %6136 = vmatpush3.bf16.msra.mxu1 %v6133_v29  ;;  %5634 = vmatprep.mubr.f32.mxu1 %v7868_v36  ;;  %v4138_v29 = vld [vmem:[#allocation11 + $0x410] sm:$0xff] }
 0x303   : > { %6138 = vmatprep.subr.bf16.mxu1 %v6137_v24 }
 0x304   : > { %5464 = vmatmul.mubr.f32.gmra.mrb[40].mxu0 %v7858_v25 }
 0x305   : > { %5635 = vmatmul.mubr.f32.gmra.mrb[14].mxu1 %v7874_v43  ;;  %5466 = vmatprep.mubr.f32.mxu0 %v7860_v20 }
 0x306   : > { %6140 = vmatpush3.bf16.msra.mxu1 %v6137_v24  ;;  %5669 = vmatprep.mubr.f32.mxu1 %v7709_v30  ;;  %v6153_v30 = vpack.c.bf16 %v3949_v40, %v3948_v17  ;;  %v4142_v24 = vld [vmem:[#allocation11 + $0x430] sm:$0xff] }
 0x307   : > { %6142 = vmatprep.subr.bf16.mxu1 %v6141_v44  ;;  %v4365_v17 = vld [vmem:[#allocation14 + $0x68] sm:$0xff] }
 0x308   : > { %5467 = vmatmul.mubr.f32.gmra.mrb[42].mxu0 %v7866_v33 }
 0x309   : > { %5670 = vmatmul.mubr.f32.vlgmr.msra.gmra.mrb[0].mxu1 %v7713_v13  ;;  %v6157_v13 = vpack.c.bf16 %v3951_v10, %v3950_v61  ;;  %v4367_v61 = vld [vmem:[#allocation14 + $0x78] sm:$0xff] }
 0x30a   : > { %6144 = vmatpush3.bf16.msra.mxu1 %v6141_v44  ;;  %5672 = vmatprep.mubr.f32.mxu1 %v7715_v63  ;;  %v3952_v63 = vld [vmem:[#allocation11 + $0x3d0] sm:$0xff]  ;;  %v4145_v44 = vld [vmem:[#allocation11 + $0x448] sm:$0xff] }
 0x30b   : > { %6146 = vmatprep.subr.bf16.mxu1 %v6145_v7 }
 0x30d   : > { %5673 = vmatmul.mubr.f32.gmra.mrb[2].mxu1 %v7719_v9  ;;  %v6161_v9 = vpack.c.bf16 %v3953_v1, %v3952_v63 }
 0x30e   : > { %6148 = vmatpush3.bf16.msra.mxu1 %v6145_v7  ;;  %5675 = vmatprep.mubr.f32.mxu1 %v7721_v16  ;;  %v3954_v16 = vld [vmem:[#allocation11 + $0x3e0] sm:$0xff]  ;;  %v4151_v7 = vld [vmem:[#allocation11 + $0x478] sm:$0xff] }
 0x30f   : > { %6150 = vmatprep.subr.bf16.mxu1 %v6149_v41 }
 0x311   : > { %5676 = vmatmul.mubr.f32.gmra.mrb[4].mxu1 %v7727_v4  ;;  %v6165_v4 = vpack.c.bf16 %v3955_v5, %v3954_v16 }
 0x312   : > { %6152 = vmatpush3.bf16.msra.mxu1 %v6149_v41  ;;  %5678 = vmatprep.mubr.f32.mxu1 %v7732_v2  ;;  %v3956_v2 = vld [vmem:[#allocation11 + $0x3f0] sm:$0xff]  ;;  %v4364_v41 = vld [vmem:[#allocation14 + $0x60] sm:$0xff] }
 0x313   : > { %6154 = vmatprep.subr.bf16.mxu1 %v6153_v30  ;;  %v6229_v40 = vpack.c.bf16 %v4365_v17, %v4364_v41 }
 0x315   : > { %5679 = vmatmul.mubr.f32.gmra.mrb[6].mxu1 %v7739_v53  ;;  %v3745_v53 = vld [vmem:[#allocation2 + $0xd8] sm:$0xff] }
 0x316   : > { %6156 = vmatpush3.bf16.msra.mxu1 %v6153_v30  ;;  %5681 = vmatprep.mubr.f32.mxu1 %v7744_v37  ;;  %v6169_v37 = vpack.c.bf16 %v3957_v15, %v3956_v2  ;;  %v4366_v30 = vld [vmem:[#allocation14 + $0x70] sm:$0xff] }
 0x317   : > { %6158 = vmatprep.subr.bf16.mxu1 %v6157_v13  ;;  %v6233_v10 = vpack.c.bf16 %v4367_v61, %v4366_v30 }
 0x319   : > { %5682 = vmatmul.mubr.f32.gmra.mrb[8].mxu1 %v7751_v42  ;;  %v3746_v42 = vld [vmem:[#allocation2 + $0xe0] sm:$0xff] }
 0x31a   : > { %6160 = vmatpush3.bf16.msra.mxu1 %v6157_v13  ;;  %5684 = vmatprep.mubr.f32.mxu1 %v7756_v47  ;;  %v6173_v47 = vpack.c.bf16 %v4137_v18, %v4136_v22 }
 0x31b   : > { %6162 = vmatprep.subr.bf16.mxu1 %v6161_v9 }
 0x31d   : > { %5685 = vmatmul.mubr.f32.gmra.mrb[10].mxu1 %v7763_v52  ;;  %v6177_v52 = vpack.c.bf16 %v4139_v31, %v4138_v29 }
 0x31e   : > { %6164 = vmatpush3.bf16.msra.mxu1 %v6161_v9  ;;  %5687 = vmatprep.mubr.f32.mxu1 %v7768_v55  ;;  %v4140_v55 = vld [vmem:[#allocation11 + $0x420] sm:$0xff] }
 0x31f   : > { %6166 = vmatprep.subr.bf16.mxu1 %v6165_v4 }
 0x321   : > { %5688 = vmatmul.mubr.f32.gmra.mrb[12].mxu1 %v7775_v60  ;;  %v6181_v60 = vpack.c.bf16 %v4141_v32, %v4140_v55 }
 0x322   : > { %6168 = vmatpush3.bf16.msra.mxu1 %v6165_v4  ;;  %5690 = vmatprep.mubr.f32.mxu1 %v3745_v53 }
 0x323   : > { %6170 = vmatprep.subr.bf16.mxu1 %v6169_v37 }
 0x325   : > { %5691 = vmatmul.mubr.f32.gmra.mrb[14].mxu1 %v3746_v42 }
 0x326   : > { %6172 = vmatpush3.bf16.msra.mxu1 %v6169_v37  ;;  %5725 = vmatprep.mubr.f32.mxu1 %v7734_v27  ;;  %v6185_v27 = vpack.c.bf16 %v4143_v38, %v4142_v24 }
 0x327   : > { %6174 = vmatprep.subr.bf16.mxu1 %v6173_v47 }
 0x329   : > { %5726 = vmatmul.mubr.f32.vlgmr.msra.gmra.mrb[0].mxu1 %v7742_v23  ;;  %v6189_v23 = vpack.c.bf16 %v4145_v44, %v4144_v57 }
 0x32a   : > { %6176 = vmatpush3.bf16.msra.mxu1 %v6173_v47  ;;  %5728 = vmatprep.mubr.f32.mxu1 %v7746_v39  ;;  %v4146_v39 = vld [vmem:[#allocation11 + $0x450] sm:$0xff] }
 0x32b   : > { %6178 = vmatprep.subr.bf16.mxu1 %v6177_v52 }
 0x32d   : > { %5729 = vmatmul.mubr.f32.gmra.mrb[2].mxu1 %v7754_v28  ;;  %v6193_v28 = vpack.c.bf16 %v4147_v46, %v4146_v39 }
 0x32e   : > { %6180 = vmatpush3.bf16.msra.mxu1 %v6177_v52  ;;  %5731 = vmatprep.mubr.f32.mxu1 %v7758_v48  ;;  %v4148_v48 = vld [vmem:[#allocation11 + $0x460] sm:$0xff] }
 0x32f   : > { %6182 = vmatprep.subr.bf16.mxu1 %v6181_v60  ;;  %v7930_v52 = vld [vmem:[#allocation12] ss:$0 sm:$0xff] }
 0x331   : > { %5732 = vmatmul.mubr.f32.gmra.mrb[4].mxu1 %v7766_v54  ;;  %v6197_v54 = vpack.c.bf16 %v4149_v8, %v4148_v48 }
 0x332   : > { %6184 = vmatpush3.bf16.msra.mxu1 %v6181_v60  ;;  %5734 = vmatprep.mubr.f32.mxu1 %v7770_v59  ;;  %v4150_v59 = vld [vmem:[#allocation11 + $0x470] sm:$0xff] }
 0x333   : > { %6186 = vmatprep.subr.bf16.mxu1 %v6185_v27 }
 0x335   : > { %5735 = vmatmul.mubr.f32.gmra.mrb[6].mxu1 %v7778_v62  ;;  %v3939_v62 = vld [vmem:[#allocation2 + $0xd9] sm:$0xff] }
 0x336   : > { %6188 = vmatpush3.bf16.msra.mxu1 %v6185_v27  ;;  %5737 = vmatprep.mubr.f32.mxu1 %v7780_v0  ;;  %v6201_v0 = vpack.c.bf16 %v4151_v7, %v4150_v59 }
 0x337   : > { %6190 = vmatprep.subr.bf16.mxu1 %v6189_v23 }
 0x339   : > { %5738 = vmatmul.mubr.f32.gmra.mrb[8].mxu1 %v7786_v6  ;;  %v3940_v6 = vld [vmem:[#allocation2 + $0xe1] sm:$0xff] }
 0x33a   : > { %6192 = vmatpush3.bf16.msra.mxu1 %v6189_v23  ;;  %5740 = vmatprep.mubr.f32.mxu1 %v7788_v21  ;;  %v4133_v21 = vld [vmem:[#allocation2 + $0xda] sm:$0xff] }
 0x33b   : > { %6194 = vmatprep.subr.bf16.mxu1 %v6193_v28 }
 0x33d   : > { %5741 = vmatmul.mubr.f32.gmra.mrb[10].mxu1 %v7794_v35  ;;  %v4352_v35 = vld [vmem:[#allocation14] sm:$0xff] }
 0x33e   : > { %6196 = vmatpush3.bf16.msra.mxu1 %v6193_v28  ;;  %5743 = vmatprep.mubr.f32.mxu1 %v7814_v19  ;;  %v4353_v19 = vld [vmem:[#allocation14 + $0x8] sm:$0xff] }
 0x33f   : > { %6198 = vmatprep.subr.bf16.mxu1 %v6197_v54 }
 0x341   : > { %5744 = vmatmul.mubr.f32.gmra.mrb[12].mxu1 %v7820_v26  ;;  %v4354_v26 = vld [vmem:[#allocation14 + $0x10] sm:$0xff] }
 0x342   : > { %6200 = vmatpush3.bf16.msra.mxu1 %v6197_v54  ;;  %5746 = vmatprep.mubr.f32.mxu1 %v3939_v62 }
 0x343   : > { %6202 = vmatprep.subr.bf16.mxu1 %v6201_v0 }
 0x345   : > { %5747 = vmatmul.mubr.f32.gmra.mrb[14].mxu1 %v3940_v6 }
 0x346   : > { %6204 = vmatpush3.bf16.msra.mxu1 %v6201_v0  ;;  %5781 = vmatprep.mubr.f32.mxu1 %v7825_v14  ;;  %v6205_v14 = vpack.c.bf16 %v4353_v19, %v4352_v35 }
 0x348   : > { %6206 = vmatprep.subr.bf16.mxu0 %v6205_v14 }
 0x349   : > { %5782 = vmatmul.mubr.f32.vlgmr.msra.gmra.mrb[0].mxu1 %v7830_v50  ;;  %v4355_v50 = vld [vmem:[#allocation14 + $0x18] sm:$0xff]  ;;  %6208 = vmatpush3.bf16.msra.mxu0 %v6205_v14 }
 0x34a   : > { %5784 = vmatprep.mubr.f32.mxu1 %v7832_v51  ;;  %v6209_v51 = vpack.c.bf16 %v4355_v50, %v4354_v26 }
 0x34c   : > { %6210 = vmatprep.subr.bf16.mxu0 %v6209_v51 }
 0x34d   : > { %5785 = vmatmul.mubr.f32.gmra.mrb[2].mxu1 %v7837_v56  ;;  %v4356_v56 = vld [vmem:[#allocation14 + $0x20] sm:$0xff]  ;;  %6212 = vmatpush3.bf16.msra.mxu0 %v6209_v51 }
 0x34e   : > { %5787 = vmatprep.mubr.f32.mxu1 %v7839_v45  ;;  %v4357_v45 = vld [vmem:[#allocation14 + $0x28] sm:$0xff] }
 0x351   : > { %5788 = vmatmul.mubr.f32.gmra.mrb[4].mxu1 %v7843_v3  ;;  %v4134_v3 = vld [vmem:[#allocation2 + $0xe2] sm:$0xff] }
 0x352   : > { %5790 = vmatprep.mubr.f32.mxu1 %v7845_v49  ;;  %v6213_v49 = vpack.c.bf16 %v4357_v45, %v4356_v56 }
 0x354   : > { %6214 = vmatprep.subr.bf16.mxu0 %v6213_v49 }
 0x355   : > { %5791 = vmatmul.mubr.f32.gmra.mrb[6].mxu1 %v7850_v58  ;;  %v4358_v58 = vld [vmem:[#allocation14 + $0x30] sm:$0xff]  ;;  %6216 = vmatpush3.bf16.msra.mxu0 %v6213_v49 }
 0x356   : > { %5793 = vmatprep.mubr.f32.mxu1 %v7852_v12  ;;  %v4359_v12 = vld [vmem:[#allocation14 + $0x38] sm:$0xff] }
 0x359   : > { %5794 = vmatmul.mubr.f32.gmra.mrb[8].mxu1 %v7858_v25  ;;  %v6217_v25 = vpack.c.bf16 %v4359_v12, %v4358_v58 }
 0x35a   : > { %5796 = vmatprep.mubr.f32.mxu1 %v7860_v20  ;;  %v4360_v20 = vld [vmem:[#allocation14 + $0x40] sm:$0xff] }
 0x35b   : > { %6218 = vmatprep.subr.bf16.mxu0 %v6217_v25 }
 0x35c   : > { %6220 = vmatpush3.bf16.msra.mxu0 %v6217_v25 }
 0x35d   : > { %5797 = vmatmul.mubr.f32.gmra.mrb[10].mxu1 %v7866_v33  ;;  %v4361_v33 = vld [vmem:[#allocation14 + $0x48] sm:$0xff] }
 0x35e   : > { %5799 = vmatprep.mubr.f32.mxu1 %v7868_v36  ;;  %v6221_v36 = vpack.c.bf16 %v4361_v33, %v4360_v20 }
 0x360   : > { %6222 = vmatprep.subr.bf16.mxu0 %v6221_v36 }
 0x361   : > { %5800 = vmatmul.mubr.f32.gmra.mrb[12].mxu1 %v7874_v43  ;;  %v4362_v43 = vld [vmem:[#allocation14 + $0x50] sm:$0xff]  ;;  %6224 = vmatpush3.bf16.msra.mxu0 %v6221_v36 }
 0x362   : > { %5802 = vmatprep.mubr.f32.mxu1 %v4133_v21  ;;  %v6225_v11 = vpack.c.bf16 %v4363_v34, %v4362_v43 }
 0x364   : > { %6226 = vmatprep.subr.bf16.mxu0 %v6225_v11 }
 0x365   : > { %5803 = vmatmul.mubr.f32.gmra.mrb[14].mxu1 %v4134_v3  ;;  %6228 = vmatpush3.bf16.msra.mxu0 %v6225_v11 }
 0x366   : > { %6230 = vmatprep.subr.bf16.mxu0 %v6229_v40 }
 0x369   : > { %6232 = vmatpush3.bf16.msra.mxu0 %v6229_v40 }
 0x36a   : > { %6234 = vmatprep.subr.bf16.mxu0 %v6233_v10 }
 0x36d   : > { %6236 = vmatpush3.bf16.msra.mxu0 %v6233_v10 }
 0x3bf   : > { %v5447_v13 = vpop.f32.mrb[28].mxu0 }
 0x3c0   : > { %v3053_v63 = vpop.f32.mrb[29].mxu0 }
 0x3c3   : > { %v5450_v1 = vpop.f32.mrb[30].mxu0 }
 0x3c4   : > { %v3063_v9 = vpop.f32.mrb[31].mxu0 }
 0x3c7   : > { %v5453_v16 = vpop.f32.mrb[32].mxu0 }
 0x3c8   : > { %v3073_v5 = vpop.f32.mrb[33].mxu0 }
 0x3cb   : > { %v5456_v4 = vpop.f32.mrb[34].mxu0 }
 0x3cc   : > { %v3083_v2 = vpop.f32.mrb[35].mxu0 }
 0x3cf   : > { %v5459_v15 = vpop.f32.mrb[36].mxu0 }
 0x3d0   : > { %v3093_v53 = vpop.f32.mrb[37].mxu0 }
 0x3d3   : > { %v5462_v37 = vpop.f32.mrb[38].mxu0 }
 0x3d4   : > { %v3103_v22 = vpop.f32.mrb[39].mxu0 }
 0x3d7   : > { %v5465_v18 = vpop.f32.mrb[40].mxu0 }
 0x3d8   : > { %v7924_v42 = vpop.f32.mrb[41].mxu0 }
 0x3db   : > { %v7926_v47 = vpop.f32.mrb[42].mxu0 }
 0x3dc   : > { %v7928_v29 = vpop.f32.mrb[43].mxu0 }
 0x41c   : > { %v5783_v31 = vpop.f32.mrb[0].mxu1 }
 0x41d   : > { %v6237_v55 = vadd.f32 %v5783_v31, %v5447_v13  ;;  %v4218_v32 = vpop.f32.mrb[1].mxu1 }
 0x41e   : > { %v6238_v60 = vadd.f32 %v4218_v32, %v3053_v63 }
 0x41f   : > { %v4321_v24 = vadd.f32 %v6237_v55, %v7930_v52 }
 0x420   : > { %v4320_v38 = vadd.f32 %v6238_v60, %v7930_v52  ;;  %v5786_v27 = vpop.f32.mrb[2].mxu1 }
 0x421   : > { %v6239_v57 = vadd.f32 %v5786_v27, %v5450_v1  ;;  %v4228_v44 = vpop.f32.mrb[3].mxu1  ;;  %v4337_v46 = vmax.f32 %v4321_v24, 0.0  ;;  %v4521_v24 = vld [vmem:[%s7296_s26 + $0x9] sm:$0xff]  ;;  %v4520_v27 = vld [vmem:[%s7296_s26 + $0x1] sm:$0xff] }
 0x422   : > { %v4336_v23 = vmax.f32 %v4320_v38, 0.0  ;;  %v6240_v39 = vadd.f32 %v4228_v44, %v3063_v9 }
 0x423   : > { %v4323_v28 = vadd.f32 %v6239_v57, %v7930_v52 }
 0x424   : > { %v4322_v48 = vadd.f32 %v6240_v39, %v7930_v52  ;;  %v5789_v8 = vpop.f32.mrb[4].mxu1  ;;  %5837 = vmatprep.mubr.f32.mxu0 %v4336_v23  ;;  %v4523_v39 = vld [vmem:[%s7296_s26 + $0x21] sm:$0xff] }
 0x425   : > { %v6241_v54 = vadd.f32 %v5789_v8, %v5453_v16  ;;  %v4238_v59 = vpop.f32.mrb[5].mxu1  ;;  %5838 = vmatmul.mubr.f32.vlgmr.msra.gmra.mrb[44].mxu0 %v4337_v46  ;;  %v4339_v0 = vmax.f32 %v4323_v28, 0.0  ;;  %v4522_v8 = vld [vmem:[%s7296_s26 + $0x19] sm:$0xff] }
 0x426   : > { %v4338_v7 = vmax.f32 %v4322_v48, 0.0  ;;  %v6242_v62 = vadd.f32 %v4238_v59, %v3073_v5 }
 0x427   : > { %v4325_v6 = vadd.f32 %v6241_v54, %v7930_v52 }
 0x428   : > { %v4324_v21 = vadd.f32 %v6242_v62, %v7930_v52  ;;  %v5792_v35 = vpop.f32.mrb[6].mxu1  ;;  %5840 = vmatprep.mubr.f32.mxu0 %v4338_v7 }
 0x429   : > { %v6243_v19 = vadd.f32 %v5792_v35, %v5456_v4  ;;  %v4248_v26 = vpop.f32.mrb[7].mxu1  ;;  %5841 = vmatmul.mubr.f32.gmra.mrb[46].mxu0 %v4339_v0  ;;  %v4341_v51 = vmax.f32 %v4325_v6, 0.0  ;;  %v4525_v6 = vld [vmem:[%s7296_s26 + $0x39] sm:$0xff] }
 0x42a   : > { %v4340_v14 = vmax.f32 %v4324_v21, 0.0  ;;  %v6244_v50 = vadd.f32 %v4248_v26, %v3083_v2  ;;  %v4524_v26 = vld [vmem:[%s7296_s26 + $0x31] sm:$0xff] }
 0x42b   : > { %v4327_v56 = vadd.f32 %v6243_v19, %v7930_v52 }
 0x42c   : > { %v4326_v45 = vadd.f32 %v6244_v50, %v7930_v52  ;;  %v5795_v3 = vpop.f32.mrb[8].mxu1  ;;  %5843 = vmatprep.mubr.f32.mxu0 %v4340_v14 }
 0x42d   : > { %v6245_v49 = vadd.f32 %v5795_v3, %v5459_v15  ;;  %v4258_v58 = vpop.f32.mrb[9].mxu1  ;;  %5844 = vmatmul.mubr.f32.gmra.mrb[48].mxu0 %v4341_v51  ;;  %v4343_v20 = vmax.f32 %v4327_v56, 0.0  ;;  %v4527_v3 = vld [vmem:[%s7296_s26 + $0x51] sm:$0xff] }
 0x42e   : > { %v4342_v12 = vmax.f32 %v4326_v45, 0.0  ;;  %v6246_v25 = vadd.f32 %v4258_v58, %v3093_v53 }
 0x42f   : > { %v4329_v33 = vadd.f32 %v6245_v49, %v7930_v52 }
 0x430   : > { %v4328_v36 = vadd.f32 %v6246_v25, %v7930_v52  ;;  %v5798_v43 = vpop.f32.mrb[10].mxu1  ;;  %5846 = vmatprep.mubr.f32.mxu0 %v4342_v12  ;;  %v4526_v25 = vld [vmem:[%s7296_s26 + $0x49] sm:$0xff] }
 0x431   : > { %v6247_v34 = vadd.f32 %v5798_v43, %v5462_v37  ;;  %v4268_v11 = vpop.f32.mrb[11].mxu1  ;;  %5847 = vmatmul.mubr.f32.gmra.mrb[50].mxu0 %v4343_v20  ;;  %v4345_v40 = vmax.f32 %v4329_v33, 0.0 }
 0x432   : > { %v4344_v41 = vmax.f32 %v4328_v36, 0.0  ;;  %v6248_v17 = vadd.f32 %v4268_v11, %v3103_v22  ;;  %v4529_v11 = vld [vmem:[%s7296_s26 + $0x69] sm:$0xff] }
 0x433   : > { %v4331_v30 = vadd.f32 %v6247_v34, %v7930_v52 }
 0x434   : > { %v4330_v61 = vadd.f32 %v6248_v17, %v7930_v52  ;;  %v5801_v10 = vpop.f32.mrb[12].mxu1  ;;  %5849 = vmatprep.mubr.f32.mxu0 %v4344_v41 }
 0x435   : > { %v6249_v13 = vadd.f32 %v5801_v10, %v5465_v18  ;;  %v4278_v63 = vpop.f32.mrb[13].mxu1  ;;  %5850 = vmatmul.mubr.f32.gmra.mrb[52].mxu0 %v4345_v40  ;;  %v4347_v16 = vmax.f32 %v4331_v30, 0.0  ;;  %v4528_v30 = vld [vmem:[%s7296_s26 + $0x61] sm:$0xff] }
 0x436   : > { %v4346_v1 = vmax.f32 %v4330_v61, 0.0  ;;  %v6250_v9 = vadd.f32 %v4278_v63, %v7924_v42 }
 0x437   : > { %v4333_v5 = vadd.f32 %v6249_v13, %v7930_v52 }
 0x438   : > { %v4332_v4 = vadd.f32 %v6250_v9, %v7930_v52  ;;  %v5804_v2 = vpop.f32.mrb[14].mxu1  ;;  %5852 = vmatprep.mubr.f32.mxu0 %v4346_v1  ;;  %v4531_v9 = vld [vmem:[%s7296_s26 + $0x81] sm:$0xff] }
 0x439   : > { %v6251_v15 = vadd.f32 %v5804_v2, %v7926_v47  ;;  %v4288_v53 = vpop.f32.mrb[15].mxu1  ;;  %5853 = vmatmul.mubr.f32.gmra.mrb[54].mxu0 %v4347_v16  ;;  %v4349_v18 = vmax.f32 %v4333_v5, 0.0  ;;  %v7951_v47 = vld [vmem:[#allocation15] ss:$0 sm:$0xff]  ;;  %v4530_v2 = vld [vmem:[%s7296_s26 + $0x79] sm:$0xff] }
 0x43a   : > { %v4348_v37 = vmax.f32 %v4332_v4, 0.0  ;;  %v6252_v22 = vadd.f32 %v4288_v53, %v7928_v29 }
 0x43b   : > { %v4335_v31 = vadd.f32 %v6251_v15, %v7930_v52 }
 0x43c   : > { %v4334_v42 = vadd.f32 %v6252_v22, %v7930_v52  ;;  %5855 = vmatprep.mubr.f32.mxu0 %v4348_v37 }
 0x43d   : > { %5856 = vmatmul.mubr.f32.gmra.mrb[56].mxu0 %v4349_v18  ;;  %v4351_v32 = vmax.f32 %v4335_v31, 0.0  ;;  %v4533_v31 = vld [vmem:[%s7296_s26 + $0x99] sm:$0xff] }
 0x43e   : > { %v4350_v55 = vmax.f32 %v4334_v42, 0.0 }
 0x440   : > { %5858 = vmatprep.mubr.f32.mxu0 %v4350_v55 }
 0x441   : > { %5859 = vmatmul.mubr.f32.gmra.mrb[58].mxu0 %v4351_v32 }
 0x4f8   : > { %v5839_v60 = vpop.f32.mrb[44].mxu0 }
 0x4f9   : > { %v4447_v29 = vadd.f32 %v5839_v60, %v7951_v47  ;;  %v4441_v38 = vpop.f32.mrb[45].mxu0  ;;  %v4532_v60 = vld [vmem:[%s7296_s26 + $0x91] sm:$0xff] }
 0x4fa   : > { %v4442_v52 = vadd.f32 %v7951_v47, %v4441_v38 }
 0x4fb   : > { %v4537_v57 = vadd.f32 %v4521_v24, %v4447_v29 }
 0x4fc   : > { %v4536_v44 = vadd.f32 %v4520_v27, %v4442_v52  ;;  %v5842_v23 = vpop.f32.mrb[46].mxu0 }
 0x4fd   : > { %v4553_v46 = vmax.f32 %v4537_v57, 0.0  ;;  %v4457_v28 = vadd.f32 %v5842_v23, %v7951_v47  ;;  %v4451_v48 = vpop.f32.mrb[47].mxu0  ;;  %v4535_v57 = vld [vmem:[%s7296_s26 + $0xb1] sm:$0xff] }
 0x4fe   : > { %v4552_v54 = vmax.f32 %v4536_v44, 0.0  ;;  %v4452_v59 = vadd.f32 %v7951_v47, %v4451_v48 }
 0x4ff   : > { %4569 = vst [vmem:[%s7700_s13 + $0x8] sm:$0xff] %v4553_v46  ;;  %v4539_v7 = vadd.f32 %v4523_v39, %v4457_v28  ;;  %v4534_v46 = vld [vmem:[%s7296_s26 + $0xa9] sm:$0xff]  ;;  %s4585_s26 = scalar_lea.sflag [#allocation5], %s7292_s2 }
 0x500   : > { %4568 = vst [vmem:[%s7700_s13] sm:$0xff] %v4552_v54  ;;  %v4538_v62 = vadd.f32 %v4522_v8, %v4452_v59  ;;  %v5845_v0 = vpop.f32.mrb[48].mxu0 }
 0x501   : > { %v4555_v21 = vmax.f32 %v4539_v7, 0.0  ;;  %v4467_v35 = vadd.f32 %v5845_v0, %v7951_v47  ;;  %v4461_v19 = vpop.f32.mrb[49].mxu0 }
 0x502   : > { %v4554_v14 = vmax.f32 %v4538_v62, 0.0  ;;  %v4462_v50 = vadd.f32 %v7951_v47, %v4461_v19 }
 0x503   : > { %4571 = vst [vmem:[%s7700_s13 + $0x18] sm:$0xff] %v4555_v21  ;;  %v4541_v51 = vadd.f32 %v4525_v6, %v4467_v35 }
 0x504   : > { %4570 = vst [vmem:[%s7700_s13 + $0x10] sm:$0xff] %v4554_v14  ;;  %v4540_v56 = vadd.f32 %v4524_v26, %v4462_v50  ;;  %v5848_v45 = vpop.f32.mrb[50].mxu0 }
 0x505   : > { %v4557_v49 = vmax.f32 %v4541_v51, 0.0  ;;  %v4477_v58 = vadd.f32 %v5848_v45, %v7951_v47  ;;  %v4471_v12 = vpop.f32.mrb[51].mxu0 }
 0x506   : > { %v4556_v20 = vmax.f32 %v4540_v56, 0.0  ;;  %v4472_v33 = vadd.f32 %v7951_v47, %v4471_v12 }
 0x507   : > { %4573 = vst [vmem:[%s7700_s13 + $0x28] sm:$0xff] %v4557_v49  ;;  %v4543_v36 = vadd.f32 %v4527_v3, %v4477_v58 }
 0x508   : > { %4572 = vst [vmem:[%s7700_s13 + $0x20] sm:$0xff] %v4556_v20  ;;  %v4542_v43 = vadd.f32 %v4526_v25, %v4472_v33  ;;  %v5851_v34 = vpop.f32.mrb[52].mxu0 }
 0x509   : > { %v4559_v41 = vmax.f32 %v4543_v36, 0.0  ;;  %v4487_v17 = vadd.f32 %v5851_v34, %v7951_v47  ;;  %v4481_v40 = vpop.f32.mrb[53].mxu0 }
 0x50a   : > { %v4558_v61 = vmax.f32 %v4542_v43, 0.0  ;;  %v4482_v10 = vadd.f32 %v7951_v47, %v4481_v40 }
 0x50b   : > { %4575 = vst [vmem:[%s7700_s13 + $0x38] sm:$0xff] %v4559_v41  ;;  %v4545_v13 = vadd.f32 %v4529_v11, %v4487_v17 }
 0x50c   : > { %4574 = vst [vmem:[%s7700_s13 + $0x30] sm:$0xff] %v4558_v61  ;;  %v4544_v63 = vadd.f32 %v4528_v30, %v4482_v10  ;;  %v5854_v1 = vpop.f32.mrb[54].mxu0 }
 0x50d   : > { %v4561_v16 = vmax.f32 %v4545_v13, 0.0  ;;  %v4497_v5 = vadd.f32 %v5854_v1, %v7951_v47  ;;  %v4491_v4 = vpop.f32.mrb[55].mxu0 }
 0x50e   : > { %v4560_v15 = vmax.f32 %v4544_v63, 0.0  ;;  %v4492_v53 = vadd.f32 %v7951_v47, %v4491_v4 }
 0x50f   : > { %4577 = vst [vmem:[%s7700_s13 + $0x48] sm:$0xff] %v4561_v16  ;;  %v4547_v37 = vadd.f32 %v4531_v9, %v4497_v5 }
 0x510   : > { %4576 = vst [vmem:[%s7700_s13 + $0x40] sm:$0xff] %v4560_v15  ;;  %v4546_v22 = vadd.f32 %v4530_v2, %v4492_v53  ;;  %v5857_v18 = vpop.f32.mrb[56].mxu0 }
 0x511   : > { %v4563_v42 = vmax.f32 %v4547_v37, 0.0  ;;  %v4507_v55 = vadd.f32 %v5857_v18, %v7951_v47  ;;  %v4501_v32 = vpop.f32.mrb[57].mxu0 }
 0x512   : > { %v4562_v24 = vmax.f32 %v4546_v22, 0.0  ;;  %v4502_v29 = vadd.f32 %v7951_v47, %v4501_v32 }
 0x513   : > { %4579 = vst [vmem:[%s7700_s13 + $0x58] sm:$0xff] %v4563_v42  ;;  %v4549_v38 = vadd.f32 %v4533_v31, %v4507_v55 }
 0x514   : > { %4578 = vst [vmem:[%s7700_s13 + $0x50] sm:$0xff] %v4562_v24  ;;  %v4548_v27 = vadd.f32 %v4532_v60, %v4502_v29  ;;  %v5860_v52 = vpop.f32.mrb[58].mxu0 }
 0x515   : > { %v4565_v44 = vmax.f32 %v4549_v38, 0.0  ;;  %v4517_v23 = vadd.f32 %v5860_v52, %v7951_v47  ;;  %v4511_v39 = vpop.f32.mrb[59].mxu0 }
 0x516   : > { %v4564_v28 = vmax.f32 %v4548_v27, 0.0  ;;  %v4512_v48 = vadd.f32 %v7951_v47, %v4511_v39 }
 0x517   : > { %4581 = vst [vmem:[%s7700_s13 + $0x68] sm:$0xff] %v4565_v44  ;;  %v4551_v8 = vadd.f32 %v4535_v57, %v4517_v23 }
 0x518   : > { %4580 = vst [vmem:[%s7700_s13 + $0x60] sm:$0xff] %v4564_v28  ;;  %v4550_v54 = vadd.f32 %v4534_v46, %v4512_v48 }
 0x519   : > { %v4567_v59 = vmax.f32 %v4551_v8, 0.0 }
 0x51a   : > { %v4566_v7 = vmax.f32 %v4550_v54, 0.0 }
 0x51b   : > { %4583 = vst [vmem:[%s7700_s13 + $0x78] sm:$0xff] %v4567_v59 }
 0x51c   : > { %4582 = vst [vmem:[%s7700_s13 + $0x70] sm:$0xff] %v4566_v7 }
 0x51d   : > { %6788 = shalt.err (!%p6785_p11)
}
 0x51e   : > { %s6789_s13 = scalar_lea.hbm %s8005_s3, 2048  ;;  %s6793_s23 = scalar_lea.hbm %s8126_s22, 8192 }
 0x51f   : > { %p6790_p12 = scmp.ne.s32.totalorder %s8005_s3, %s6789_s13  ;;  %p6794_p0 = scmp.lt.u32.totalorder %s8005_s3, %s8126_s22 }
 0x520   : > { %p6795_p4 = scmp.lt.u32.totalorder %s6793_s23, %s6789_s13  ;;  %p6797_p6 = scmp.lt.u32.totalorder %s6789_s13, %s8005_s3 }
 0x521   : > { %p6791_p13 = pnand %p6790_p12, %p8127_p8 }
 0x522   : > { %p6796_p10 = por %p6795_p4, %p6794_p0 }
 0x523   : > { %p6792_p2 = pneg %p6791_p13 }
 0x524   : > { %p6798_p9 = por %p6797_p6, %p6796_p10 }
 0x526   : > { %p6799_p3 = pnand %p6798_p9, %p6792_p2 }
 0x528   : > { %6802 = shalt.err (!%p6799_p3)
}
 0x529   : > { %s6912_s7 = smov 128   ;;  %s6913_s24 = smov 8  }
 0x52a   : > { %6401 = dma.vmem_to_hbm [thread:$0]  (%p8127_p8), %s8007_s15, 2048, %s8005_s3, %s4585_s26, %s6912_s7, %s6912_s7, %s6913_s24  }
 0x52b PF: > { %p6446_p7 = scmp.ge.s32.totalorder %s6893_s12, 2  ;;  %s4616_s5 = sand.u32 1, %s6865_s27  }
 0x52c   : > { %p8128_p5 = scmp.ne.s32.totalorder %s8108_s18, 0  ;;  %s4617_s21 = scalar_lea.sflag [#allocation5], %s4616_s5 }
 0x52e   : > { %p6430_p1 = pnand %p6446_p7, %p8128_p5 }
 0x530   : > { %6860 = dma.done.wait (!%p6430_p1), %s4617_s21, 2048  }
 0x531   : > { %6862 = vsyncadd (!%p6430_p1), %s4617_s21, 4294965248  ;;  %s30_s12 = sadd.s32 1, %s6893_s12   ;;  %s8129_s19 = sld [smem:[#allocation28_spill]] }
 0x532   : > { %p27_p11 = scmp.ge.s32.totalorder %s30_s12, 6   ;;  %s8130_s27 = smov %s6869_s28 }
 0x533   : > { %s8131_s28 = smov %s6873_s29  ;;  %s8132_s29 = smov %s7201_s14 }
 0x534   : > { %s8133_s30 = smov %s6885_s10  ;;  %s8134_s9 = smov %s6889_s11 }
 0x535   : > { %s8135_s10 = smov %s8138_s20  ;;  %29 = sbr.rel (!%p27_p11) target bundleno = 21 (0x15), region = 153 }
 0x537   : > { %s8136_s11 = smov %s8129_s19 }
 0x53c   :  { %4622 = vsyncpa [#allocation4], 1 }
 0x53d   :  { %4624 = vsyncpa [#allocation4 + $0x1], 1 }
 0x53e   :  { %4625 = vsyncpa [#allocation7], 1 }
 0x53f   :  { %4627 = vsyncpa [#allocation7 + $0x1], 1 }
 0x540   :  { %4628 = vsyncpa [#allocation10], 1 }
 0x541   :  { %4629 = vsyncpa [#allocation13], 1 }
 0x542   :  { %4630 = vsyncpa [#allocation16], 1 }
 0x543   :  { %4631 = vsyncpa [#allocation5], 1 }
 0x544   :  { %4633 = vsyncpa [#allocation5 + $0x1], 1 }

</bundles_post_ra>
